<compile_context>
chip_gen: v7x
topology: tpu7x:2x2x1
jax: 0.10.0
libtpu: 0.0.40
codegen_flags: <defaults>
</compile_context>

<pallas_src>
import functools

import jax
import jax.numpy as jnp
from jax.experimental import pallas as pl
from jax.experimental.pallas import tpu as pltpu

EPS = 1e-5
_VMEM_LIMIT = 32 * 1024 * 1024  # safe default on v5e/v6e/v7x


def _round_up(x, m):
    return ((x + m - 1) // m) * m


def _hswish(x):
    # x * relu6(x + 3) / 6   (kept in f32 on the VPU)
    return x * jnp.clip(x + 3.0, 0.0, 6.0) * (1.0 / 6.0)


def fold_bn(bn):
    scale = bn["gamma"] / jnp.sqrt(bn["var"] + EPS)
    bias = bn["beta"] - bn["mean"] * scale
    return scale, bias


# ----------------------------------------------------------------------------
# Kernel 1: tiled matmul + bias + activation (stem im2col conv; generic 1x1)
# ----------------------------------------------------------------------------
def _matmul_bias_act_kernel(x_ref, w_ref, b_ref, o_ref, *, act):
    y = jnp.dot(x_ref[...].astype(jnp.bfloat16), w_ref[...],
                preferred_element_type=jnp.float32)
    y = y + b_ref[...]
    if act == "hswish":
        y = _hswish(y)
    elif act == "relu_hswish":
        y = _hswish(jnp.maximum(y, 0.0))
    o_ref[...] = y


def matmul_bias_act(x2d, w_bf16, bias, act, *, tile_m=512):
    M, K = x2d.shape
    Nc = w_bf16.shape[1]
    tm = min(M, tile_m)
    kern = functools.partial(_matmul_bias_act_kernel, act=act)
    return pl.pallas_call(
        kern,
        out_shape=jax.ShapeDtypeStruct((M, Nc), jnp.float32),
        grid=(pl.cdiv(M, tm),),
        in_specs=[
            pl.BlockSpec((tm, K), lambda i: (i, 0)),
            pl.BlockSpec((K, Nc), lambda i: (0, 0)),
            pl.BlockSpec((1, Nc), lambda i: (0, 0)),
        ],
        out_specs=pl.BlockSpec((tm, Nc), lambda i: (i, 0)),
        compiler_params=pltpu.CompilerParams(
            dimension_semantics=("parallel",), vmem_limit_bytes=_VMEM_LIMIT),
    )(x2d, w_bf16, bias)


# ----------------------------------------------------------------------------
# Kernel 2: fused DepthwiseSeparableConv block (expand + dw3x3 + project)
# ----------------------------------------------------------------------------
def _dsconv_block_kernel(x_ref, mask_ref, we_ref, be_ref, wd_ref, bd_ref,
                         wp_ref, bp_ref, o_ref, e_scr, *, wpad, hwp):
    # expand 1x1 + folded BN + HSwish over the zero-padded, flattened image
    e = jnp.dot(x_ref[...].astype(jnp.bfloat16), we_ref[...],
                preferred_element_type=jnp.float32)
    e = _hswish(e + be_ref[...]) * mask_ref[...]   # mask zeroes the padding ring
    e_scr[...] = e                                  # expanded act stays in VMEM

    # depthwise 3x3 (computed at stride 1) as 9 shifted row-slices of e_scr
    acc = None
    for t in range(9):
        ky, kx = divmod(t, 3)
        s = (ky + 1) * wpad + kx - 1               # flat shift of tap (ky, kx)
        tap = e_scr[s:s + hwp, :] * wd_ref[t:t + 1, :]
        acc = tap if acc is None else acc + tap
    d = acc + bd_ref[...]

    # project 1x1 + folded BN (no activation)
    y = jnp.dot(d.astype(jnp.bfloat16), wp_ref[...],
                preferred_element_type=jnp.float32)
    o_ref[...] = y + bp_ref[...]


def dsconv_block(x_nhwc, we, be, wd9, bd, wproj, bp, stride):
    N, H, W, Cin = x_nhwc.shape
    Ce = we.shape[1]
    Cout = wproj.shape[1]
    sh, sw = stride
    Ho = (H + 2 - 3) // sh + 1
    Wo = (W + 2 - 3) // sw + 1

    # padded, sublane-rounded spatial layout: 2 halo rows top/bottom, 1 halo
    # column left, width rounded up to a multiple of 8 on the right.
    Wpad = _round_up(W + 2, 8)
    Mpad = (H + 4) * Wpad
    HWp = H * Wpad

    xp = jnp.pad(x_nhwc, ((0, 0), (2, 2), (1, Wpad - W - 1), (0, 0)))
    xf = xp.reshape(N, Mpad, Cin)

    # mask = 1 on real pixels, 0 on the padding ring / slack columns
    idx = jnp.arange(Mpad)
    py, px = idx // Wpad, idx % Wpad
    mask = ((py >= 2) & (py <= H + 1) & (px >= 1) & (px <= W))
    mask = mask.astype(jnp.float32).reshape(Mpad, 1)

    kern = functools.partial(_dsconv_block_kernel, wpad=Wpad, hwp=HWp)
    out = pl.pallas_call(
        kern,
        out_shape=jax.ShapeDtypeStruct((N, HWp, Cout), jnp.float32),
        grid=(N,),
        in_specs=[
            pl.BlockSpec((None, Mpad, Cin), lambda n: (n, 0, 0)),
            pl.BlockSpec((Mpad, 1), lambda n: (0, 0)),
            pl.BlockSpec((Cin, Ce), lambda n: (0, 0)),
            pl.BlockSpec((1, Ce), lambda n: (0, 0)),
            pl.BlockSpec((9, Ce), lambda n: (0, 0)),
            pl.BlockSpec((1, Ce), lambda n: (0, 0)),
            pl.BlockSpec((Ce, Cout), lambda n: (0, 0)),
            pl.BlockSpec((1, Cout), lambda n: (0, 0)),
        ],
        out_specs=pl.BlockSpec((None, HWp, Cout), lambda n: (n, 0, 0)),
        scratch_shapes=[pltpu.VMEM((Mpad, Ce), jnp.float32)],
        compiler_params=pltpu.CompilerParams(
            dimension_semantics=("parallel",), vmem_limit_bytes=_VMEM_LIMIT),
    )(xf, mask, we, be, wd9, bd, wproj, bp)

    # drop halo/slack columns and apply the depthwise stride (exact: project is
    # a per-pixel linear map, so it commutes with subsampling)
    y = out.reshape(N, H, Wpad, Cout)
    return y[:, 0:sh * Ho:sh, 1:1 + sw * Wo:sw, :]


# ----------------------------------------------------------------------------
# Kernel 3: out_conv (1x1 conv + BN + ReLU + HSwish) fused with global avg pool
# ----------------------------------------------------------------------------
def _conv1x1_relu_hswish_gap_kernel(x_ref, w_ref, b_ref, o_ref):
    y = jnp.dot(x_ref[...].astype(jnp.bfloat16), w_ref[...],
                preferred_element_type=jnp.float32) + b_ref[...]
    y = _hswish(jnp.maximum(y, 0.0))
    o_ref[...] = jnp.mean(y, axis=0, keepdims=True)


def conv1x1_relu_hswish_gap(x_nhwc, w_bf16, bias):
    N, H, W, Cin = x_nhwc.shape
    Cout = w_bf16.shape[1]
    HW = H * W
    xf = x_nhwc.reshape(N, HW, Cin)
    return pl.pallas_call(
        _conv1x1_relu_hswish_gap_kernel,
        out_shape=jax.ShapeDtypeStruct((N, 1, Cout), jnp.float32),
        grid=(N,),
        in_specs=[
            pl.BlockSpec((None, HW, Cin), lambda n: (n, 0, 0)),
            pl.BlockSpec((Cin, Cout), lambda n: (0, 0)),
            pl.BlockSpec((1, Cout), lambda n: (0, 0)),
        ],
        out_specs=pl.BlockSpec((None, 1, Cout), lambda n: (n, 0, 0)),
        compiler_params=pltpu.CompilerParams(
            dimension_semantics=("parallel",), vmem_limit_bytes=_VMEM_LIMIT),
    )(xf, w_bf16, bias)  # (N, 1, Cout)


# ----------------------------------------------------------------------------
# Stem: im2col (kept only here, Cin=3) + tiled matmul kernel
# ----------------------------------------------------------------------------
def _extract_taps(x_nhwc, stride, pad):
    N, H, W, C = x_nhwc.shape
    sh, sw = stride
    ph, pw = pad
    xp = jnp.pad(x_nhwc, ((0, 0), (ph, ph), (pw, pw), (0, 0)))
    Ho = (H + 2 * ph - 3) // sh + 1
    Wo = (W + 2 * pw - 3) // sw + 1
    taps = []
    for ky in range(3):
        for kx in range(3):
            t = xp[:, ky:ky + sh * (Ho - 1) + 1:sh, kx:kx + sw * (Wo - 1) + 1:sw, :]
            taps.append(t)
    return taps, Ho, Wo


def stem_conv3x3_bn_hswish(x_nhwc, w_folded_bf16, bias, stride, pad):
    N, H, W, Cin = x_nhwc.shape
    Cout = w_folded_bf16.shape[1]
    taps, Ho, Wo = _extract_taps(x_nhwc, stride, pad)
    patches = jnp.concatenate(taps, axis=-1).reshape(N * Ho * Wo, 9 * Cin)
    y = matmul_bias_act(patches, w_folded_bf16, bias, act="hswish")
    return y.reshape(N, Ho, Wo, Cout)


# ----------------------------------------------------------------------------
# MobileNetV3 config, parameter init (deterministic), forward
# ----------------------------------------------------------------------------
CONFIG = {
    "stem_params": {
        "conv": dict(in_channels=3, out_channels=8, kernel_size=(3, 3),
                     stride=(2, 2), padding=(1, 1), bias=False)
    },
    "layers_params": [
        dict(in_channels=8, out_channels=16, stride=(1, 1), expand_ratio=2),
        dict(in_channels=16, out_channels=24, stride=(2, 2), expand_ratio=2),
    ],
    "output_channels": 32,
    "apply_gap": True,
}


def init_conv(key, cout, cin_per_group, kh, kw):
    fan_in = cin_per_group * kh * kw
    return jax.random.normal(key, (cout, cin_per_group, kh, kw), jnp.float32) / jnp.sqrt(
        jnp.float32(fan_in))


def init_bn(key, c):
    k1, k2, k3, k4 = jax.random.split(key, 4)
    return dict(
        gamma=0.5 + jax.random.uniform(k1, (c,), jnp.float32),
        beta=0.1 * jax.random.normal(k2, (c,), jnp.float32),
        mean=0.1 * jax.random.normal(k3, (c,), jnp.float32),
        var=0.5 + jax.random.uniform(k4, (c,), jnp.float32),
    )


def init_params(key, config):
    keys = iter(jax.random.split(key, 64))
    sc = config["stem_params"]["conv"]
    params = {
        "stem": {
            "w": init_conv(next(keys), sc["out_channels"], sc["in_channels"],
                           *sc["kernel_size"]),
            "bn": init_bn(next(keys), sc["out_channels"]),
        }
    }
    layers = []
    for lp in config["layers_params"]:
        cin, cout, er = lp["in_channels"], lp["out_channels"], lp["expand_ratio"]
        ce = cin * er
        layers.append({
            "expand_w": init_conv(next(keys), ce, cin, 1, 1),
            "expand_bn": init_bn(next(keys), ce),
            "dw_w": init_conv(next(keys), ce, 1, 3, 3),
            "dw_bn": init_bn(next(keys), ce),
            "proj_w": init_conv(next(keys), cout, ce, 1, 1),
            "proj_bn": init_bn(next(keys), cout),
        })
    params["layers"] = layers
    last = config["layers_params"][-1]["out_channels"]
    params["out"] = {
        "w": init_conv(next(keys), config["output_channels"], last, 1, 1),
        "bn": init_bn(next(keys), config["output_channels"]),
    }
    return params


def mobilenetv3_forward(params, x_nchw, config):
    x = jnp.transpose(x_nchw, (0, 2, 3, 1)).astype(jnp.float32)  # NCHW -> NHWC

    # stem: Conv2dBn(3x3, s2) + HSwish   (BN scale folded into weights)
    st = params["stem"]
    sc = config["stem_params"]["conv"]
    s, b = fold_bn(st["bn"])
    wst = (jnp.transpose(st["w"], (2, 3, 1, 0)).reshape(-1, st["w"].shape[0])
           * s[None, :]).astype(jnp.bfloat16)
    x = stem_conv3x3_bn_hswish(x, wst, b[None, :], sc["stride"], sc["padding"])

    # DepthwiseSeparableConv blocks: one fused kernel per block
    for lp, p in zip(config["layers_params"], params["layers"]):
        ce, cin = p["expand_w"].shape[0], p["expand_w"].shape[1]
        cout = p["proj_w"].shape[0]

        se, be = fold_bn(p["expand_bn"])
        we = (p["expand_w"].reshape(ce, cin).T * se[None, :]).astype(jnp.bfloat16)

        sd, bd = fold_bn(p["dw_bn"])
        wd9 = p["dw_w"].reshape(ce, 9).T * sd[None, :]          # (9, Ce), f32

        sp, bp = fold_bn(p["proj_bn"])
        wpj = (p["proj_w"].reshape(cout, ce).T * sp[None, :]).astype(jnp.bfloat16)

        x = dsconv_block(x, we, be[None, :], wd9, bd[None, :],
                         wpj, bp[None, :], lp["stride"])

    # out_conv: Conv2dBnRelu(1x1) + HSwish, fused with GAP when enabled
    so, bo = fold_bn(params["out"]["bn"])
    cout, cin = params["out"]["w"].shape[0], params["out"]["w"].shape[1]
    wo = (params["out"]["w"].reshape(cout, cin).T * so[None, :]).astype(jnp.bfloat16)

    if config["apply_gap"]:
        g = conv1x1_relu_hswish_gap(x, wo, bo[None, :])          # (N, 1, Cout)
        return jnp.transpose(g, (0, 2, 1))[..., None]            # (N, Cout, 1, 1)

    N, H, W, _ = x.shape
    y = matmul_bias_act(x.reshape(N * H * W, cin), wo, bo[None, :],
                        act="relu_hswish")
    return jnp.transpose(y.reshape(N, H, W, cout), (0, 3, 1, 2))


# ----------------------------------------------------------------------------
# Pure-JAX reference (f32 HIGHEST lax convs) for correctness check
# ----------------------------------------------------------------------------
def _ref_conv(x, W, stride, pad, groups=1):
    k = jnp.transpose(W, (2, 3, 1, 0))  # (kh, kw, cin/groups, cout)
    return jax.lax.conv_general_dilated(
        x, k, window_strides=stride,
        padding=[(pad[0], pad[0]), (pad[1], pad[1])],
        dimension_numbers=("NHWC", "HWIO", "NHWC"),
        feature_group_count=groups,
        precision=jax.lax.Precision.HIGHEST,
    )


def reference_forward(params, x_nchw, config):
    def bn(y, p):
        s, b = fold_bn(p)
        return y * s + b

    x = jnp.transpose(x_nchw, (0, 2, 3, 1)).astype(jnp.float32)
    st = params["stem"]
    sc = config["stem_params"]["conv"]
    y = _hswish(bn(_ref_conv(x, st["w"], sc["stride"], sc["padding"]), st["bn"]))
    for lp, p in zip(config["layers_params"], params["layers"]):
        y = _hswish(bn(_ref_conv(y, p["expand_w"], (1, 1), (0, 0)), p["expand_bn"]))
        y = bn(_ref_conv(y, p["dw_w"], lp["stride"], (1, 1),
                         groups=p["dw_w"].shape[0]), p["dw_bn"])
        y = bn(_ref_conv(y, p["proj_w"], (1, 1), (0, 0)), p["proj_bn"])
    y = _hswish(jnp.maximum(
        bn(_ref_conv(y, params["out"]["w"], (1, 1), (0, 0)), params["out"]["bn"]), 0.0))
    if config["apply_gap"]:
        return jnp.mean(y, axis=(1, 2))[:, :, None, None]
    return jnp.transpose(y, (0, 3, 1, 2))


# ----------------------------------------------------------------------------
if __name__ == "__main__":
    key = jax.random.PRNGKey(0)
    kx, kp = jax.random.split(key)
    x = jax.random.normal(kx, (2, 3, 16, 16), jnp.float32)  # NCHW, like PyTorch
    params = init_params(kp, CONFIG)

    fwd = jax.jit(lambda p, xx: mobilenetv3_forward(p, xx, CONFIG))
    out = jax.block_until_ready(fwd(params, x))

    ref = jax.block_until_ready(reference_forward(params, x, CONFIG))

    assert out.shape == (2, CONFIG["output_channels"], 1, 1), out.shape
    err = float(jnp.max(jnp.abs(out - ref)))
    scale = float(jnp.max(jnp.abs(ref)))
    # Tolerance sized for bf16 MXU operands (f32 accumulation) vs f32-HIGHEST ref.
    assert err <= 2e-3 + 2e-2 * scale, (err, scale)

    print("KERNEL_OK")
</pallas_src>

<mosaic_0001>
module attributes {stable_mosaic.version = 11 : i64} {
  func.func @_matmul_bias_act_kernel(%arg0: i32, %arg1: memref<128x27xf32, #tpu.memory_space<vmem>>, %arg2: memref<27x8xbf16, #tpu.memory_space<vmem>>, %arg3: memref<1x8xf32, #tpu.memory_space<vmem>>, %arg4: memref<128x8xf32, #tpu.memory_space<vmem>>) attributes {dimension_semantics = [#tpu.dimension_semantics<parallel>], iteration_bounds = array<i64: 1>, scalar_prefetch = 0 : i64, scratch_operands = 0 : i64, tpu.core_type = #tpu.core_type<tc>, window_params = [{transform_indices = @transform_0, window_bounds = array<i64: 128, 27>}, {pipeline_mode = #tpu.pipeline_mode<synchronous>, transform_indices = @transform_1, window_bounds = array<i64: 27, 8>}, {pipeline_mode = #tpu.pipeline_mode<synchronous>, transform_indices = @transform_2, window_bounds = array<i64: 1, 8>}, {transform_indices = @transform_3, window_bounds = array<i64: 128, 8>}]} {
    %c0 = arith.constant 0 : index
    %c0_0 = arith.constant 0 : index
    %0 = vector.load %arg1[%c0, %c0_0] : memref<128x27xf32, #tpu.memory_space<vmem>>, vector<128x27xf32>
    %1 = arith.truncf %0 : vector<128x27xf32> to vector<128x27xbf16>
    %c0_1 = arith.constant 0 : index
    %c0_2 = arith.constant 0 : index
    %2 = vector.load %arg2[%c0_1, %c0_2] : memref<27x8xbf16, #tpu.memory_space<vmem>>, vector<27x8xbf16>
    %cst = arith.constant dense<0.000000e+00> : vector<128x8xf32>
    %3 = tpu.matmul %1, %2, %cst {dimension_numbers = #tpu.dot_dimension_numbers<[1], [0], [0], [1], [0, 0, 1, 1], [], []>} : vector<128x27xbf16>, vector<27x8xbf16>, vector<128x8xf32> -> vector<128x8xf32>
    %c0_3 = arith.constant 0 : index
    %c0_4 = arith.constant 0 : index
    %4 = vector.load %arg3[%c0_3, %c0_4] : memref<1x8xf32, #tpu.memory_space<vmem>>, vector<1x8xf32>
    %5 = vector.broadcast %4 : vector<1x8xf32> to vector<128x8xf32>
    %6 = arith.addf %3, %5 : vector<128x8xf32>
    %cst_5 = arith.constant 3.000000e+00 : f32
    %7 = vector.broadcast %cst_5 : f32 to vector<128x8xf32>
    %8 = arith.addf %6, %7 : vector<128x8xf32>
    %cst_6 = arith.constant 0.000000e+00 : f32
    %cst_7 = arith.constant 6.000000e+00 : f32
    %9 = vector.broadcast %cst_6 : f32 to vector<128x8xf32>
    %10 = arith.maximumf %9, %8 : vector<128x8xf32>
    %11 = vector.broadcast %cst_7 : f32 to vector<128x8xf32>
    %12 = arith.minimumf %11, %10 : vector<128x8xf32>
    %13 = arith.mulf %6, %12 : vector<128x8xf32>
    %cst_8 = arith.constant 0.166666672 : f32
    %14 = vector.broadcast %cst_8 : f32 to vector<128x8xf32>
    %15 = arith.mulf %13, %14 : vector<128x8xf32>
    %c0_9 = arith.constant 0 : index
    %c0_10 = arith.constant 0 : index
    %16 = vector.load %arg4[%c0_9, %c0_10] : memref<128x8xf32, #tpu.memory_space<vmem>>, vector<128x8xf32>
    tpu.vector_store %arg4[%c0_9, %c0_10], %15 {strides = array<i32>} : memref<128x8xf32, #tpu.memory_space<vmem>>, vector<128x8xf32>,
    return
  }
  func.func @transform_0(%arg0: i32) -> (i32, i32) {
    %c0_i32 = arith.constant 0 : i32
    %c0_i32_0 = arith.constant 0 : i32
    return %arg0, %c0_i32 : i32, i32
  }
  func.func @transform_1(%arg0: i32) -> (i32, i32) {
    %c0_i32 = arith.constant 0 : i32
    %c0_i32_0 = arith.constant 0 : i32
    %c0_i32_1 = arith.constant 0 : i32
    return %c0_i32, %c0_i32_0 : i32, i32
  }
  func.func @transform_2(%arg0: i32) -> (i32, i32) {
    %c0_i32 = arith.constant 0 : i32
    %c0_i32_0 = arith.constant 0 : i32
    %c0_i32_1 = arith.constant 0 : i32
    return %c0_i32, %c0_i32_0 : i32, i32
  }
  func.func @transform_3(%arg0: i32) -> (i32, i32) {
    %c0_i32 = arith.constant 0 : i32
    %c0_i32_0 = arith.constant 0 : i32
    return %arg0, %c0_i32 : i32, i32
  }
}

module attributes {stable_mosaic.version = 11 : i64} {
  func.func @_dsconv_block_kernel(%arg0: i32, %arg1: memref<1x192x8xf32, #tpu.memory_space<vmem>>, %arg2: memref<192x1xf32, #tpu.memory_space<vmem>>, %arg3: memref<8x16xbf16, #tpu.memory_space<vmem>>, %arg4: memref<1x16xf32, #tpu.memory_space<vmem>>, %arg5: memref<9x16xf32, #tpu.memory_space<vmem>>, %arg6: memref<1x16xf32, #tpu.memory_space<vmem>>, %arg7: memref<16x16xbf16, #tpu.memory_space<vmem>>, %arg8: memref<1x16xf32, #tpu.memory_space<vmem>>, %arg9: memref<1x128x16xf32, #tpu.memory_space<vmem>>, %arg10: memref<192x16xf32, #tpu.memory_space<vmem>>) attributes {dimension_semantics = [#tpu.dimension_semantics<parallel>], iteration_bounds = array<i64: 2>, scalar_prefetch = 0 : i64, scratch_operands = 1 : i64, tpu.core_type = #tpu.core_type<tc>, window_params = [{transform_indices = @transform_0, window_bounds = array<i64: 1, 192, 8>}, {pipeline_mode = #tpu.pipeline_mode<synchronous>, transform_indices = @transform_1, window_bounds = array<i64: 192, 1>}, {pipeline_mode = #tpu.pipeline_mode<synchronous>, transform_indices = @transform_2, window_bounds = array<i64: 8, 16>}, {pipeline_mode = #tpu.pipeline_mode<synchronous>, transform_indices = @transform_3, window_bounds = array<i64: 1, 16>}, {pipeline_mode = #tpu.pipeline_mode<synchronous>, transform_indices = @transform_4, window_bounds = array<i64: 9, 16>}, {pipeline_mode = #tpu.pipeline_mode<synchronous>, transform_indices = @transform_5, window_bounds = array<i64: 1, 16>}, {pipeline_mode = #tpu.pipeline_mode<synchronous>, transform_indices = @transform_6, window_bounds = array<i64: 16, 16>}, {pipeline_mode = #tpu.pipeline_mode<synchronous>, transform_indices = @transform_7, window_bounds = array<i64: 1, 16>}, {transform_indices = @transform_8, window_bounds = array<i64: 1, 128, 16>}]} {
    %c0 = arith.constant 0 : index
    %c0_0 = arith.constant 0 : index
    %c0_1 = arith.constant 0 : index
    %0 = vector.load %arg1[%c0, %c0_0, %c0_1] : memref<1x192x8xf32, #tpu.memory_space<vmem>>, vector<1x192x8xf32>
    %1 = vector.shape_cast %0 : vector<1x192x8xf32> to vector<192x8xf32>
    %2 = arith.truncf %1 : vector<192x8xf32> to vector<192x8xbf16>
    %c0_2 = arith.constant 0 : index
    %c0_3 = arith.constant 0 : index
    %3 = vector.load %arg3[%c0_2, %c0_3] : memref<8x16xbf16, #tpu.memory_space<vmem>>, vector<8x16xbf16>
    %cst = arith.constant dense<0.000000e+00> : vector<192x16xf32>
    %4 = tpu.matmul %2, %3, %cst {dimension_numbers = #tpu.dot_dimension_numbers<[1], [0], [0], [1], [0, 0, 1, 1], [], []>} : vector<192x8xbf16>, vector<8x16xbf16>, vector<192x16xf32> -> vector<192x16xf32>
    %c0_4 = arith.constant 0 : index
    %c0_5 = arith.constant 0 : index
    %5 = vector.load %arg4[%c0_4, %c0_5] : memref<1x16xf32, #tpu.memory_space<vmem>>, vector<1x16xf32>
    %6 = vector.broadcast %5 : vector<1x16xf32> to vector<192x16xf32>
    %7 = arith.addf %4, %6 : vector<192x16xf32>
    %cst_6 = arith.constant 3.000000e+00 : f32
    %8 = vector.broadcast %cst_6 : f32 to vector<192x16xf32>
    %9 = arith.addf %7, %8 : vector<192x16xf32>
    %cst_7 = arith.constant 0.000000e+00 : f32
    %cst_8 = arith.constant 6.000000e+00 : f32
    %10 = vector.broadcast %cst_7 : f32 to vector<192x16xf32>
    %11 = arith.maximumf %10, %9 : vector<192x16xf32>
    %12 = vector.broadcast %cst_8 : f32 to vector<192x16xf32>
    %13 = arith.minimumf %12, %11 : vector<192x16xf32>
    %14 = arith.mulf %7, %13 : vector<192x16xf32>
    %cst_9 = arith.constant 0.166666672 : f32
    %15 = vector.broadcast %cst_9 : f32 to vector<192x16xf32>
    %16 = arith.mulf %14, %15 : vector<192x16xf32>
    %c0_10 = arith.constant 0 : index
    %c0_11 = arith.constant 0 : index
    %17 = vector.load %arg2[%c0_10, %c0_11] : memref<192x1xf32, #tpu.memory_space<vmem>>, vector<192x1xf32>
    %18 = vector.broadcast %17 : vector<192x1xf32> to vector<192x16xf32>
    %19 = arith.mulf %16, %18 : vector<192x16xf32>
    %c0_12 = arith.constant 0 : index
    %c0_13 = arith.constant 0 : index
    %20 = vector.load %arg10[%c0_12, %c0_13] : memref<192x16xf32, #tpu.memory_space<vmem>>, vector<192x16xf32>
    tpu.vector_store %arg10[%c0_12, %c0_13], %19 {strides = array<i32>} : memref<192x16xf32, #tpu.memory_space<vmem>>, vector<192x16xf32>,
    %c15 = arith.constant 15 : index
    %c0_14 = arith.constant 0 : index
    %21 = vector.load %arg10[%c15, %c0_14] : memref<192x16xf32, #tpu.memory_space<vmem>>, vector<128x16xf32>
    %c0_15 = arith.constant 0 : index
    %c0_16 = arith.constant 0 : index
    %22 = vector.load %arg5[%c0_15, %c0_16] : memref<9x16xf32, #tpu.memory_space<vmem>>, vector<1x16xf32>
    %23 = vector.broadcast %22 : vector<1x16xf32> to vector<128x16xf32>
    %24 = arith.mulf %21, %23 : vector<128x16xf32>
    %c16 = arith.constant 16 : index
    %c0_17 = arith.constant 0 : index
    %25 = vector.load %arg10[%c16, %c0_17] : memref<192x16xf32, #tpu.memory_space<vmem>>, vector<128x16xf32>
    %c1 = arith.constant 1 : index
    %c0_18 = arith.constant 0 : index
    %26 = vector.load %arg5[%c1, %c0_18] : memref<9x16xf32, #tpu.memory_space<vmem>>, vector<1x16xf32>
    %27 = vector.broadcast %26 : vector<1x16xf32> to vector<128x16xf32>
    %28 = arith.mulf %25, %27 : vector<128x16xf32>
    %29 = arith.addf %24, %28 : vector<128x16xf32>
    %c17 = arith.constant 17 : index
    %c0_19 = arith.constant 0 : index
    %30 = vector.load %arg10[%c17, %c0_19] : memref<192x16xf32, #tpu.memory_space<vmem>>, vector<128x16xf32>
    %c2 = arith.constant 2 : index
    %c0_20 = arith.constant 0 : index
    %31 = vector.load %arg5[%c2, %c0_20] : memref<9x16xf32, #tpu.memory_space<vmem>>, vector<1x16xf32>
    %32 = vector.broadcast %31 : vector<1x16xf32> to vector<128x16xf32>
    %33 = arith.mulf %30, %32 : vector<128x16xf32>
    %34 = arith.addf %29, %33 : vector<128x16xf32>
    %c31 = arith.constant 31 : index
    %c0_21 = arith.constant 0 : index
    %35 = vector.load %arg10[%c31, %c0_21] : memref<192x16xf32, #tpu.memory_space<vmem>>, vector<128x16xf32>
    %c3 = arith.constant 3 : index
    %c0_22 = arith.constant 0 : index
    %36 = vector.load %arg5[%c3, %c0_22] : memref<9x16xf32, #tpu.memory_space<vmem>>, vector<1x16xf32>
    %37 = vector.broadcast %36 : vector<1x16xf32> to vector<128x16xf32>
    %38 = arith.mulf %35, %37 : vector<128x16xf32>
    %39 = arith.addf %34, %38 : vector<128x16xf32>
    %c32 = arith.constant 32 : index
    %c0_23 = arith.constant 0 : index
    %40 = vector.load %arg10[%c32, %c0_23] : memref<192x16xf32, #tpu.memory_space<vmem>>, vector<128x16xf32>
    %c4 = arith.constant 4 : index
    %c0_24 = arith.constant 0 : index
    %41 = vector.load %arg5[%c4, %c0_24] : memref<9x16xf32, #tpu.memory_space<vmem>>, vector<1x16xf32>
    %42 = vector.broadcast %41 : vector<1x16xf32> to vector<128x16xf32>
    %43 = arith.mulf %40, %42 : vector<128x16xf32>
    %44 = arith.addf %39, %43 : vector<128x16xf32>
    %c33 = arith.constant 33 : index
    %c0_25 = arith.constant 0 : index
    %45 = vector.load %arg10[%c33, %c0_25] : memref<192x16xf32, #tpu.memory_space<vmem>>, vector<128x16xf32>
    %c5 = arith.constant 5 : index
    %c0_26 = arith.constant 0 : index
    %46 = vector.load %arg5[%c5, %c0_26] : memref<9x16xf32, #tpu.memory_space<vmem>>, vector<1x16xf32>
    %47 = vector.broadcast %46 : vector<1x16xf32> to vector<128x16xf32>
    %48 = arith.mulf %45, %47 : vector<128x16xf32>
    %49 = arith.addf %44, %48 : vector<128x16xf32>
    %c47 = arith.constant 47 : index
    %c0_27 = arith.constant 0 : index
    %50 = vector.load %arg10[%c47, %c0_27] : memref<192x16xf32, #tpu.memory_space<vmem>>, vector<128x16xf32>
    %c6 = arith.constant 6 : index
    %c0_28 = arith.constant 0 : index
    %51 = vector.load %arg5[%c6, %c0_28] : memref<9x16xf32, #tpu.memory_space<vmem>>, vector<1x16xf32>
    %52 = vector.broadcast %51 : vector<1x16xf32> to vector<128x16xf32>
    %53 = arith.mulf %50, %52 : vector<128x16xf32>
    %54 = arith.addf %49, %53 : vector<128x16xf32>
    %c48 = arith.constant 48 : index
    %c0_29 = arith.constant 0 : index
    %55 = vector.load %arg10[%c48, %c0_29] : memref<192x16xf32, #tpu.memory_space<vmem>>, vector<128x16xf32>
    %c7 = arith.constant 7 : index
    %c0_30 = arith.constant 0 : index
    %56 = vector.load %arg5[%c7, %c0_30] : memref<9x16xf32, #tpu.memory_space<vmem>>, vector<1x16xf32>
    %57 = vector.broadcast %56 : vector<1x16xf32> to vector<128x16xf32>
    %58 = arith.mulf %55, %57 : vector<128x16xf32>
    %59 = arith.addf %54, %58 : vector<128x16xf32>
    %c49 = arith.constant 49 : index
    %c0_31 = arith.constant 0 : index
    %60 = vector.load %arg10[%c49, %c0_31] : memref<192x16xf32, #tpu.memory_space<vmem>>, vector<128x16xf32>
    %c8 = arith.constant 8 : index
    %c0_32 = arith.constant 0 : index
    %61 = vector.load %arg5[%c8, %c0_32] : memref<9x16xf32, #tpu.memory_space<vmem>>, vector<1x16xf32>
    %62 = vector.broadcast %61 : vector<1x16xf32> to vector<128x16xf32>
    %63 = arith.mulf %60, %62 : vector<128x16xf32>
    %64 = arith.addf %59, %63 : vector<128x16xf32>
    %c0_33 = arith.constant 0 : index
    %c0_34 = arith.constant 0 : index
    %65 = vector.load %arg6[%c0_33, %c0_34] : memref<1x16xf32, #tpu.memory_space<vmem>>, vector<1x16xf32>
    %66 = vector.broadcast %65 : vector<1x16xf32> to vector<128x16xf32>
    %67 = arith.addf %64, %66 : vector<128x16xf32>
    %68 = arith.truncf %67 : vector<128x16xf32> to vector<128x16xbf16>
    %c0_35 = arith.constant 0 : index
    %c0_36 = arith.constant 0 : index
    %69 = vector.load %arg7[%c0_35, %c0_36] : memref<16x16xbf16, #tpu.memory_space<vmem>>, vector<16x16xbf16>
    %cst_37 = arith.constant dense<0.000000e+00> : vector<128x16xf32>
    %70 = tpu.matmul %68, %69, %cst_37 {dimension_numbers = #tpu.dot_dimension_numbers<[1], [0], [0], [1], [0, 0, 1, 1], [], []>} : vector<128x16xbf16>, vector<16x16xbf16>, vector<128x16xf32> -> vector<128x16xf32>
    %c0_38 = arith.constant 0 : index
    %c0_39 = arith.constant 0 : index
    %71 = vector.load %arg8[%c0_38, %c0_39] : memref<1x16xf32, #tpu.memory_space<vmem>>, vector<1x16xf32>
    %72 = vector.broadcast %71 : vector<1x16xf32> to vector<128x16xf32>
    %73 = arith.addf %70, %72 : vector<128x16xf32>
    %c0_40 = arith.constant 0 : index
    %c0_41 = arith.constant 0 : index
    %c0_42 = arith.constant 0 : index
    %74 = vector.load %arg9[%c0_40, %c0_41, %c0_42] : memref<1x128x16xf32, #tpu.memory_space<vmem>>, vector<1x128x16xf32>
    %75 = vector.shape_cast %74 : vector<1x128x16xf32> to vector<128x16xf32>
    %76 = vector.shape_cast %73 : vector<128x16xf32> to vector<1x128x16xf32>
    tpu.vector_store %arg9[%c0_40, %c0_41, %c0_42], %76 {strides = array<i32>} : memref<1x128x16xf32, #tpu.memory_space<vmem>>, vector<1x128x16xf32>,
    return
  }
  func.func @transform_0(%arg0: i32) -> (i32, i32, i32) {
    %c0_i32 = arith.constant 0 : i32
    %c0_i32_0 = arith.constant 0 : i32
    %c0_i32_1 = arith.constant 0 : i32
    return %arg0, %c0_i32, %c0_i32_0 : i32, i32, i32
  }
  func.func @transform_1(%arg0: i32) -> (i32, i32) {
    %c0_i32 = arith.constant 0 : i32
    %c0_i32_0 = arith.constant 0 : i32
    %c0_i32_1 = arith.constant 0 : i32
    return %c0_i32, %c0_i32_0 : i32, i32
  }
  func.func @transform_2(%arg0: i32) -> (i32, i32) {
    %c0_i32 = arith.constant 0 : i32
    %c0_i32_0 = arith.constant 0 : i32
    %c0_i32_1 = arith.constant 0 : i32
    return %c0_i32, %c0_i32_0 : i32, i32
  }
  func.func @transform_3(%arg0: i32) -> (i32, i32) {
    %c0_i32 = arith.constant 0 : i32
    %c0_i32_0 = arith.constant 0 : i32
    %c0_i32_1 = arith.constant 0 : i32
    return %c0_i32, %c0_i32_0 : i32, i32
  }
  func.func @transform_4(%arg0: i32) -> (i32, i32) {
    %c0_i32 = arith.constant 0 : i32
    %c0_i32_0 = arith.constant 0 : i32
    %c0_i32_1 = arith.constant 0 : i32
    return %c0_i32, %c0_i32_0 : i32, i32
  }
  func.func @transform_5(%arg0: i32) -> (i32, i32) {
    %c0_i32 = arith.constant 0 : i32
    %c0_i32_0 = arith.constant 0 : i32
    %c0_i32_1 = arith.constant 0 : i32
    return %c0_i32, %c0_i32_0 : i32, i32
  }
  func.func @transform_6(%arg0: i32) -> (i32, i32) {
    %c0_i32 = arith.constant 0 : i32
    %c0_i32_0 = arith.constant 0 : i32
    %c0_i32_1 = arith.constant 0 : i32
    return %c0_i32, %c0_i32_0 : i32, i32
  }
  func.func @transform_7(%arg0: i32) -> (i32, i32) {
    %c0_i32 = arith.constant 0 : i32
    %c0_i32_0 = arith.constant 0 : i32
    %c0_i32_1 = arith.constant 0 : i32
    return %c0_i32, %c0_i32_0 : i32, i32
  }
  func.func @transform_8(%arg0: i32) -> (i32, i32, i32) {
    %c0_i32 = arith.constant 0 : i32
    %c0_i32_0 = arith.constant 0 : i32
    %c0_i32_1 = arith.constant 0 : i32
    return %arg0, %c0_i32, %c0_i32_0 : i32, i32, i32
  }
}

module attributes {stable_mosaic.version = 11 : i64} {
  func.func @_dsconv_block_kernel(%arg0: i32, %arg1: memref<1x192x16xf32, #tpu.memory_space<vmem>>, %arg2: memref<192x1xf32, #tpu.memory_space<vmem>>, %arg3: memref<16x32xbf16, #tpu.memory_space<vmem>>, %arg4: memref<1x32xf32, #tpu.memory_space<vmem>>, %arg5: memref<9x32xf32, #tpu.memory_space<vmem>>, %arg6: memref<1x32xf32, #tpu.memory_space<vmem>>, %arg7: memref<32x24xbf16, #tpu.memory_space<vmem>>, %arg8: memref<1x24xf32, #tpu.memory_space<vmem>>, %arg9: memref<1x128x24xf32, #tpu.memory_space<vmem>>, %arg10: memref<192x32xf32, #tpu.memory_space<vmem>>) attributes {dimension_semantics = [#tpu.dimension_semantics<parallel>], iteration_bounds = array<i64: 2>, scalar_prefetch = 0 : i64, scratch_operands = 1 : i64, tpu.core_type = #tpu.core_type<tc>, window_params = [{transform_indices = @transform_0, window_bounds = array<i64: 1, 192, 16>}, {pipeline_mode = #tpu.pipeline_mode<synchronous>, transform_indices = @transform_1, window_bounds = array<i64: 192, 1>}, {pipeline_mode = #tpu.pipeline_mode<synchronous>, transform_indices = @transform_2, window_bounds = array<i64: 16, 32>}, {pipeline_mode = #tpu.pipeline_mode<synchronous>, transform_indices = @transform_3, window_bounds = array<i64: 1, 32>}, {pipeline_mode = #tpu.pipeline_mode<synchronous>, transform_indices = @transform_4, window_bounds = array<i64: 9, 32>}, {pipeline_mode = #tpu.pipeline_mode<synchronous>, transform_indices = @transform_5, window_bounds = array<i64: 1, 32>}, {pipeline_mode = #tpu.pipeline_mode<synchronous>, transform_indices = @transform_6, window_bounds = array<i64: 32, 24>}, {pipeline_mode = #tpu.pipeline_mode<synchronous>, transform_indices = @transform_7, window_bounds = array<i64: 1, 24>}, {transform_indices = @transform_8, window_bounds = array<i64: 1, 128, 24>}]} {
    %c0 = arith.constant 0 : index
    %c0_0 = arith.constant 0 : index
    %c0_1 = arith.constant 0 : index
    %0 = vector.load %arg1[%c0, %c0_0, %c0_1] : memref<1x192x16xf32, #tpu.memory_space<vmem>>, vector<1x192x16xf32>
    %1 = vector.shape_cast %0 : vector<1x192x16xf32> to vector<192x16xf32>
    %2 = arith.truncf %1 : vector<192x16xf32> to vector<192x16xbf16>
    %c0_2 = arith.constant 0 : index
    %c0_3 = arith.constant 0 : index
    %3 = vector.load %arg3[%c0_2, %c0_3] : memref<16x32xbf16, #tpu.memory_space<vmem>>, vector<16x32xbf16>
    %cst = arith.constant dense<0.000000e+00> : vector<192x32xf32>
    %4 = tpu.matmul %2, %3, %cst {dimension_numbers = #tpu.dot_dimension_numbers<[1], [0], [0], [1], [0, 0, 1, 1], [], []>} : vector<192x16xbf16>, vector<16x32xbf16>, vector<192x32xf32> -> vector<192x32xf32>
    %c0_4 = arith.constant 0 : index
    %c0_5 = arith.constant 0 : index
    %5 = vector.load %arg4[%c0_4, %c0_5] : memref<1x32xf32, #tpu.memory_space<vmem>>, vector<1x32xf32>
    %6 = vector.broadcast %5 : vector<1x32xf32> to vector<192x32xf32>
    %7 = arith.addf %4, %6 : vector<192x32xf32>
    %cst_6 = arith.constant 3.000000e+00 : f32
    %8 = vector.broadcast %cst_6 : f32 to vector<192x32xf32>
    %9 = arith.addf %7, %8 : vector<192x32xf32>
    %cst_7 = arith.constant 0.000000e+00 : f32
    %cst_8 = arith.constant 6.000000e+00 : f32
    %10 = vector.broadcast %cst_7 : f32 to vector<192x32xf32>
    %11 = arith.maximumf %10, %9 : vector<192x32xf32>
    %12 = vector.broadcast %cst_8 : f32 to vector<192x32xf32>
    %13 = arith.minimumf %12, %11 : vector<192x32xf32>
    %14 = arith.mulf %7, %13 : vector<192x32xf32>
    %cst_9 = arith.constant 0.166666672 : f32
    %15 = vector.broadcast %cst_9 : f32 to vector<192x32xf32>
    %16 = arith.mulf %14, %15 : vector<192x32xf32>
    %c0_10 = arith.constant 0 : index
    %c0_11 = arith.constant 0 : index
    %17 = vector.load %arg2[%c0_10, %c0_11] : memref<192x1xf32, #tpu.memory_space<vmem>>, vector<192x1xf32>
    %18 = vector.broadcast %17 : vector<192x1xf32> to vector<192x32xf32>
    %19 = arith.mulf %16, %18 : vector<192x32xf32>
    %c0_12 = arith.constant 0 : index
    %c0_13 = arith.constant 0 : index
    %20 = vector.load %arg10[%c0_12, %c0_13] : memref<192x32xf32, #tpu.memory_space<vmem>>, vector<192x32xf32>
    tpu.vector_store %arg10[%c0_12, %c0_13], %19 {strides = array<i32>} : memref<192x32xf32, #tpu.memory_space<vmem>>, vector<192x32xf32>,
    %c15 = arith.constant 15 : index
    %c0_14 = arith.constant 0 : index
    %21 = vector.load %arg10[%c15, %c0_14] : memref<192x32xf32, #tpu.memory_space<vmem>>, vector<128x32xf32>
    %c0_15 = arith.constant 0 : index
    %c0_16 = arith.constant 0 : index
    %22 = vector.load %arg5[%c0_15, %c0_16] : memref<9x32xf32, #tpu.memory_space<vmem>>, vector<1x32xf32>
    %23 = vector.broadcast %22 : vector<1x32xf32> to vector<128x32xf32>
    %24 = arith.mulf %21, %23 : vector<128x32xf32>
    %c16 = arith.constant 16 : index
    %c0_17 = arith.constant 0 : index
    %25 = vector.load %arg10[%c16, %c0_17] : memref<192x32xf32, #tpu.memory_space<vmem>>, vector<128x32xf32>
    %c1 = arith.constant 1 : index
    %c0_18 = arith.constant 0 : index
    %26 = vector.load %arg5[%c1, %c0_18] : memref<9x32xf32, #tpu.memory_space<vmem>>, vector<1x32xf32>
    %27 = vector.broadcast %26 : vector<1x32xf32> to vector<128x32xf32>
    %28 = arith.mulf %25, %27 : vector<128x32xf32>
    %29 = arith.addf %24, %28 : vector<128x32xf32>
    %c17 = arith.constant 17 : index
    %c0_19 = arith.constant 0 : index
    %30 = vector.load %arg10[%c17, %c0_19] : memref<192x32xf32, #tpu.memory_space<vmem>>, vector<128x32xf32>
    %c2 = arith.constant 2 : index
    %c0_20 = arith.constant 0 : index
    %31 = vector.load %arg5[%c2, %c0_20] : memref<9x32xf32, #tpu.memory_space<vmem>>, vector<1x32xf32>
    %32 = vector.broadcast %31 : vector<1x32xf32> to vector<128x32xf32>
    %33 = arith.mulf %30, %32 : vector<128x32xf32>
    %34 = arith.addf %29, %33 : vector<128x32xf32>
    %c31 = arith.constant 31 : index
    %c0_21 = arith.constant 0 : index
    %35 = vector.load %arg10[%c31, %c0_21] : memref<192x32xf32, #tpu.memory_space<vmem>>, vector<128x32xf32>
    %c3 = arith.constant 3 : index
    %c0_22 = arith.constant 0 : index
    %36 = vector.load %arg5[%c3, %c0_22] : memref<9x32xf32, #tpu.memory_space<vmem>>, vector<1x32xf32>
    %37 = vector.broadcast %36 : vector<1x32xf32> to vector<128x32xf32>
    %38 = arith.mulf %35, %37 : vector<128x32xf32>
    %39 = arith.addf %34, %38 : vector<128x32xf32>
    %c32 = arith.constant 32 : index
    %c0_23 = arith.constant 0 : index
    %40 = vector.load %arg10[%c32, %c0_23] : memref<192x32xf32, #tpu.memory_space<vmem>>, vector<128x32xf32>
    %c4 = arith.constant 4 : index
    %c0_24 = arith.constant 0 : index
    %41 = vector.load %arg5[%c4, %c0_24] : memref<9x32xf32, #tpu.memory_space<vmem>>, vector<1x32xf32>
    %42 = vector.broadcast %41 : vector<1x32xf32> to vector<128x32xf32>
    %43 = arith.mulf %40, %42 : vector<128x32xf32>
    %44 = arith.addf %39, %43 : vector<128x32xf32>
    %c33 = arith.constant 33 : index
    %c0_25 = arith.constant 0 : index
    %45 = vector.load %arg10[%c33, %c0_25] : memref<192x32xf32, #tpu.memory_space<vmem>>, vector<128x32xf32>
    %c5 = arith.constant 5 : index
    %c0_26 = arith.constant 0 : index
    %46 = vector.load %arg5[%c5, %c0_26] : memref<9x32xf32, #tpu.memory_space<vmem>>, vector<1x32xf32>
    %47 = vector.broadcast %46 : vector<1x32xf32> to vector<128x32xf32>
    %48 = arith.mulf %45, %47 : vector<128x32xf32>
    %49 = arith.addf %44, %48 : vector<128x32xf32>
    %c47 = arith.constant 47 : index
    %c0_27 = arith.constant 0 : index
    %50 = vector.load %arg10[%c47, %c0_27] : memref<192x32xf32, #tpu.memory_space<vmem>>, vector<128x32xf32>
    %c6 = arith.constant 6 : index
    %c0_28 = arith.constant 0 : index
    %51 = vector.load %arg5[%c6, %c0_28] : memref<9x32xf32, #tpu.memory_space<vmem>>, vector<1x32xf32>
    %52 = vector.broadcast %51 : vector<1x32xf32> to vector<128x32xf32>
    %53 = arith.mulf %50, %52 : vector<128x32xf32>
    %54 = arith.addf %49, %53 : vector<128x32xf32>
    %c48 = arith.constant 48 : index
    %c0_29 = arith.constant 0 : index
    %55 = vector.load %arg10[%c48, %c0_29] : memref<192x32xf32, #tpu.memory_space<vmem>>, vector<128x32xf32>
    %c7 = arith.constant 7 : index
    %c0_30 = arith.constant 0 : index
    %56 = vector.load %arg5[%c7, %c0_30] : memref<9x32xf32, #tpu.memory_space<vmem>>, vector<1x32xf32>
    %57 = vector.broadcast %56 : vector<1x32xf32> to vector<128x32xf32>
    %58 = arith.mulf %55, %57 : vector<128x32xf32>
    %59 = arith.addf %54, %58 : vector<128x32xf32>
    %c49 = arith.constant 49 : index
    %c0_31 = arith.constant 0 : index
    %60 = vector.load %arg10[%c49, %c0_31] : memref<192x32xf32, #tpu.memory_space<vmem>>, vector<128x32xf32>
    %c8 = arith.constant 8 : index
    %c0_32 = arith.constant 0 : index
    %61 = vector.load %arg5[%c8, %c0_32] : memref<9x32xf32, #tpu.memory_space<vmem>>, vector<1x32xf32>
    %62 = vector.broadcast %61 : vector<1x32xf32> to vector<128x32xf32>
    %63 = arith.mulf %60, %62 : vector<128x32xf32>
    %64 = arith.addf %59, %63 : vector<128x32xf32>
    %c0_33 = arith.constant 0 : index
    %c0_34 = arith.constant 0 : index
    %65 = vector.load %arg6[%c0_33, %c0_34] : memref<1x32xf32, #tpu.memory_space<vmem>>, vector<1x32xf32>
    %66 = vector.broadcast %65 : vector<1x32xf32> to vector<128x32xf32>
    %67 = arith.addf %64, %66 : vector<128x32xf32>
    %68 = arith.truncf %67 : vector<128x32xf32> to vector<128x32xbf16>
    %c0_35 = arith.constant 0 : index
    %c0_36 = arith.constant 0 : index
    %69 = vector.load %arg7[%c0_35, %c0_36] : memref<32x24xbf16, #tpu.memory_space<vmem>>, vector<32x24xbf16>
    %cst_37 = arith.constant dense<0.000000e+00> : vector<128x24xf32>
    %70 = tpu.matmul %68, %69, %cst_37 {dimension_numbers = #tpu.dot_dimension_numbers<[1], [0], [0], [1], [0, 0, 1, 1], [], []>} : vector<128x32xbf16>, vector<32x24xbf16>, vector<128x24xf32> -> vector<128x24xf32>
    %c0_38 = arith.constant 0 : index
    %c0_39 = arith.constant 0 : index
    %71 = vector.load %arg8[%c0_38, %c0_39] : memref<1x24xf32, #tpu.memory_space<vmem>>, vector<1x24xf32>
    %72 = vector.broadcast %71 : vector<1x24xf32> to vector<128x24xf32>
    %73 = arith.addf %70, %72 : vector<128x24xf32>
    %c0_40 = arith.constant 0 : index
    %c0_41 = arith.constant 0 : index
    %c0_42 = arith.constant 0 : index
    %74 = vector.load %arg9[%c0_40, %c0_41, %c0_42] : memref<1x128x24xf32, #tpu.memory_space<vmem>>, vector<1x128x24xf32>
    %75 = vector.shape_cast %74 : vector<1x128x24xf32> to vector<128x24xf32>
    %76 = vector.shape_cast %73 : vector<128x24xf32> to vector<1x128x24xf32>
    tpu.vector_store %arg9[%c0_40, %c0_41, %c0_42], %76 {strides = array<i32>} : memref<1x128x24xf32, #tpu.memory_space<vmem>>, vector<1x128x24xf32>,
    return
  }
  func.func @transform_0(%arg0: i32) -> (i32, i32, i32) {
    %c0_i32 = arith.constant 0 : i32
    %c0_i32_0 = arith.constant 0 : i32
    %c0_i32_1 = arith.constant 0 : i32
    return %arg0, %c0_i32, %c0_i32_0 : i32, i32, i32
  }
  func.func @transform_1(%arg0: i32) -> (i32, i32) {
    %c0_i32 = arith.constant 0 : i32
    %c0_i32_0 = arith.constant 0 : i32
    %c0_i32_1 = arith.constant 0 : i32
    return %c0_i32, %c0_i32_0 : i32, i32
  }
  func.func @transform_2(%arg0: i32) -> (i32, i32) {
    %c0_i32 = arith.constant 0 : i32
    %c0_i32_0 = arith.constant 0 : i32
    %c0_i32_1 = arith.constant 0 : i32
    return %c0_i32, %c0_i32_0 : i32, i32
  }
  func.func @transform_3(%arg0: i32) -> (i32, i32) {
    %c0_i32 = arith.constant 0 : i32
    %c0_i32_0 = arith.constant 0 : i32
    %c0_i32_1 = arith.constant 0 : i32
    return %c0_i32, %c0_i32_0 : i32, i32
  }
  func.func @transform_4(%arg0: i32) -> (i32, i32) {
    %c0_i32 = arith.constant 0 : i32
    %c0_i32_0 = arith.constant 0 : i32
    %c0_i32_1 = arith.constant 0 : i32
    return %c0_i32, %c0_i32_0 : i32, i32
  }
  func.func @transform_5(%arg0: i32) -> (i32, i32) {
    %c0_i32 = arith.constant 0 : i32
    %c0_i32_0 = arith.constant 0 : i32
    %c0_i32_1 = arith.constant 0 : i32
    return %c0_i32, %c0_i32_0 : i32, i32
  }
  func.func @transform_6(%arg0: i32) -> (i32, i32) {
    %c0_i32 = arith.constant 0 : i32
    %c0_i32_0 = arith.constant 0 : i32
    %c0_i32_1 = arith.constant 0 : i32
    return %c0_i32, %c0_i32_0 : i32, i32
  }
  func.func @transform_7(%arg0: i32) -> (i32, i32) {
    %c0_i32 = arith.constant 0 : i32
    %c0_i32_0 = arith.constant 0 : i32
    %c0_i32_1 = arith.constant 0 : i32
    return %c0_i32, %c0_i32_0 : i32, i32
  }
  func.func @transform_8(%arg0: i32) -> (i32, i32, i32) {
    %c0_i32 = arith.constant 0 : i32
    %c0_i32_0 = arith.constant 0 : i32
    %c0_i32_1 = arith.constant 0 : i32
    return %arg0, %c0_i32, %c0_i32_0 : i32, i32, i32
  }
}

module attributes {stable_mosaic.version = 11 : i64} {
  func.func @_conv1x1_relu_hswish_gap_kernel(%arg0: i32, %arg1: memref<1x16x24xf32, #tpu.memory_space<vmem>>, %arg2: memref<24x32xbf16, #tpu.memory_space<vmem>>, %arg3: memref<1x32xf32, #tpu.memory_space<vmem>>, %arg4: memref<1x1x32xf32, #tpu.memory_space<vmem>>) attributes {dimension_semantics = [#tpu.dimension_semantics<parallel>], iteration_bounds = array<i64: 2>, scalar_prefetch = 0 : i64, scratch_operands = 0 : i64, tpu.core_type = #tpu.core_type<tc>, window_params = [{transform_indices = @transform_0, window_bounds = array<i64: 1, 16, 24>}, {pipeline_mode = #tpu.pipeline_mode<synchronous>, transform_indices = @transform_1, window_bounds = array<i64: 24, 32>}, {pipeline_mode = #tpu.pipeline_mode<synchronous>, transform_indices = @transform_2, window_bounds = array<i64: 1, 32>}, {transform_indices = @transform_3, window_bounds = array<i64: 1, 1, 32>}]} {
    %c0 = arith.constant 0 : index
    %c0_0 = arith.constant 0 : index
    %c0_1 = arith.constant 0 : index
    %0 = vector.load %arg1[%c0, %c0_0, %c0_1] : memref<1x16x24xf32, #tpu.memory_space<vmem>>, vector<1x16x24xf32>
    %1 = vector.shape_cast %0 : vector<1x16x24xf32> to vector<16x24xf32>
    %2 = arith.truncf %1 : vector<16x24xf32> to vector<16x24xbf16>
    %c0_2 = arith.constant 0 : index
    %c0_3 = arith.constant 0 : index
    %3 = vector.load %arg2[%c0_2, %c0_3] : memref<24x32xbf16, #tpu.memory_space<vmem>>, vector<24x32xbf16>
    %cst = arith.constant dense<0.000000e+00> : vector<16x32xf32>
    %4 = tpu.matmul %2, %3, %cst {dimension_numbers = #tpu.dot_dimension_numbers<[1], [0], [0], [1], [0, 0, 1, 1], [], []>} : vector<16x24xbf16>, vector<24x32xbf16>, vector<16x32xf32> -> vector<16x32xf32>
    %c0_4 = arith.constant 0 : index
    %c0_5 = arith.constant 0 : index
    %5 = vector.load %arg3[%c0_4, %c0_5] : memref<1x32xf32, #tpu.memory_space<vmem>>, vector<1x32xf32>
    %6 = vector.broadcast %5 : vector<1x32xf32> to vector<16x32xf32>
    %7 = arith.addf %4, %6 : vector<16x32xf32>
    %cst_6 = arith.constant 0.000000e+00 : f32
    %8 = vector.broadcast %cst_6 : f32 to vector<16x32xf32>
    %9 = arith.maximumf %7, %8 : vector<16x32xf32>
    %cst_7 = arith.constant 3.000000e+00 : f32
    %10 = vector.broadcast %cst_7 : f32 to vector<16x32xf32>
    %11 = arith.addf %9, %10 : vector<16x32xf32>
    %cst_8 = arith.constant 0.000000e+00 : f32
    %cst_9 = arith.constant 6.000000e+00 : f32
    %12 = vector.broadcast %cst_8 : f32 to vector<16x32xf32>
    %13 = arith.maximumf %12, %11 : vector<16x32xf32>
    %14 = vector.broadcast %cst_9 : f32 to vector<16x32xf32>
    %15 = arith.minimumf %14, %13 : vector<16x32xf32>
    %16 = arith.mulf %9, %15 : vector<16x32xf32>
    %cst_10 = arith.constant 0.166666672 : f32
    %17 = vector.broadcast %cst_10 : f32 to vector<16x32xf32>
    %18 = arith.mulf %16, %17 : vector<16x32xf32>
    %cst_11 = arith.constant dense<0.000000e+00> : vector<32xf32>
    %19 = vector.multi_reduction <add>, %18, %cst_11 [0] : vector<16x32xf32> to vector<32xf32>
    %20 = vector.shape_cast %19 : vector<32xf32> to vector<1x32xf32>
    %cst_12 = arith.constant 1.600000e+01 : f32
    %21 = vector.broadcast %cst_12 : f32 to vector<1x32xf32>
    %22 = arith.divf %20, %21 : vector<1x32xf32>
    %c0_13 = arith.constant 0 : index
    %c0_14 = arith.constant 0 : index
    %c0_15 = arith.constant 0 : index
    %23 = vector.load %arg4[%c0_13, %c0_14, %c0_15] : memref<1x1x32xf32, #tpu.memory_space<vmem>>, vector<1x1x32xf32>
    %24 = vector.shape_cast %23 : vector<1x1x32xf32> to vector<1x32xf32>
    %25 = vector.shape_cast %22 : vector<1x32xf32> to vector<1x1x32xf32>
    tpu.vector_store %arg4[%c0_13, %c0_14, %c0_15], %25 {strides = array<i32>} : memref<1x1x32xf32, #tpu.memory_space<vmem>>, vector<1x1x32xf32>,
    return
  }
  func.func @transform_0(%arg0: i32) -> (i32, i32, i32) {
    %c0_i32 = arith.constant 0 : i32
    %c0_i32_0 = arith.constant 0 : i32
    %c0_i32_1 = arith.constant 0 : i32
    return %arg0, %c0_i32, %c0_i32_0 : i32, i32, i32
  }
  func.func @transform_1(%arg0: i32) -> (i32, i32) {
    %c0_i32 = arith.constant 0 : i32
    %c0_i32_0 = arith.constant 0 : i32
    %c0_i32_1 = arith.constant 0 : i32
    return %c0_i32, %c0_i32_0 : i32, i32
  }
  func.func @transform_2(%arg0: i32) -> (i32, i32) {
    %c0_i32 = arith.constant 0 : i32
    %c0_i32_0 = arith.constant 0 : i32
    %c0_i32_1 = arith.constant 0 : i32
    return %c0_i32, %c0_i32_0 : i32, i32
  }
  func.func @transform_3(%arg0: i32) -> (i32, i32, i32) {
    %c0_i32 = arith.constant 0 : i32
    %c0_i32_0 = arith.constant 0 : i32
    %c0_i32_1 = arith.constant 0 : i32
    return %arg0, %c0_i32, %c0_i32_0 : i32, i32, i32
  }
}

</mosaic_0001>

<bundles_post_ra>
// kernel: _lambda_.4
= control target key start
LH: loop header
LB: loop body
LE: loop exit
PB: predicated region body
PF: predicated region fallthrough
CT: control target
= control target key end

     0   :  { %vm86_vm0 = vcmask 1044480   ;;  %vm87_vm1 = vcmask 1045504   ;;  %v339_v1 = vmov 65535   ;;  %vm61_vm2 = vcmask 220160   ;;  %s507_s1 = inlined_call_operand.vmem [shape: bf16[27,8], index: 1, kind: input, shape index: {}]   ;;  %s508_s0 = inlined_call_operand.vmem [shape: f32[128,27], index: 0, kind: input, shape index: {}]   ;;  %s509_s2 = inlined_call_operand.vmem [shape: f32[1,8], index: 2, kind: input, shape index: {}]   ;;  %s510_s3 = inlined_call_operand.vmem [shape: f32[128,8], index: 3, kind: output, shape index: {}]  }
   0x1   :  { %v337_v0 = vld [vmem:[%s507_s1] sm:$0xff]   ;;  %v88_v2 = vsel %vm86_vm0, 4294967295, %v339_v1  ;;  %v338_v3 = vld [vmem:[%s507_s1 + $0x8] sm:$0x3f]   ;;  %v17_v11 = vld [vmem:[%s508_s0 + $0x10] sm:$0xff]  ;;  %vm270_vm3 = vcmask 64512  }
   0x2   :  { %312 = vmatprep.subr.bf16.mxu0 %v337_v0  ;;  %332 = vmatprep.subr.bf16.mxu1 %v337_v0  ;;  %v89_v4 = vsel %vm87_vm1, %v88_v2, 0  ;;  %v15_v5 = vld [vmem:[%s508_s0] sm:$0xff]  ;;  %v16_v6 = vld [vmem:[%s508_s0 + $0x8] sm:$0xff]  ;;  %v18_v12 = vld [vmem:[%s508_s0 + $0x18] sm:$0xff] }
   0x3   :  { %v23_v7 = vld [vmem:[%s508_s0 + $0x40] sm:$0xff]  ;;  %313 = vmatpush3.bf16.msra.mxu0 %v337_v0  ;;  %334 = vmatpush3.bf16.msra.mxu1 %v337_v0  ;;  %v91_v8 = vand.u32 %v338_v3, %v89_v4  ;;  %v31_v9 = vpack.c.bf16 %v16_v6, %v15_v5  ;;  %v24_v10 = vld [vmem:[%s508_s0 + $0x48] sm:$0xff]  ;;  %v25_v14 = vld [vmem:[%s508_s0 + $0x50] sm:$0xff]  ;;  %v32_v20 = vpack.c.bf16 %v18_v12, %v17_v11 }
   0x4   :  { %v35_v13 = vpack.c.bf16 %v24_v10, %v23_v7  ;;  %v26_v15 = vld [vmem:[%s508_s0 + $0x58] sm:$0xff]  ;;  %v19_v16 = vld [vmem:[%s508_s0 + $0x20] sm:$0xff]  ;;  %v20_v17 = vld [vmem:[%s508_s0 + $0x28] sm:$0xff] }
   0x5   :  { %314 = vmatprep.subr.bf16.mxu0 %v91_v8  ;;  %333 = vmatprep.subr.bf16.mxu1 %v91_v8  ;;  %v27_v18 = vld [vmem:[%s508_s0 + $0x60] sm:$0xff]  ;;  %v28_v19 = vld [vmem:[%s508_s0 + $0x68] sm:$0xff]  ;;  %v36_v21 = vpack.c.bf16 %v26_v15, %v25_v14  ;;  %v33_v22 = vpack.c.bf16 %v20_v17, %v19_v16  ;;  %v21_v24 = vld [vmem:[%s508_s0 + $0x30] sm:$0xff] }
   0x6   :  { %316 = vmatprep.mubr.msk.bf16.mxu0 %vm61_vm2, %v31_v9  ;;  %324 = vmatprep.mubr.msk.bf16.mxu1 %vm61_vm2, %v35_v13  ;;  %v37_v23 = vpack.c.bf16 %v28_v19, %v27_v18  ;;  %v22_v25 = vld [vmem:[%s508_s0 + $0x38] sm:$0xff]  ;;  %v29_v26 = vld [vmem:[%s508_s0 + $0x70] sm:$0xff]  ;;  %v425_v30 = vld [vmem:[%s509_s2] ss:$0 sm:$0xff] }
   0x7   :  { %315 = vmatpush3.bf16.msra.mxu0 %v91_v8  ;;  %335 = vmatpush3.bf16.msra.mxu1 %v91_v8  ;;  %v30_v27 = vld [vmem:[%s508_s0 + $0x78] sm:$0xff]  ;;  %v34_v28 = vpack.c.bf16 %v22_v25, %v21_v24 }
   0x8   :  { %v38_v29 = vpack.c.bf16 %v30_v27, %v29_v26 }
   0xa   :  { %317 = vmatmul.mubr.msk.bf16.vlgmr.msra.gmra.mrb[0].mxu0 %vm61_vm2, %v32_v20  ;;  %325 = vmatmul.mubr.msk.bf16.vlgmr.msra.gmra.mrb[0].mxu1 %vm61_vm2, %v36_v21 }
   0xb   :  { %320 = vmatprep.mubr.msk.bf16.mxu0 %vm61_vm2, %v33_v22  ;;  %328 = vmatprep.mubr.msk.bf16.mxu1 %vm61_vm2, %v37_v23 }
  0x12   :  { %321 = vmatmul.mubr.msk.bf16.gmra.mrb[4].mxu0 %vm61_vm2, %v34_v28  ;;  %329 = vmatmul.mubr.msk.bf16.gmra.mrb[4].mxu1 %vm61_vm2, %v38_v29 }
  0xdd   :  { %v318_v31 = vpop.f32.mrb[0].mxu0  ;;  %v326_v32 = vpop.f32.mrb[0].mxu1 }
  0xde   :  { %v136_v33 = vadd.f32 %v318_v31, %v425_v30  ;;  %v168_v34 = vadd.f32 %v326_v32, %v425_v30  ;;  %v127_v35 = vpop.f32.mrb[1].mxu0  ;;  %v159_v36 = vpop.f32.mrb[1].mxu1 }
  0xdf   :  { %v128_v37 = vadd.f32 %v425_v30, %v127_v35  ;;  %v160_v38 = vadd.f32 %v425_v30, %v159_v36  ;;  %v319_v39 = vpop.f32.mrb[2].mxu0  ;;  %v327_v40 = vpop.f32.mrb[2].mxu1 }
  0xe0   :  { %v192_v41 = vadd.f32 3.0, %v136_v33  ;;  %v200_v42 = vadd.f32 3.0, %v168_v34  ;;  %v139_v43 = vadd.f32 %v319_v39, %v425_v30  ;;  %v171_v44 = vadd.f32 %v327_v40, %v425_v30  ;;  %v130_v45 = vpop.f32.mrb[3].mxu0  ;;  %v162_v46 = vpop.f32.mrb[3].mxu1 }
  0xe1   :  { %v190_v47 = vadd.f32 3.0, %v128_v37  ;;  %v198_v48 = vadd.f32 3.0, %v160_v38  ;;  %v131_v49 = vadd.f32 %v425_v30, %v130_v45  ;;  %v163_v50 = vadd.f32 %v425_v30, %v162_v46 }
  0xe2   :  { %v208_v51 = vmax.f32 %v192_v41, 0.0  ;;  %v216_v52 = vmax.f32 %v200_v42, 0.0  ;;  %v193_v53 = vadd.f32 3.0, %v139_v43  ;;  %v201_v54 = vadd.f32 3.0, %v171_v44 }
  0xe3   :  { %v206_v55 = vmax.f32 %v190_v47, 0.0  ;;  %v214_v56 = vmax.f32 %v198_v48, 0.0  ;;  %v191_v57 = vadd.f32 3.0, %v131_v49  ;;  %v199_v58 = vadd.f32 3.0, %v163_v50 }
  0xe4   :  { %v224_v59 = vmin.f32 %v208_v51, 6.0  ;;  %v232_v60 = vmin.f32 %v216_v52, 6.0  ;;  %v209_v61 = vmax.f32 %v193_v53, 0.0  ;;  %v217_v62 = vmax.f32 %v201_v54, 0.0 }
  0xe5   :  { %v222_v63 = vmin.f32 %v206_v55, 6.0  ;;  %v230_v0 = vmin.f32 %v214_v56, 6.0  ;;  %v207_v1 = vmax.f32 %v191_v57, 0.0  ;;  %v215_v2 = vmax.f32 %v199_v58, 0.0  ;;  %v322_v3 = vpop.f32.mrb[4].mxu0  ;;  %v330_v4 = vpop.f32.mrb[4].mxu1 }
  0xe6   :  { %v240_v5 = vmul.f32 %v224_v59, %v136_v33  ;;  %v248_v6 = vmul.f32 %v232_v60, %v168_v34  ;;  %v225_v7 = vmin.f32 %v209_v61, 6.0  ;;  %v233_v8 = vmin.f32 %v217_v62, 6.0  ;;  %v143_v9 = vpop.f32.mrb[5].mxu0  ;;  %v175_v10 = vpop.f32.mrb[5].mxu1 }
  0xe7   :  { %v238_v11 = vmul.f32 %v222_v63, %v128_v37  ;;  %v246_v12 = vmul.f32 %v230_v0, %v160_v38  ;;  %v223_v13 = vmin.f32 %v207_v1, 6.0  ;;  %v231_v14 = vmin.f32 %v215_v2, 6.0  ;;  %v323_v15 = vpop.f32.mrb[6].mxu0  ;;  %v331_v16 = vpop.f32.mrb[6].mxu1 }
  0xe8   :  { %v256_v17 = vmul.f32 0.16666667, %v240_v5  ;;  %v264_v18 = vmul.f32 0.16666667, %v248_v6  ;;  %v241_v19 = vmul.f32 %v225_v7, %v139_v43  ;;  %v249_v20 = vmul.f32 %v233_v8, %v171_v44  ;;  %v146_v21 = vpop.f32.mrb[7].mxu0  ;;  %v178_v22 = vpop.f32.mrb[7].mxu1 }
  0xe9   :  { %v254_v23 = vmul.f32 0.16666667, %v238_v11  ;;  %v262_v24 = vmul.f32 0.16666667, %v246_v12  ;;  %v239_v25 = vmul.f32 %v223_v13, %v131_v49  ;;  %v247_v26 = vmul.f32 %v231_v14, %v163_v50 }
  0xea   :  { %273 = vst.msk [vmem:[%s510_s3 + $0x10] sm:$0xff] %vm270_vm3, %v256_v17  ;;  %281 = vst.msk [vmem:[%s510_s3 + $0x50] sm:$0xff] %vm270_vm3, %v264_v18  ;;  %v257_v27 = vmul.f32 0.16666667, %v241_v19  ;;  %v265_v28 = vmul.f32 0.16666667, %v249_v20  ;;  %v152_v29 = vadd.f32 %v322_v3, %v425_v30  ;;  %v184_v31 = vadd.f32 %v330_v4, %v425_v30 }
  0xeb   :  { %271 = vst.msk [vmem:[%s510_s3] sm:$0xff] %vm270_vm3, %v254_v23  ;;  %279 = vst.msk [vmem:[%s510_s3 + $0x40] sm:$0xff] %vm270_vm3, %v262_v24  ;;  %v255_v32 = vmul.f32 0.16666667, %v239_v25  ;;  %v263_v33 = vmul.f32 0.16666667, %v247_v26  ;;  %v144_v34 = vadd.f32 %v425_v30, %v143_v9  ;;  %v176_v35 = vadd.f32 %v425_v30, %v175_v10 }
  0xec   :  { %274 = vst.msk [vmem:[%s510_s3 + $0x18] sm:$0xff] %vm270_vm3, %v257_v27  ;;  %282 = vst.msk [vmem:[%s510_s3 + $0x58] sm:$0xff] %vm270_vm3, %v265_v28  ;;  %v196_v36 = vadd.f32 3.0, %v152_v29  ;;  %v204_v37 = vadd.f32 3.0, %v184_v31  ;;  %v155_v38 = vadd.f32 %v323_v15, %v425_v30  ;;  %v187_v39 = vadd.f32 %v331_v16, %v425_v30 }
  0xed   :  { %272 = vst.msk [vmem:[%s510_s3 + $0x8] sm:$0xff] %vm270_vm3, %v255_v32  ;;  %280 = vst.msk [vmem:[%s510_s3 + $0x48] sm:$0xff] %vm270_vm3, %v263_v33  ;;  %v194_v40 = vadd.f32 3.0, %v144_v34  ;;  %v202_v41 = vadd.f32 3.0, %v176_v35  ;;  %v147_v42 = vadd.f32 %v425_v30, %v146_v21  ;;  %v179_v43 = vadd.f32 %v425_v30, %v178_v22 }
  0xee   :  { %v212_v44 = vmax.f32 %v196_v36, 0.0  ;;  %v220_v45 = vmax.f32 %v204_v37, 0.0  ;;  %v197_v46 = vadd.f32 3.0, %v155_v38  ;;  %v205_v47 = vadd.f32 3.0, %v187_v39 }
  0xef   :  { %v210_v48 = vmax.f32 %v194_v40, 0.0  ;;  %v218_v49 = vmax.f32 %v202_v41, 0.0  ;;  %v195_v50 = vadd.f32 3.0, %v147_v42  ;;  %v203_v51 = vadd.f32 3.0, %v179_v43 }
  0xf0   :  { %v228_v52 = vmin.f32 %v212_v44, 6.0  ;;  %v236_v53 = vmin.f32 %v220_v45, 6.0  ;;  %v213_v54 = vmax.f32 %v197_v46, 0.0  ;;  %v221_v55 = vmax.f32 %v205_v47, 0.0 }
  0xf1   :  { %v226_v56 = vmin.f32 %v210_v48, 6.0  ;;  %v234_v57 = vmin.f32 %v218_v49, 6.0  ;;  %v211_v58 = vmax.f32 %v195_v50, 0.0  ;;  %v219_v59 = vmax.f32 %v203_v51, 0.0 }
  0xf2   :  { %v244_v60 = vmul.f32 %v228_v52, %v152_v29  ;;  %v252_v61 = vmul.f32 %v236_v53, %v184_v31  ;;  %v229_v62 = vmin.f32 %v213_v54, 6.0  ;;  %v237_v30 = vmin.f32 %v221_v55, 6.0 }
  0xf3   :  { %v242_v63 = vmul.f32 %v226_v56, %v144_v34  ;;  %v250_v0 = vmul.f32 %v234_v57, %v176_v35  ;;  %v227_v1 = vmin.f32 %v211_v58, 6.0  ;;  %v235_v2 = vmin.f32 %v219_v59, 6.0 }
  0xf4   :  { %v260_v3 = vmul.f32 0.16666667, %v244_v60  ;;  %v268_v4 = vmul.f32 0.16666667, %v252_v61  ;;  %v245_v5 = vmul.f32 %v229_v62, %v155_v38  ;;  %v253_v6 = vmul.f32 %v237_v30, %v187_v39 }
  0xf5   :  { %v258_v7 = vmul.f32 0.16666667, %v242_v63  ;;  %v266_v8 = vmul.f32 0.16666667, %v250_v0  ;;  %v243_v9 = vmul.f32 %v227_v1, %v147_v42  ;;  %v251_v10 = vmul.f32 %v235_v2, %v179_v43 }
  0xf6   :  { %277 = vst.msk [vmem:[%s510_s3 + $0x30] sm:$0xff] %vm270_vm3, %v260_v3  ;;  %285 = vst.msk [vmem:[%s510_s3 + $0x70] sm:$0xff] %vm270_vm3, %v268_v4  ;;  %v261_v11 = vmul.f32 0.16666667, %v245_v5  ;;  %v269_v12 = vmul.f32 0.16666667, %v253_v6 }
  0xf7   :  { %275 = vst.msk [vmem:[%s510_s3 + $0x20] sm:$0xff] %vm270_vm3, %v258_v7  ;;  %283 = vst.msk [vmem:[%s510_s3 + $0x60] sm:$0xff] %vm270_vm3, %v266_v8  ;;  %v259_v13 = vmul.f32 0.16666667, %v243_v9  ;;  %v267_v14 = vmul.f32 0.16666667, %v251_v10 }
  0xf8   :  { %278 = vst.msk [vmem:[%s510_s3 + $0x38] sm:$0xff] %vm270_vm3, %v261_v11  ;;  %286 = vst.msk [vmem:[%s510_s3 + $0x78] sm:$0xff] %vm270_vm3, %v269_v12 }
  0xf9   :  { %276 = vst.msk [vmem:[%s510_s3 + $0x28] sm:$0xff] %vm270_vm3, %v259_v13  ;;  %284 = vst.msk [vmem:[%s510_s3 + $0x68] sm:$0xff] %vm270_vm3, %v267_v14 }

// kernel: _lambda_.7
= control target key start
LH: loop header
LB: loop body
LE: loop exit
PB: predicated region body
PF: predicated region fallthrough
CT: control target
= control target key end

     0   :  { %8 = vsyncpa [#allocation3], 0  ;;  %s598_s0 = inlined_call_operand.vmem [shape: f32[2,16,24], index: 0, kind: input, shape index: {}]   ;;  %s599_s1 = inlined_call_operand.vmem [shape: bf16[24,32], index: 1, kind: input, shape index: {}]   ;;  %s600_s2 = inlined_call_operand.vmem [shape: f32[1,32], index: 2, kind: input, shape index: {}]   ;;  %s601_s3 = inlined_call_operand.hbm [shape: f32[2,1,32], index: 3, kind: output, shape index: {}]  }
   0x1   :  { %10 = vsyncpa [#allocation3 + $0x1], 0  ;;  %s489_s12 = smov 0   ;;  %s491_s13 = smov 0  }
   0x2   :  { %s493_s14 = smov 0   ;;  %s495_s15 = smov 0  }
   0x3 LB: > { %s510_s16 = sadd.s32 4294967295, %s464_s15   ;;  %s334_s17 = sadd.s32 4294967294, %s464_s15   ;;  %s464_s15 = sphi %s495_s15, %s607_s15   ;;  %s460_s14 = sphi %s493_s14, %s606_s14   ;;  %s456_s13 = sphi %s491_s13, %s605_s13   ;;  %s452_s12 = sphi %s489_s12, %s604_s12  }
   0x4   : > { %s514_s18 = sadd.s32 1, %s464_s15   ;;  %s91_s19 = sadd.s32 1, %s460_s14 }
   0x5   : > { %s88_s20 = ssub.s32 %s464_s15, %s514_s18  ;;  %p101_p0 = scmp.ne.s32.totalorder %s460_s14, %s456_s13 }
   0x6   : > { %p89_p1 = scmp.eq.s32.totalorder %s88_s20, 0  ;;  %p102_p2 = scmp.eq.s32.totalorder %s510_s16, 1 }
   0x7   : > { %p107_p3 = scmp.ne.s32.totalorder %s456_s13, %s452_s12  ;;  %p108_p4 = scmp.eq.s32.totalorder %s334_s17, 1 }
   0x8   : > { %s525_s21 = scalar_select %p89_p1, %s460_s14, %s91_s19  }
   0x9   : > { %p527_p5 = por %p102_p2, %p101_p0  ;;  %p531_p6 = por %p108_p4, %p107_p3 }
   0xa   : > { %p337_p7 = scmp.ge.s32.totalorder %s464_s15, 1  ;;  %p140_p8 = scmp.lt.s32.totalorder %s464_s15, 3 }
   0xc   : > { %p141_p9 = pnand %p337_p7, %p140_p8 }
   0xd   : > { %v400_v0 = vld [vmem:[%s599_s1] sm:$0xff] (!%p141_p9)   ;;  %v466_v1 = vmov (!%p141_p9), 0.0   ;;  %v401_v2 = vld [vmem:[%s599_s1 + $0x8] ss:$0 sps:$4 sm:$0xff] (!%p141_p9)   ;;  %vm195_vm0 = vcmask (!%p141_p9), 1043456   ;;  %vm467_vm1 = vmmov (!%p141_p9), 0  }
   0xe   : > { %144 = sbr.rel (%p141_p9) target bundleno = 287 (0x11f), region = 32  ;;  %351 = vmatprep.subr.bf16.mxu0 (!%p141_p9), %v466_v1  ;;  %355 = vmatprep.mubr.msk.bf16.mxu0 (!%p141_p9), %vm467_vm1, %v466_v1  ;;  %p163_p10 = scmp.lt.s32.totalorder (!%p141_p9), %s510_s16, 1  ;;  %v197_v3 = vsel (!%p141_p9), %vm195_vm0, %v401_v2, 0  ;;  %vm191_vm2 = vcmask (!%p141_p9), 195584   ;;  %v340_v7 = vld [vmem:[%s600_s2] ss:$0 sm:$0xff] (!%p141_p9) }
   0xf   : > { %352 = vmatpush3.bf16.msra.mxu0 (!%p141_p9), %v400_v0  ;;  %vm252_vm3 = vcmask (!%p141_p9), 261120   ;;  %s161_s8 = sand.u32 (!%p141_p9), 1, %s456_s13   ;;  %s344_s9 = sshll.u32 (!%p141_p9), %s510_s16, 4  ;;  %vm264_vm4 = vcmask (!%p141_p9), 253952  }
  0x10   : > { %353 = vmatprep.subr.bf16.mxu0 (!%p141_p9), %v466_v1  ;;  %s162_s10 = scalar_lea.vmem (!%p141_p9), [#allocation2], %s161_s8  ;;  %s556_s20 = scalar_lea.hbm (!%p141_p9), %s601_s3, %s344_s9 }
  0x11   : > { %s279_s11 = sshll.u32 (!%p141_p9), %s162_s10, 4  ;;  %s267_s24 = scalar_lea.sflag (!%p141_p9), [#allocation3], %s161_s8  ;;  %s558_s11 = int_to_ptr.vmem [resolvable:$true] %s279_s11 }
  0x12   : > { %s402_s25 = scalar_lea.vmem (!%p141_p9), %s558_s11, 16 }
  0x13   : > { %354 = vmatpush3.bf16.msra.mxu0 (!%p141_p9), %v197_v3  ;;  %p403_p11 = scmp.ne.s32.totalorder (!%p141_p9), %s558_s11, %s402_s25 }
  0x15   : > { %s164_s28 = scalar_select %p163_p10, %s510_s16, 1 }
  0x16   : > { %p404_p12 = pnand %p403_p11, %p527_p5  ;;  %s468_s16 = smov [#allocation2]  }
  0x17   : > { %s347_s29 = sshll.u32 %s164_s28, 4  ;;  %s406_s26 = sshll.u32 %s468_s16, 4  ;;  %s407_s26 = int_to_ptr.vmem [resolvable:$false] %s406_s26 }
  0x18   : > { %s167_s5 = scalar_lea.vmem %s598_s0, %s347_s29  ;;  %p405_p13 = pneg %p404_p12 }
  0x19   : > { %v169_v4 = vld [vmem:[%s167_s5] sm:$0xff]  ;;  %v170_v5 = vld [vmem:[%s167_s5 + $0x8] sm:$0xff]  ;;  %s408_s27 = scalar_lea.vmem %s407_s26, 32  ;;  %p409_p0 = scmp.lt.s32.totalorder %s558_s11, %s407_s26 }
  0x1a   : > { %v171_v6 = vpack.c.bf16 %v170_v5, %v169_v4  ;;  %p410_p1 = scmp.lt.s32.totalorder %s408_s27, %s402_s25 }
  0x1c   : > { %356 = vmatmul.mubr.msk.bf16.vlgmr.msra.gmra.mrb[0].mxu0 %vm191_vm2, %v171_v6  ;;  %p411_p2 = por %p410_p1, %p409_p0 }
  0x1e   : > { %p412_p3 = pnand %p411_p2, %p405_p13 }
  0xef   : > { %v233_v8 = vpop.f32.mrb[0].mxu0 }
  0xf0   : > { %v234_v9 = vadd.f32 %v340_v7, %v233_v8  ;;  %v357_v10 = vpop.f32.mrb[1].mxu0 }
  0xf1   : > { %v236_v11 = vpop.f32.mrb[2].mxu0 }
  0xf2   : > { %v240_v12 = vmax.f32 %v234_v9, 0.0  ;;  %v237_v13 = vadd.f32 %v340_v7, %v236_v11  ;;  %v358_v14 = vpop.f32.mrb[3].mxu0 }
  0xf4   : > { %v242_v15 = vadd.f32 3.0, %v240_v12  ;;  %v241_v16 = vmax.f32 %v237_v13, 0.0 }
  0xf6   : > { %v244_v17 = vmax.f32 %v242_v15, 0.0  ;;  %v243_v18 = vadd.f32 3.0, %v241_v16 }
  0xf8   : > { %v246_v19 = vmin.f32 %v244_v17, 6.0  ;;  %v245_v20 = vmax.f32 %v243_v18, 0.0 }
  0xfa   : > { %v248_v21 = vmul.f32 %v246_v19, %v240_v12  ;;  %v247_v22 = vmin.f32 %v245_v20, 6.0 }
  0xfc   : > { %v250_v23 = vmul.f32 0.16666667, %v248_v21  ;;  %v249_v24 = vmul.f32 %v247_v22, %v241_v16 }
  0xfe   : > { %v251_v25 = vmul.f32 0.16666667, %v249_v24  ;;  %v253_v26 = vsel %vm252_vm3, %v250_v23, 0.0 }
 0x100   : > { %v254_v27 = vsel %vm252_vm3, %v251_v25, 0.0 }
 0x101   : > { %v255_v28 = vadd.f32 %v254_v27, %v253_v26 }
 0x103   : > { %v256_v29 = vrot.slane %v255_v28, 4 }
 0x105   : > { %v257_v30 = vadd.f32 %v256_v29, %v255_v28 }
 0x107   : > { %v258_v31 = vrot.slane %v257_v30, 2 }
 0x109   : > { %v259_v32 = vadd.f32 %v258_v31, %v257_v30 }
 0x10b   : > { %v260_v33 = vrot.slane %v259_v32, 1 }
 0x10d   : > { %v261_v34 = vadd.f32 %v260_v33, %v259_v32 }
 0x10f   : > { %v263_v35 = vmul.f32 0.0625, %v261_v34 }
 0x111   : > { %265 = vst.msk [vmem:[%s162_s10] sm:$0x1] %vm264_vm4, %v263_v35 }
 0x112   : > { %415 = shalt.err (!%p412_p3)
}
 0x113   : > { %s416_s28 = scalar_lea.hbm %s556_s20, 16  ;;  %s420_s4 = scalar_lea.hbm %s601_s3, 32 }
 0x114   : > { %p417_p4 = scmp.ne.s32.totalorder %s556_s20, %s416_s28  ;;  %p421_p9 = scmp.lt.u32.totalorder %s556_s20, %s601_s3 }
 0x115   : > { %p422_p10 = scmp.lt.u32.totalorder %s420_s4, %s416_s28  ;;  %p424_p12 = scmp.lt.u32.totalorder %s416_s28, %s556_s20 }
 0x116   : > { %p418_p7 = pnand %p417_p4, %p527_p5 }
 0x117   : > { %p423_p11 = por %p422_p10, %p421_p9 }
 0x118   : > { %p419_p8 = pneg %p418_p7 }
 0x119   : > { %p425_p13 = por %p424_p12, %p423_p11 }
 0x11b   : > { %p426_p0 = pnand %p425_p13, %p419_p8 }
 0x11d   : > { %429 = shalt.err (!%p426_p0)
}
 0x11e   : > { %359 = dma.vmem_to_hbm [thread:$0]  (%p527_p5), %s558_s11, 16, %s556_s20, %s267_s24  }
 0x11f PF: > { %p365_p1 = scmp.ge.s32.totalorder %s464_s15, 2  ;;  %s291_s7 = sand.u32 1, %s452_s12  }
 0x120   : > { %s292_s8 = scalar_lea.sflag [#allocation3], %s291_s7 }
 0x121   : > { %p362_p2 = pnand %p365_p1, %p531_p6 }
 0x123   : > { %447 = dma.done.wait (!%p362_p2), %s292_s8, 16  }
 0x124   : > { %449 = vsyncadd (!%p362_p2), %s292_s8, 4294967280  ;;  %p13_p3 = scmp.ge.s32.totalorder %s514_s18, 4   ;;  %s604_s12 = smov %s456_s13 }
 0x125   : > { %s605_s13 = smov %s460_s14  ;;  %s606_s14 = smov %s525_s21 }
 0x126   : > { %s607_s15 = smov %s514_s18  ;;  %15 = sbr.rel (!%p13_p3) target bundleno = 3 (0x3), region = 67 }
 0x12d   :  { %296 = vsyncpa [#allocation3], 1 }
 0x12e   :  { %298 = vsyncpa [#allocation3 + $0x1], 1 }

// kernel: _lambda_.5
= control target key start
LH: loop header
LB: loop body
LE: loop exit
PB: predicated region body
PF: predicated region fallthrough
CT: control target
= control target key end

     0   :  { %s1630_s27 = smov 0   ;;  %s2210_s0 = inlined_call_operand.vmem [shape: f32[2,192,8], index: 0, kind: input, shape index: {}]   ;;  %s2211_s1 = inlined_call_operand.vmem [shape: f32[192,1], index: 1, kind: input, shape index: {}]   ;;  %s2212_s2 = inlined_call_operand.vmem [shape: bf16[8,16], index: 2, kind: input, shape index: {}]   ;;  %s2213_s3 = inlined_call_operand.vmem [shape: f32[1,16], index: 3, kind: input, shape index: {}]   ;;  %s2214_s4 = inlined_call_operand.vmem [shape: f32[9,16], index: 4, kind: input, shape index: {}]   ;;  %s2215_s5 = inlined_call_operand.vmem [shape: f32[1,16], index: 5, kind: input, shape index: {}]   ;;  %s2216_s6 = inlined_call_operand.vmem [shape: bf16[16,16], index: 6, kind: input, shape index: {}]   ;;  %s2217_s7 = inlined_call_operand.vmem [shape: f32[1,16], index: 7, kind: input, shape index: {}]   ;;  %s2218_s8 = inlined_call_operand.vmem [shape: f32[2,128,16], index: 8, kind: output, shape index: {}]  }
   0x1 LB: > { %s1449_s28 = sadd.s32 4294967295, %s1582_s27   ;;  %p1453_p0 = scmp.ge.s32.totalorder %s1582_s27, 1  ;;  %s1582_s27 = sphi %s1630_s27, %s18_s27  }
   0x2   : > { %p262_p1 = scmp.lt.s32.totalorder %s1582_s27, 3 }
   0x4   : > { %p263_p2 = pnand %p1453_p0, %p262_p1 }
   0x5   : > { %v343_v0 = vld [vmem:[%s2212_s2] sm:$0xf] (!%p263_p2)  ;;  %vm388_vm0 = vcmask (!%p263_p2), 1043456   ;;  %p296_p3 = scmp.lt.s32.totalorder (!%p263_p2), %s1449_s28, 1  ;;  %v642_v2 = vld [vmem:[%s2211_s1 + $0x8] sm:$0xff] (!%p263_p2)  ;;  %v644_v3 = vld [vmem:[%s2211_s1 + $0x18] sm:$0xff] (!%p263_p2) }
   0x6   : > { %266 = sbr.rel (%p263_p2) target bundleno = 575 (0x23f), region = 52  ;;  %1561 = vmatprep.subr.msk.bf16.mxu0 (!%p263_p2), %vm388_vm0, %v343_v0  ;;  %1562 = vmatprep.subr.msk.bf16.mxu1 (!%p263_p2), %vm388_vm0, %v343_v0  ;;  %v390_v1 = vsel (!%p263_p2), %vm388_vm0, %v343_v0, 0  ;;  %v1584_v4 = vmov (!%p263_p2), 0   ;;  %v643_v5 = vld [vmem:[%s2211_s1 + $0x10] sm:$0xff] (!%p263_p2)  ;;  %v645_v6 = vld [vmem:[%s2211_s1 + $0x20] sm:$0xff] (!%p263_p2)  ;;  %vm351_vm1 = vcmask (!%p263_p2), 64512  }
   0x7   : > { %1516 = vmatpush3.bf16.msra.mxu0 (!%p263_p2), %v390_v1  ;;  %1560 = vmatpush3.bf16.msra.mxu1 (!%p263_p2), %v390_v1  ;;  %v646_v10 = vld [vmem:[%s2211_s1 + $0x28] sm:$0xff] (!%p263_p2)  ;;  %v647_v22 = vld [vmem:[%s2211_s1 + $0x30] sm:$0xff] (!%p263_p2)  ;;  %v648_v28 = vld [vmem:[%s2211_s1 + $0x38] sm:$0xff] (!%p263_p2)  ;;  %vm809_vm2 = vcmask (!%p263_p2), 130048  }
   0x8   : > { %1573 = vset.pattern.permute.xlu0 (!%p263_p2), %v1584_v4  ;;  %1574 = vset.pattern.permute.xlu1 (!%p263_p2), %v1584_v4  ;;  %v649_v29 = vld [vmem:[%s2211_s1 + $0x40] sm:$0xff] (!%p263_p2)  ;;  %v650_v32 = vld [vmem:[%s2211_s1 + $0x48] sm:$0xff] (!%p263_p2)  ;;  %v651_v33 = vld [vmem:[%s2211_s1 + $0x50] sm:$0xff] (!%p263_p2) }
   0x9   : > { %672 = vperm.xlu0 (!%p263_p2), %1573, %v642_v2   ;;  %682 = vperm.xlu1 (!%p263_p2), %1574, %v644_v3   ;;  %v652_v38 = vld [vmem:[%s2211_s1 + $0x58] sm:$0xff] (!%p263_p2)  ;;  %v653_v39 = vld [vmem:[%s2211_s1 + $0x60] sm:$0xff] (!%p263_p2)  ;;  %v654_v42 = vld [vmem:[%s2211_s1 + $0x68] sm:$0xff] (!%p263_p2) }
   0xa   : > { %v655_v43 = vld [vmem:[%s2211_s1 + $0x70] sm:$0xff] (!%p263_p2)  ;;  %v656_v48 = vld [vmem:[%s2211_s1 + $0x78] sm:$0xff] (!%p263_p2)  ;;  %v657_v49 = vld [vmem:[%s2211_s1 + $0x80] sm:$0xff] (!%p263_p2) }
   0xb   : > { %v658_v52 = vld [vmem:[%s2211_s1 + $0x88] sm:$0xff] (!%p263_p2)  ;;  %v659_v53 = vld [vmem:[%s2211_s1 + $0x90] sm:$0xff] (!%p263_p2)  ;;  %v660_v56 = vld [vmem:[%s2211_s1 + $0x98] sm:$0xff] (!%p263_p2) }
   0xc   : > { %v661_v57 = vld [vmem:[%s2211_s1 + $0xa0] sm:$0xff] (!%p263_p2)  ;;  %v662_v59 = vld [vmem:[%s2211_s1 + $0xa8] sm:$0xff] (!%p263_p2)  ;;  %v663_v60 = vld [vmem:[%s2211_s1 + $0xb0] sm:$0xff] (!%p263_p2) }
   0xd   : > { %s2220_s28 = smov (!%p296_p3, %s1449_s28), 1  ;;  %677 = vperm.xlu0 %1573, %v643_v5   ;;  %687 = vperm.xlu1 %1574, %v645_v6   ;;  %v641_v61 = vld [vmem:[%s2211_s1] sm:$0xff]  ;;  %v664_v62 = vld [vmem:[%s2211_s1 + $0xb8] sm:$0xff] }
   0xe   : > { %s1563_s13 = smul.u32 192, %s2220_s28  ;;  %v1575_v63 = vld [vmem:[%s2216_s6] sm:$0xff]   ;;  %s1492_s26 = sshll.u32 %s2220_s28, 7 }
   0xf   : > { %1541 = vmatprep.subr.bf16.mxu1 %v1575_v63  ;;  %s2173_s11 = scalar_lea.vmem %s2218_s8, %s1492_s26 }
  0x10   : > { %s1659_s20 = scalar_lea.vmem %s2210_s0, %s1563_s13 }
  0x11   : > { %v307_v7 = vld [vmem:[%s1659_s20] sm:$0xff]  ;;  %v308_v8 = vld [vmem:[%s1659_s20 + $0x8] sm:$0xff]  ;;  %v309_v13 = vld [vmem:[%s1659_s20 + $0x10] sm:$0xff]  ;;  %692 = vperm.xlu0 %1573, %v646_v10   ;;  %697 = vperm.xlu1 %1574, %v647_v22  }
  0x12   : > { %v327_v9 = vld [vmem:[%s1659_s20 + $0xa0] sm:$0xff]  ;;  %v331_v11 = vpack.c.bf16 %v308_v8, %v307_v7  ;;  %v328_v12 = vld [vmem:[%s1659_s20 + $0xa8] sm:$0xff]  ;;  %v310_v14 = vld [vmem:[%s1659_s20 + $0x18] sm:$0xff] }
  0x13   : > { %v341_v15 = vpack.c.bf16 %v328_v12, %v327_v9  ;;  %v332_v16 = vpack.c.bf16 %v310_v14, %v309_v13  ;;  %v329_v17 = vld [vmem:[%s1659_s20 + $0xb0] sm:$0xff]  ;;  %v330_v18 = vld [vmem:[%s1659_s20 + $0xb8] sm:$0xff]  ;;  %v311_v19 = vld [vmem:[%s1659_s20 + $0x20] sm:$0xff] }
  0x14   : > { %1517 = vmatprep.mubr.msk.bf16.mxu0 %vm351_vm1, %v331_v11  ;;  %v342_v20 = vpack.c.bf16 %v330_v18, %v329_v17  ;;  %v312_v21 = vld [vmem:[%s1659_s20 + $0x28] sm:$0xff]  ;;  %v313_v24 = vld [vmem:[%s1659_s20 + $0x30] sm:$0xff]  ;;  %v314_v25 = vld [vmem:[%s1659_s20 + $0x38] sm:$0xff] }
  0x15   : > { %1537 = vmatprep.mubr.msk.bf16.mxu1 %vm351_vm1, %v341_v15  ;;  %1518 = vmatmul.mubr.msk.bf16.vlgmr.msra.gmra.mrb[0].mxu0 %vm351_vm1, %v332_v16  ;;  %v333_v23 = vpack.c.bf16 %v312_v21, %v311_v19  ;;  %v315_v26 = vld [vmem:[%s1659_s20 + $0x40] sm:$0xff]  ;;  %v316_v27 = vld [vmem:[%s1659_s20 + $0x48] sm:$0xff]  ;;  %v334_v30 = vpack.c.bf16 %v314_v25, %v313_v24  ;;  %v317_v34 = vld [vmem:[%s1659_s20 + $0x50] sm:$0xff] }
  0x16   : > { %1538 = vmatmul.mubr.msk.bf16.vlgmr.msra.gmra.mrb[0].mxu1 %vm351_vm1, %v342_v20  ;;  %v335_v31 = vpack.c.bf16 %v316_v27, %v315_v26  ;;  %702 = vperm.xlu0 %1573, %v648_v28   ;;  %v318_v35 = vld [vmem:[%s1659_s20 + $0x58] sm:$0xff]  ;;  %v319_v36 = vld [vmem:[%s1659_s20 + $0x60] sm:$0xff]  ;;  %v320_v37 = vld [vmem:[%s1659_s20 + $0x68] sm:$0xff] }
  0x17   : > { %1521 = vmatprep.mubr.msk.bf16.mxu0 %vm351_vm1, %v333_v23  ;;  %707 = vperm.xlu1 %1574, %v649_v29   ;;  %v336_v40 = vpack.c.bf16 %v318_v35, %v317_v34  ;;  %v337_v41 = vpack.c.bf16 %v320_v37, %v319_v36  ;;  %v321_v44 = vld [vmem:[%s1659_s20 + $0x70] sm:$0xff]  ;;  %v322_v45 = vld [vmem:[%s1659_s20 + $0x78] sm:$0xff]  ;;  %v323_v46 = vld [vmem:[%s1659_s20 + $0x80] sm:$0xff] }
  0x18   : > { %v324_v47 = vld [vmem:[%s1659_s20 + $0x88] sm:$0xff]  ;;  %v338_v50 = vpack.c.bf16 %v322_v45, %v321_v44  ;;  %v325_v54 = vld [vmem:[%s1659_s20 + $0x90] sm:$0xff]  ;;  %v326_v55 = vld [vmem:[%s1659_s20 + $0x98] sm:$0xff]  ;;  %1542 = vmatpush3.bf16.msra.mxu1 %v1575_v63 }
  0x19   : > { %v339_v51 = vpack.c.bf16 %v324_v47, %v323_v46  ;;  %v340_v58 = vpack.c.bf16 %v326_v55, %v325_v54  ;;  %v1795_v16 = vld [vmem:[%s2213_s3] ss:$0 sm:$0xff] }
  0x1a   : > { %712 = vperm.xlu0 %1573, %v650_v32  }
  0x1b   : > { %717 = vperm.xlu1 %1574, %v651_v33  }
  0x1d   : > { %1522 = vmatmul.mubr.msk.bf16.gmra.mrb[4].mxu0 %vm351_vm1, %v334_v30 }
  0x1e   : > { %1525 = vmatprep.mubr.msk.bf16.mxu0 %vm351_vm1, %v335_v31  ;;  %722 = vperm.xlu0 %1573, %v652_v38  }
  0x1f   : > { %727 = vperm.xlu1 %1574, %v653_v39  }
  0x22   : > { %732 = vperm.xlu0 %1573, %v654_v42  }
  0x23   : > { %737 = vperm.xlu1 %1574, %v655_v43  }
  0x25   : > { %1526 = vmatmul.mubr.msk.bf16.gmra.mrb[8].mxu0 %vm351_vm1, %v336_v40 }
  0x26   : > { %1529 = vmatprep.mubr.msk.bf16.mxu0 %vm351_vm1, %v337_v41  ;;  %742 = vperm.xlu0 %1573, %v656_v48  }
  0x27   : > { %747 = vperm.xlu1 %1574, %v657_v49  }
  0x2a   : > { %752 = vperm.xlu0 %1573, %v658_v52  }
  0x2b   : > { %757 = vperm.xlu1 %1574, %v659_v53  }
  0x2d   : > { %1530 = vmatmul.mubr.msk.bf16.gmra.mrb[12].mxu0 %vm351_vm1, %v338_v50 }
  0x2e   : > { %1533 = vmatprep.mubr.msk.bf16.mxu0 %vm351_vm1, %v339_v51  ;;  %762 = vperm.xlu0 %1573, %v660_v56  }
  0x2f   : > { %767 = vperm.xlu1 %1574, %v661_v57  }
  0x32   : > { %772 = vperm.xlu0 %1573, %v662_v59  }
  0x33   : > { %777 = vperm.xlu1 %1574, %v663_v60  }
  0x35   : > { %1534 = vmatmul.mubr.msk.bf16.gmra.mrb[16].mxu0 %vm351_vm1, %v340_v58 }
  0x36   : > { %667 = vperm.xlu0 %1573, %v641_v61  }
  0x37   : > { %782 = vperm.xlu1 %1574, %v664_v62  }
  0x88   : > { %v1760_v0 = vpop.permute.xlu0 %672  ;;  %v1762_v1 = vpop.permute.xlu1 %682 }
  0x8c   : > { %v1764_v2 = vpop.permute.xlu0 %677  ;;  %v1766_v3 = vpop.permute.xlu1 %687 }
  0x90   : > { %v1768_v4 = vpop.permute.xlu0 %692  ;;  %v1770_v5 = vpop.permute.xlu1 %697 }
  0x95   : > { %v1772_v6 = vpop.permute.xlu0 %702 }
  0x96   : > { %v1774_v7 = vpop.permute.xlu1 %707 }
  0x99   : > { %v1776_v8 = vpop.permute.xlu0 %712 }
  0x9a   : > { %v1778_v9 = vpop.permute.xlu1 %717 }
  0x9d   : > { %v1780_v10 = vpop.permute.xlu0 %722 }
  0x9e   : > { %v1782_v11 = vpop.permute.xlu1 %727 }
  0xa1   : > { %v1784_v12 = vpop.permute.xlu0 %732 }
  0xa2   : > { %v1786_v13 = vpop.permute.xlu1 %737 }
  0xa5   : > { %v1788_v14 = vpop.permute.xlu0 %742 }
  0xa6   : > { %v1790_v15 = vpop.permute.xlu1 %747 }
  0xa9   : > { %v1797_v17 = vpop.permute.xlu0 %752 }
  0xaa   : > { %v1799_v19 = vpop.permute.xlu1 %757 }
  0xad   : > { %v1806_v34 = vpop.permute.xlu0 %762 }
  0xae   : > { %v768_v41 = vpop.permute.xlu1 %767 }
  0xb1   : > { %v773_v56 = vpop.permute.xlu0 %772 }
  0xe8   : > { %v1519_v18 = vpop.f32.mrb[0].mxu0 }
  0xe9   : > { %v435_v20 = vadd.f32 %v1519_v18, %v1795_v16  ;;  %v1539_v21 = vpop.f32.mrb[0].mxu1  ;;  %v426_v22 = vpop.f32.mrb[1].mxu0 }
  0xea   : > { %v515_v23 = vadd.f32 %v1539_v21, %v1795_v16  ;;  %v506_v24 = vpop.f32.mrb[1].mxu1  ;;  %v1520_v25 = vpop.f32.mrb[2].mxu0 }
  0xeb   : > { %v523_v26 = vadd.f32 3.0, %v435_v20  ;;  %v507_v27 = vadd.f32 %v1795_v16, %v506_v24  ;;  %v438_v28 = vadd.f32 %v1520_v25, %v1795_v16  ;;  %v1540_v29 = vpop.f32.mrb[2].mxu1  ;;  %v429_v30 = vpop.f32.mrb[3].mxu0 }
  0xec   : > { %v543_v31 = vadd.f32 3.0, %v515_v23  ;;  %v430_v32 = vadd.f32 %v1795_v16, %v429_v30  ;;  %v509_v33 = vpop.f32.mrb[3].mxu1  ;;  %v778_v22 = vpop.permute.xlu1 %777 }
  0xed   : > { %v547_v35 = vmax.f32 %v523_v26, 0.0  ;;  %v541_v36 = vadd.f32 3.0, %v507_v27  ;;  %v524_v37 = vadd.f32 3.0, %v438_v28  ;;  %v510_v38 = vadd.f32 %v1795_v16, %v509_v33 }
  0xee   : > { %v567_v39 = vmax.f32 %v543_v31, 0.0  ;;  %v522_v40 = vadd.f32 3.0, %v430_v32 }
  0xef   : > { %v571_v42 = vmin.f32 %v547_v35, 6.0  ;;  %v565_v43 = vmax.f32 %v541_v36, 0.0  ;;  %v548_v44 = vmax.f32 %v524_v37, 0.0  ;;  %v542_v45 = vadd.f32 3.0, %v510_v38 }
  0xf0   : > { %v591_v46 = vmin.f32 %v567_v39, 6.0  ;;  %v546_v47 = vmax.f32 %v522_v40, 0.0  ;;  %v1523_v48 = vpop.f32.mrb[4].mxu0 }
  0xf1   : > { %v595_v49 = vmul.f32 %v571_v42, %v435_v20  ;;  %v589_v50 = vmin.f32 %v565_v43, 6.0  ;;  %v572_v51 = vmin.f32 %v548_v44, 6.0  ;;  %v566_v52 = vmax.f32 %v542_v45, 0.0  ;;  %v442_v53 = vpop.f32.mrb[5].mxu0 }
  0xf2   : > { %v615_v54 = vmul.f32 %v591_v46, %v515_v23  ;;  %v570_v55 = vmin.f32 %v546_v47, 6.0  ;;  %v1524_v57 = vpop.f32.mrb[6].mxu0  ;;  %v451_v18 = vadd.f32 %v1523_v48, %v1795_v16  ;;  %v443_v21 = vadd.f32 %v1795_v16, %v442_v53  ;;  %v783_v46 = vpop.permute.xlu1 %782 }
  0xf3   : > { %v619_v58 = vmul.f32 0.16666667, %v595_v49  ;;  %v613_v59 = vmul.f32 %v589_v50, %v507_v27  ;;  %v596_v60 = vmul.f32 %v572_v51, %v438_v28  ;;  %v590_v61 = vmin.f32 %v566_v52, 6.0  ;;  %v445_v62 = vpop.f32.mrb[7].mxu0 }
  0xf4   : > { %v594_v63 = vmul.f32 %v570_v55, %v430_v32  ;;  %v527_v29 = vadd.f32 3.0, %v451_v18  ;;  %v525_v30 = vadd.f32 3.0, %v443_v21  ;;  %v454_v31 = vadd.f32 %v1524_v57, %v1795_v16 }
  0xf5   : > { %v787_v20 = vmul.f32 %v1764_v2, %v619_v58  ;;  %v620_v24 = vmul.f32 0.16666667, %v596_v60  ;;  %v614_v25 = vmul.f32 %v590_v61, %v510_v38  ;;  %v637_v26 = vmul.f32 0.16666667, %v613_v59  ;;  %v668_v38 = vpop.permute.xlu0 %667 }
  0xf6   : > { %v618_v23 = vmul.f32 0.16666667, %v594_v63  ;;  %v446_v33 = vadd.f32 %v1795_v16, %v445_v62  ;;  %v551_v36 = vmax.f32 %v527_v29, 0.0  ;;  %v549_v2 = vmax.f32 %v525_v30, 0.0 }
  0xf7   : > { %812 = vst.msk [vmem:[#allocation2 + $0x10] sm:$0xff] %vm809_vm2, %v787_v20  ;;  %v788_v27 = vmul.f32 %v1762_v1, %v620_v24  ;;  %v805_v28 = vmul.f32 %v768_v41, %v637_v26  ;;  %v638_v32 = vmul.f32 0.16666667, %v614_v25  ;;  %v528_v37 = vadd.f32 3.0, %v454_v31 }
  0xf8   : > { %v786_v35 = vmul.f32 %v1760_v0, %v618_v23  ;;  %v1527_v39 = vpop.f32.mrb[8].mxu0  ;;  %v526_v42 = vadd.f32 3.0, %v446_v33  ;;  %v639_v43 = vmul.f32 0.16666667, %v615_v54  ;;  %v575_v1 = vmin.f32 %v551_v36, 6.0 }
  0xf9   : > { %813 = vst.msk [vmem:[#allocation2 + $0x18] sm:$0xff] %vm809_vm2, %v788_v27  ;;  %830 = vst.msk [vmem:[#allocation2 + $0xa0] sm:$0xff] %vm809_vm2, %v805_v28  ;;  %v806_v40 = vmul.f32 %v773_v56, %v638_v32  ;;  %v458_v44 = vpop.f32.mrb[9].mxu0  ;;  %v573_v41 = vmin.f32 %v549_v2, 6.0  ;;  %v552_v45 = vmax.f32 %v528_v37, 0.0  ;;  %v467_v0 = vadd.f32 %v1527_v39, %v1795_v16 }
  0xfa   : > { %811 = vst.msk [vmem:[#allocation2 + $0x8] sm:$0xff] %vm809_vm2, %v786_v35  ;;  %v1528_v47 = vpop.f32.mrb[10].mxu0  ;;  %v550_v48 = vmax.f32 %v526_v42, 0.0  ;;  %v807_v49 = vmul.f32 %v778_v22, %v639_v43  ;;  %v599_v51 = vmul.f32 %v575_v1, %v451_v18  ;;  %v459_v56 = vadd.f32 %v1795_v16, %v458_v44 }
  0xfb   : > { %831 = vst.msk [vmem:[#allocation2 + $0xa8] sm:$0xff] %vm809_vm2, %v806_v40  ;;  %v461_v50 = vpop.f32.mrb[11].mxu0  ;;  %v597_v52 = vmul.f32 %v573_v41, %v443_v21  ;;  %v576_v53 = vmin.f32 %v552_v45, 6.0  ;;  %v531_v55 = vadd.f32 3.0, %v467_v0  ;;  %v470_v57 = vadd.f32 %v1528_v47, %v1795_v16 }
  0xfc   : > { %v574_v54 = vmin.f32 %v550_v48, 6.0  ;;  %832 = vst.msk [vmem:[#allocation2 + $0xb0] sm:$0xff] %vm809_vm2, %v807_v49  ;;  %v623_v58 = vmul.f32 0.16666667, %v599_v51  ;;  %v529_v63 = vadd.f32 3.0, %v459_v56  ;;  %v462_v22 = vadd.f32 %v1795_v16, %v461_v50 }
  0xfd   : > { %v621_v59 = vmul.f32 0.16666667, %v597_v52  ;;  %v600_v60 = vmul.f32 %v576_v53, %v454_v31  ;;  %v555_v61 = vmax.f32 %v531_v55, 0.0  ;;  %v532_v20 = vadd.f32 3.0, %v470_v57 }
  0xfe   : > { %v598_v62 = vmul.f32 %v574_v54, %v446_v33  ;;  %v791_v18 = vmul.f32 %v1770_v5, %v623_v58  ;;  %v553_v29 = vmax.f32 %v529_v63, 0.0  ;;  %v530_v27 = vadd.f32 3.0, %v462_v22 }
  0xff   : > { %v789_v21 = vmul.f32 %v1766_v3, %v621_v59  ;;  %v624_v24 = vmul.f32 0.16666667, %v600_v60  ;;  %v579_v25 = vmin.f32 %v555_v61, 6.0  ;;  %v556_v30 = vmax.f32 %v532_v20, 0.0 }
 0x100   : > { %v1531_v26 = vpop.f32.mrb[12].mxu0  ;;  %v622_v23 = vmul.f32 0.16666667, %v598_v62  ;;  %816 = vst.msk [vmem:[#allocation2 + $0x30] sm:$0xff] %vm809_vm2, %v791_v18  ;;  %v577_v36 = vmin.f32 %v553_v29, 6.0  ;;  %v554_v37 = vmax.f32 %v530_v27, 0.0 }
 0x101   : > { %v474_v28 = vpop.f32.mrb[13].mxu0  ;;  %814 = vst.msk [vmem:[#allocation2 + $0x20] sm:$0xff] %vm809_vm2, %v789_v21  ;;  %v792_v31 = vmul.f32 %v1772_v6, %v624_v24  ;;  %v603_v32 = vmul.f32 %v579_v25, %v467_v0  ;;  %v483_v33 = vadd.f32 %v1531_v26, %v1795_v16  ;;  %v580_v2 = vmin.f32 %v556_v30, 6.0 }
 0x102   : > { %v475_v5 = vadd.f32 %v1795_v16, %v474_v28  ;;  %v1532_v3 = vpop.f32.mrb[14].mxu0  ;;  %v790_v35 = vmul.f32 %v1768_v4, %v622_v23  ;;  %v601_v6 = vmul.f32 %v577_v36, %v459_v56  ;;  %v578_v1 = vmin.f32 %v554_v37, 6.0  ;;  %v834_v28 = vld [vmem:[#allocation2 + $0xf] sm:$0xff] }
 0x103   : > { %v477_v38 = vpop.f32.mrb[15].mxu0  ;;  %817 = vst.msk [vmem:[#allocation2 + $0x38] sm:$0xff] %vm809_vm2, %v792_v31  ;;  %v627_v39 = vmul.f32 0.16666667, %v603_v32  ;;  %v535_v40 = vadd.f32 3.0, %v483_v33  ;;  %v486_v43 = vadd.f32 %v1532_v3, %v1795_v16  ;;  %v604_v44 = vmul.f32 %v580_v2, %v470_v57  ;;  %v835_v3 = vld [vmem:[#allocation2 + $0x17] sm:$0xff] }
 0x104   : > { %v533_v42 = vadd.f32 3.0, %v475_v5  ;;  %815 = vst.msk [vmem:[#allocation2 + $0x28] sm:$0xff] %vm809_vm2, %v790_v35  ;;  %v478_v41 = vadd.f32 %v1795_v16, %v477_v38  ;;  %v625_v47 = vmul.f32 0.16666667, %v601_v6  ;;  %v602_v49 = vmul.f32 %v578_v1, %v462_v22 }
 0x105   : > { %v795_v4 = vmul.f32 %v1778_v9, %v627_v39  ;;  %v559_v45 = vmax.f32 %v535_v40, 0.0  ;;  %v536_v46 = vadd.f32 3.0, %v486_v43  ;;  %v628_v48 = vmul.f32 0.16666667, %v604_v44  ;;  %v871_v40 = vld [vmem:[#allocation2 + $0x10] sm:$0xff] }
 0x106   : > { %v557_v0 = vmax.f32 %v533_v42, 0.0  ;;  %v534_v50 = vadd.f32 3.0, %v478_v41  ;;  %v793_v54 = vmul.f32 %v1774_v7, %v625_v47  ;;  %v626_v57 = vmul.f32 0.16666667, %v602_v49  ;;  %v1868_v42 = vld [vmem:[%s2214_s4 + $0x1] ss:$0 sm:$0xff] }
 0x107   : > { %820 = vst.msk [vmem:[#allocation2 + $0x50] sm:$0xff] %vm809_vm2, %v795_v4  ;;  %v583_v51 = vmin.f32 %v559_v45, 6.0  ;;  %v560_v53 = vmax.f32 %v536_v46, 0.0  ;;  %v796_v56 = vmul.f32 %v1780_v10, %v628_v48 }
 0x108   : > { %v581_v52 = vmin.f32 %v557_v0, 6.0  ;;  %v1535_v55 = vpop.f32.mrb[16].mxu0  ;;  %v558_v58 = vmax.f32 %v534_v50, 0.0  ;;  %818 = vst.msk [vmem:[#allocation2 + $0x40] sm:$0xff] %vm809_vm2, %v793_v54  ;;  %v794_v20 = vmul.f32 %v1776_v8, %v626_v57  ;;  %v1853_v8 = vld [vmem:[%s2214_s4] ss:$0 sm:$0xff] }
 0x109   : > { %v490_v9 = vpop.f32.mrb[17].mxu0  ;;  %v607_v59 = vmul.f32 %v583_v51, %v483_v33  ;;  %v584_v61 = vmin.f32 %v560_v53, 6.0  ;;  %v499_v62 = vadd.f32 %v1535_v55, %v1795_v16  ;;  %821 = vst.msk [vmem:[#allocation2 + $0x58] sm:$0xff] %vm809_vm2, %v796_v56  ;;  %v1857_v35 = vld [vmem:[#allocation2 + $0x1f] sm:$0xff]  ;;  %v856_v0 = vmul.f32 %v1853_v8, %v835_v3 }
 0x10a   : > { %v605_v60 = vmul.f32 %v581_v52, %v475_v5  ;;  %v1536_v63 = vpop.f32.mrb[18].mxu0  ;;  %v582_v22 = vmin.f32 %v558_v58, 6.0  ;;  %v491_v7 = vadd.f32 %v1795_v16, %v490_v9  ;;  %819 = vst.msk [vmem:[#allocation2 + $0x48] sm:$0xff] %vm809_vm2, %v794_v20  ;;  %v1871_v4 = vld [vmem:[#allocation2 + $0x20] sm:$0xff]  ;;  %v857_v46 = vmul.f32 %v1853_v8, %v1857_v35 }
 0x10b   : > { %v502_v10 = vadd.f32 %v1536_v63, %v1795_v16  ;;  %v493_v18 = vpop.f32.mrb[19].mxu0  ;;  %v631_v21 = vmul.f32 0.16666667, %v607_v59  ;;  %v608_v25 = vmul.f32 %v584_v61, %v486_v43  ;;  %v539_v26 = vadd.f32 3.0, %v499_v62  ;;  %v1873_v45 = vld [vmem:[#allocation2 + $0x28] sm:$0xff]  ;;  %v1895_v59 = vld [vmem:[#allocation2 + $0x37] sm:$0xff] }
 0x10c   : > { %v629_v24 = vmul.f32 0.16666667, %v605_v60  ;;  %v606_v23 = vmul.f32 %v582_v22, %v478_v41  ;;  %v537_v29 = vadd.f32 3.0, %v491_v7  ;;  %v494_v27 = vadd.f32 %v1795_v16, %v493_v18  ;;  %v1859_v16 = vld [vmem:[#allocation2 + $0x27] sm:$0xff]  ;;  %v872_v41 = vld [vmem:[#allocation2 + $0x18] sm:$0xff]  ;;  %v1882_v50 = vld [vmem:[#allocation2 + $0x2f] sm:$0xff] }
 0x10d   : > { %v540_v30 = vadd.f32 3.0, %v502_v10  ;;  %v799_v31 = vmul.f32 %v1786_v13, %v631_v21  ;;  %v632_v33 = vmul.f32 0.16666667, %v608_v25  ;;  %v563_v5 = vmax.f32 %v539_v26, 0.0  ;;  %v1893_v56 = vld [vmem:[%s2214_s4 + $0x2] ss:$0 sm:$0xff] }
 0x10e   : > { %v797_v32 = vmul.f32 %v1782_v11, %v629_v24  ;;  %v630_v36 = vmul.f32 0.16666667, %v606_v23  ;;  %v561_v2 = vmax.f32 %v537_v29, 0.0  ;;  %v538_v38 = vadd.f32 3.0, %v494_v27  ;;  %v924_v60 = vld [vmem:[#allocation2 + $0x11] sm:$0xff]  ;;  %v925_v20 = vld [vmem:[#allocation2 + $0x19] sm:$0xff] }
 0x10f   : > { %v564_v37 = vmax.f32 %v540_v30, 0.0  ;;  %824 = vst.msk [vmem:[#allocation2 + $0x70] sm:$0xff] %vm809_vm2, %v799_v31  ;;  %v800_v39 = vmul.f32 %v1788_v14, %v632_v33  ;;  %v587_v13 = vmin.f32 %v563_v5, 6.0  ;;  %v855_v11 = vmul.f32 %v1853_v8, %v834_v28  ;;  %v926_v22 = vld [vmem:[#allocation2 + $0x21] sm:$0xff]  ;;  %v875_v24 = vld [vmem:[#allocation2 + $0x30] sm:$0xff]  ;;  %v876_v25 = vld [vmem:[#allocation2 + $0x38] sm:$0xff] }
 0x110   : > { %822 = vst.msk [vmem:[#allocation2 + $0x60] sm:$0xff] %vm809_vm2, %v797_v32  ;;  %v798_v43 = vmul.f32 %v1784_v12, %v630_v36  ;;  %v585_v6 = vmin.f32 %v561_v2, 6.0  ;;  %v562_v1 = vmax.f32 %v538_v38, 0.0  ;;  %v858_v47 = vmul.f32 %v1853_v8, %v1859_v16  ;;  %v1905_v23 = vld [vmem:[%s2214_s4 + $0x3] ss:$0 sm:$0xff] }
 0x111   : > { %v588_v44 = vmin.f32 %v564_v37, 6.0  ;;  %825 = vst.msk [vmem:[#allocation2 + $0x78] sm:$0xff] %vm809_vm2, %v800_v39  ;;  %v611_v14 = vmul.f32 %v587_v13, %v499_v62  ;;  %v892_v51 = vmul.f32 %v1868_v42, %v871_v40  ;;  %v893_v53 = vmul.f32 %v1868_v42, %v872_v41  ;;  %v1924_v2 = vld [vmem:[%s2214_s4 + $0x4] ss:$0 sm:$0xff] }
 0x112   : > { %823 = vst.msk [vmem:[#allocation2 + $0x68] sm:$0xff] %vm809_vm2, %v798_v43  ;;  %v609_v12 = vmul.f32 %v585_v6, %v491_v7  ;;  %v586_v49 = vmin.f32 %v562_v1, 6.0  ;;  %v894_v55 = vmul.f32 %v1868_v42, %v1871_v4  ;;  %v895_v54 = vmul.f32 %v1868_v42, %v1873_v45  ;;  %v927_v7 = vld [vmem:[#allocation2 + $0x29] sm:$0xff]  ;;  %v1937_v43 = vld [vmem:[%s2214_s4 + $0x5] ss:$0 sm:$0xff]  ;;  %v928_v6 = vld [vmem:[#allocation2 + $0x31] sm:$0xff] }
 0x113   : > { %v612_v48 = vmul.f32 %v588_v44, %v502_v10  ;;  %v635_v52 = vmul.f32 0.16666667, %v611_v14  ;;  %v859_v62 = vmul.f32 %v1853_v8, %v1882_v50  ;;  %v908_v63 = vadd.f32 %v892_v51, %v855_v11 }
 0x114   : > { %v633_v57 = vmul.f32 0.16666667, %v609_v12  ;;  %v610_v9 = vmul.f32 %v586_v49, %v494_v27  ;;  %v910_v26 = vadd.f32 %v894_v55, %v857_v46  ;;  %v909_v29 = vadd.f32 %v893_v53, %v856_v0  ;;  %v929_v27 = vld [vmem:[#allocation2 + $0x39] sm:$0xff] }
 0x115   : > { %v636_v58 = vmul.f32 0.16666667, %v612_v48  ;;  %v803_v61 = vmul.f32 %v1799_v19, %v635_v52  ;;  %v860_v19 = vmul.f32 %v1853_v8, %v1895_v59  ;;  %v911_v30 = vadd.f32 %v895_v54, %v858_v47 }
 0x116   : > { %v801_v10 = vmul.f32 %v1790_v15, %v633_v57  ;;  %v634_v21 = vmul.f32 0.16666667, %v610_v9  ;;  %v945_v15 = vmul.f32 %v1893_v56, %v924_v60  ;;  %v946_v28 = vmul.f32 %v1893_v56, %v925_v20  ;;  %v1966_v20 = vld [vmem:[%s2214_s4 + $0x7] ss:$0 sm:$0xff] }
 0x117   : > { %v804_v18 = vmul.f32 %v1806_v34, %v636_v58  ;;  %828 = vst.msk [vmem:[#allocation2 + $0x90] sm:$0xff] %vm809_vm2, %v803_v61  ;;  %v947_v31 = vmul.f32 %v1893_v56, %v926_v22  ;;  %v948_v32 = vmul.f32 %v1893_v56, %v927_v7  ;;  %v896_v33 = vmul.f32 %v1868_v42, %v875_v24 }
 0x118   : > { %826 = vst.msk [vmem:[#allocation2 + $0x80] sm:$0xff] %vm809_vm2, %v801_v10  ;;  %v802_v34 = vmul.f32 %v1797_v17, %v634_v21  ;;  %v897_v5 = vmul.f32 %v1868_v42, %v876_v25  ;;  %v961_v3 = vadd.f32 %v945_v15, %v908_v63  ;;  %v984_v36 = vmul.f32 %v1905_v23, %v1857_v35  ;;  %v1973_v21 = vld [vmem:[%s2214_s4 + $0x8] ss:$0 sm:$0xff] }
 0x119   : > { %829 = vst.msk [vmem:[#allocation2 + $0x98] sm:$0xff] %vm809_vm2, %v804_v18  ;;  %v962_v17 = vadd.f32 %v946_v28, %v909_v29  ;;  %v963_v37 = vadd.f32 %v947_v31, %v910_v26  ;;  %v964_v38 = vadd.f32 %v948_v32, %v911_v30  ;;  %v985_v39 = vmul.f32 %v1905_v23, %v1859_v16  ;;  %v877_v26 = vld [vmem:[#allocation2 + $0x40] sm:$0xff] }
 0x11a   : > { %827 = vst.msk [vmem:[#allocation2 + $0x88] sm:$0xff] %vm809_vm2, %v802_v34  ;;  %v912_v13 = vadd.f32 %v896_v33, %v859_v62  ;;  %v950_v11 = vmul.f32 %v1893_v56, %v929_v27  ;;  %v986_v40 = vmul.f32 %v1905_v23, %v1882_v50  ;;  %v987_v35 = vmul.f32 %v1905_v23, %v1895_v59  ;;  %v1985_v33 = vld [vmem:[#allocation2 + $0x57] sm:$0xff] }
 0x11b   : > { %v1000_v44 = vadd.f32 %v984_v36, %v961_v3  ;;  %v1001_v1 = vadd.f32 %v985_v39, %v962_v17  ;;  %v1023_v16 = vmul.f32 %v1924_v2, %v1871_v4  ;;  %v1024_v41 = vmul.f32 %v1924_v2, %v1873_v45  ;;  %v1951_v45 = vld [vmem:[%s2214_s4 + $0x6] ss:$0 sm:$0xff] }
 0x11c   : > { %v1002_v14 = vadd.f32 %v986_v40, %v963_v37  ;;  %v1003_v0 = vadd.f32 %v987_v35, %v964_v38  ;;  %v1025_v46 = vmul.f32 %v1924_v2, %v875_v24  ;;  %v1026_v47 = vmul.f32 %v1924_v2, %v876_v25  ;;  %v879_v37 = vld [vmem:[#allocation2 + $0x50] sm:$0xff]  ;;  %v880_v38 = vld [vmem:[#allocation2 + $0x58] sm:$0xff] }
 0x11d   : > { %v1039_v12 = vadd.f32 %v1023_v16, %v1000_v44  ;;  %v1040_v48 = vadd.f32 %v1024_v41, %v1001_v1  ;;  %v1062_v49 = vmul.f32 %v1937_v43, %v926_v22  ;;  %v1063_v51 = vmul.f32 %v1937_v43, %v927_v7  ;;  %v840_v22 = vld [vmem:[#allocation2 + $0x3f] sm:$0xff]  ;;  %v841_v7 = vld [vmem:[#allocation2 + $0x47] sm:$0xff] }
 0x11e   : > { %v913_v52 = vadd.f32 %v897_v5, %v860_v19  ;;  %v949_v53 = vmul.f32 %v1893_v56, %v928_v6  ;;  %v1041_v55 = vadd.f32 %v1025_v46, %v1002_v14  ;;  %v1042_v4 = vadd.f32 %v1026_v47, %v1003_v0  ;;  %v878_v19 = vld [vmem:[#allocation2 + $0x48] sm:$0xff]  ;;  %v1990_v5 = vld [vmem:[%s2215_s5] ss:$0 sm:$0xff] }
 0x11f   : > { %v1078_v54 = vadd.f32 %v1062_v49, %v1039_v12  ;;  %v1079_v57 = vadd.f32 %v1063_v51, %v1040_v48  ;;  %v1101_v58 = vmul.f32 %v1951_v45, %v1882_v50  ;;  %v1102_v9 = vmul.f32 %v1951_v45, %v1895_v59  ;;  %v931_v40 = vld [vmem:[#allocation2 + $0x49] sm:$0xff]  ;;  %v2006_v14 = vld [vmem:[#allocation2 + $0x59] sm:$0xff] }
 0x120   : > { %v1957_v60 = vadd.f32 %v949_v53, %v912_v13  ;;  %v1959_v61 = vadd.f32 %v950_v11, %v913_v52  ;;  %v1064_v62 = vmul.f32 %v1937_v43, %v928_v6  ;;  %v1065_v63 = vmul.f32 %v1937_v43, %v929_v27  ;;  %v930_v11 = vld [vmem:[#allocation2 + $0x41] sm:$0xff]  ;;  %v932_v53 = vld [vmem:[#allocation2 + $0x51] sm:$0xff] }
 0x121   : > { %v1117_v10 = vadd.f32 %v1101_v58, %v1078_v54  ;;  %v1118_v50 = vadd.f32 %v1102_v9, %v1079_v57  ;;  %v1140_v18 = vmul.f32 %v1966_v20, %v875_v24  ;;  %v1141_v59 = vmul.f32 %v1966_v20, %v876_v25  ;;  %v1983_v25 = vld [vmem:[#allocation2 + $0x4f] sm:$0xff] }
 0x122   : > { %v1080_v29 = vadd.f32 %v1064_v62, %v1041_v55  ;;  %v1081_v30 = vadd.f32 %v1065_v63, %v1042_v4  ;;  %v1179_v15 = vmul.f32 %v1973_v21, %v928_v6  ;;  %v1180_v34 = vmul.f32 %v1973_v21, %v929_v27 }
 0x123   : > { %v1156_v28 = vadd.f32 %v1140_v18, %v1117_v10  ;;  %v1157_v31 = vadd.f32 %v1141_v59, %v1118_v50  ;;  %v1978_v32 = vmul.f32 %v1853_v8, %v840_v22  ;;  %v1981_v24 = vmul.f32 %v1853_v8, %v841_v7 }
 0x124   : > { %v1993_v3 = vmul.f32 %v1868_v42, %v877_v26  ;;  %v1996_v27 = vmul.f32 %v1868_v42, %v878_v19  ;;  %v1103_v36 = vmul.f32 %v1951_v45, %v840_v22  ;;  %v1104_v17 = vmul.f32 %v1951_v45, %v841_v7 }
 0x125   : > { %v1195_v39 = vadd.f32 %v1179_v15, %v1156_v28  ;;  %v1196_v13 = vadd.f32 %v1180_v34, %v1157_v31  ;;  %v1142_v35 = vmul.f32 %v1966_v20, %v877_v26  ;;  %v1143_v6 = vmul.f32 %v1966_v20, %v878_v19 }
 0x126   : > { %v1119_v44 = vadd.f32 %v1103_v36, %v1080_v29  ;;  %v1120_v1 = vadd.f32 %v1104_v17, %v1081_v30  ;;  %v863_v16 = vmul.f32 %v1853_v8, %v1983_v25  ;;  %v864_v41 = vmul.f32 %v1853_v8, %v1985_v33 }
 0x127   : > { %v1218_v0 = vadd.f32 %v1990_v5, %v1195_v39  ;;  %v1219_v46 = vadd.f32 %v1990_v5, %v1196_v13  ;;  %v900_v47 = vmul.f32 %v1868_v42, %v879_v37  ;;  %v901_v12 = vmul.f32 %v1868_v42, %v880_v38  ;;  %v844_v13 = vld [vmem:[#allocation2 + $0x5f] sm:$0xff] }
 0x128   : > { %v1158_v48 = vadd.f32 %v1142_v35, %v1119_v44  ;;  %v1159_v49 = vadd.f32 %v1143_v6, %v1120_v1  ;;  %v1181_v51 = vmul.f32 %v1973_v21, %v930_v11  ;;  %v1182_v52 = vmul.f32 %v1973_v21, %v931_v40  ;;  %v881_v1 = vld [vmem:[#allocation2 + $0x60] sm:$0xff] }
 0x129   : > { %v1234_v55 = vpack.c.bf16 %v1219_v46, %v1218_v0  ;;  %v916_v4 = vadd.f32 %v900_v47, %v863_v16  ;;  %v954_v54 = vmul.f32 %v1893_v56, %v2006_v14  ;;  %v988_v57 = vmul.f32 %v1905_v23, %v840_v22  ;;  %v2040_v16 = vld [vmem:[#allocation2 + $0x68] sm:$0xff] }
 0x12a   : > { %v951_v58 = vmul.f32 %v1893_v56, %v930_v11  ;;  %v1197_v9 = vadd.f32 %v1181_v51, %v1158_v48  ;;  %v1198_v62 = vadd.f32 %v1182_v52, %v1159_v49  ;;  %v989_v63 = vmul.f32 %v1905_v23, %v841_v7  ;;  %v934_v46 = vld [vmem:[#allocation2 + $0x61] sm:$0xff] }
 0x12b   : > { %1543 = vmatprep.mubr.msk.bf16.mxu1 %vm809_vm2, %v1234_v55  ;;  %v952_v10 = vmul.f32 %v1893_v56, %v931_v40  ;;  %v917_v50 = vadd.f32 %v901_v12, %v864_v41  ;;  %v953_v18 = vmul.f32 %v1893_v56, %v932_v53  ;;  %v1004_v59 = vadd.f32 %v988_v57, %v1957_v60 }
 0x12c   : > { %v1220_v29 = vadd.f32 %v1990_v5, %v1197_v9  ;;  %v1221_v30 = vadd.f32 %v1990_v5, %v1198_v62  ;;  %v1005_v22 = vadd.f32 %v989_v63, %v1959_v61  ;;  %v1027_v15 = vmul.f32 %v1924_v2, %v877_v26  ;;  %v845_v61 = vld [vmem:[#allocation2 + $0x67] sm:$0xff] }
 0x12d   : > { %v2027_v34 = vadd.f32 %v953_v18, %v916_v4  ;;  %v2029_v7 = vadd.f32 %v954_v54, %v917_v50  ;;  %v990_v28 = vmul.f32 %v1905_v23, %v1983_v25  ;;  %v1028_v31 = vmul.f32 %v1924_v2, %v878_v19 }
 0x12e   : > { %v1235_v36 = vpack.c.bf16 %v1221_v30, %v1220_v29  ;;  %v991_v60 = vmul.f32 %v1905_v23, %v1985_v33  ;;  %v1043_v17 = vadd.f32 %v1027_v15, %v1004_v59  ;;  %v1066_v39 = vmul.f32 %v1937_v43, %v930_v11 }
 0x12f   : > { %v1029_v26 = vmul.f32 %v1924_v2, %v879_v37  ;;  %v1030_v35 = vmul.f32 %v1924_v2, %v880_v38  ;;  %v1044_v6 = vadd.f32 %v1028_v31, %v1005_v22  ;;  %v1067_v44 = vmul.f32 %v1937_v43, %v931_v40 }
 0x130   : > { %1544 = vmatmul.mubr.msk.bf16.vlgmr.msra.gmra.mrb[4].mxu1 %vm809_vm2, %v1235_v36  ;;  %v1082_v19 = vadd.f32 %v1066_v39, %v1043_v17  ;;  %v1105_v41 = vmul.f32 %v1951_v45, %v1983_v25  ;;  %v1106_v11 = vmul.f32 %v1951_v45, %v1985_v33  ;;  %v1144_v0 = vmul.f32 %v1966_v20, %v879_v37  ;;  %v846_v36 = vld [vmem:[#allocation2 + $0x6f] sm:$0xff] }
 0x131   : > { %v1083_v47 = vadd.f32 %v1067_v44, %v1044_v6  ;;  %v1145_v12 = vmul.f32 %v1966_v20, %v880_v38  ;;  %v865_v40 = vmul.f32 %v1853_v8, %v844_v13  ;;  %v866_v48 = vmul.f32 %v1853_v8, %v845_v61  ;;  %v935_v38 = vld [vmem:[#allocation2 + $0x69] sm:$0xff]  ;;  %v847_v6 = vld [vmem:[#allocation2 + $0x77] sm:$0xff] }
 0x132   : > { %v1121_v49 = vadd.f32 %v1105_v41, %v1082_v19  ;;  %v902_v51 = vmul.f32 %v1868_v42, %v881_v1  ;;  %v903_v52 = vmul.f32 %v1868_v42, %v2040_v16  ;;  %v914_v25 = vadd.f32 %v1993_v3, %v1978_v32  ;;  %v883_v44 = vld [vmem:[#allocation2 + $0x70] sm:$0xff]  ;;  %v884_v19 = vld [vmem:[#allocation2 + $0x78] sm:$0xff] }
 0x133   : > { %v1122_v33 = vadd.f32 %v1106_v11, %v1083_v47  ;;  %v1183_v37 = vmul.f32 %v1973_v21, %v932_v53  ;;  %v915_v55 = vadd.f32 %v1996_v27, %v1981_v24  ;;  %v955_v4 = vmul.f32 %v1893_v56, %v934_v46 }
 0x134   : > { %v1160_v54 = vadd.f32 %v1144_v0, %v1121_v49  ;;  %v918_v57 = vadd.f32 %v902_v51, %v865_v40  ;;  %v919_v9 = vadd.f32 %v903_v52, %v866_v48  ;;  %v967_v62 = vadd.f32 %v951_v58, %v914_v25  ;;  %v937_v48 = vld [vmem:[#allocation2 + $0x79] sm:$0xff]  ;;  %v936_v25 = vld [vmem:[#allocation2 + $0x71] sm:$0xff] }
 0x135   : > { %v1068_v63 = vmul.f32 %v1937_v43, %v932_v53  ;;  %v1161_v50 = vadd.f32 %v1145_v12, %v1122_v33  ;;  %v1184_v18 = vmul.f32 %v1973_v21, %v2006_v14  ;;  %v968_v32 = vadd.f32 %v952_v10, %v915_v55 }
 0x136   : > { %v1069_v3 = vmul.f32 %v1937_v43, %v2006_v14  ;;  %v1199_v59 = vadd.f32 %v1183_v37, %v1160_v54  ;;  %v956_v24 = vmul.f32 %v1893_v56, %v935_v38  ;;  %v1006_v27 = vadd.f32 %v990_v28, %v967_v62 }
 0x137   : > { %v1200_v29 = vadd.f32 %v1184_v18, %v1161_v50  ;;  %v992_v30 = vmul.f32 %v1905_v23, %v844_v13  ;;  %v993_v22 = vmul.f32 %v1905_v23, %v845_v61  ;;  %v1007_v58 = vadd.f32 %v991_v60, %v968_v32 }
 0x138   : > { %v2068_v15 = vadd.f32 %v955_v4, %v918_v57  ;;  %v2070_v53 = vadd.f32 %v956_v24, %v919_v9  ;;  %v1031_v31 = vmul.f32 %v1924_v2, %v881_v1  ;;  %v1045_v10 = vadd.f32 %v1029_v26, %v1006_v27  ;;  %v848_v24 = vld [vmem:[#allocation2 + $0x7f] sm:$0xff] }
 0x139   : > { %v1222_v14 = vadd.f32 %v1990_v5, %v1199_v59  ;;  %v1223_v17 = vadd.f32 %v1990_v5, %v1200_v29  ;;  %v1032_v28 = vmul.f32 %v1924_v2, %v2040_v16  ;;  %v1046_v39 = vadd.f32 %v1030_v35, %v1007_v58 }
 0x13a   : > { %v1070_v60 = vmul.f32 %v1937_v43, %v934_v46  ;;  %v1084_v41 = vadd.f32 %v1068_v63, %v1045_v10  ;;  %v1107_v11 = vmul.f32 %v1951_v45, %v844_v13  ;;  %v1108_v0 = vmul.f32 %v1951_v45, %v845_v61 }
 0x13b   : > { %v1236_v26 = vpack.c.bf16 %v1223_v17, %v1222_v14  ;;  %v1085_v47 = vadd.f32 %v1069_v3, %v1046_v39  ;;  %v1146_v12 = vmul.f32 %v1966_v20, %v881_v1  ;;  %v867_v40 = vmul.f32 %v1853_v8, %v846_v36  ;;  %v885_v17 = vld [vmem:[#allocation2 + $0x80] sm:$0xff]  ;;  %v886_v39 = vld [vmem:[#allocation2 + $0x88] sm:$0xff] }
 0x13c   : > { %v1123_v49 = vadd.f32 %v1107_v11, %v1084_v41  ;;  %v868_v35 = vmul.f32 %v1853_v8, %v847_v6  ;;  %v904_v51 = vmul.f32 %v1868_v42, %v883_v44  ;;  %v905_v52 = vmul.f32 %v1868_v42, %v884_v19 }
 0x13d   : > { %1547 = vmatprep.mubr.msk.bf16.mxu1 %vm809_vm2, %v1236_v26  ;;  %v1071_v13 = vmul.f32 %v1937_v43, %v935_v38  ;;  %v1124_v61 = vadd.f32 %v1108_v0, %v1085_v47  ;;  %v1147_v33 = vmul.f32 %v1966_v20, %v2040_v16  ;;  %v1185_v1 = vmul.f32 %v1973_v21, %v934_v46 }
 0x13e   : > { %v1162_v37 = vadd.f32 %v1146_v12, %v1123_v49  ;;  %v1186_v55 = vmul.f32 %v1973_v21, %v935_v38  ;;  %v920_v4 = vadd.f32 %v904_v51, %v867_v40  ;;  %v958_v54 = vmul.f32 %v1893_v56, %v937_v48  ;;  %v938_v12 = vld [vmem:[#allocation2 + $0x81] sm:$0xff] }
 0x13f   : > { %v1163_v57 = vadd.f32 %v1147_v33, %v1124_v61  ;;  %v957_v9 = vmul.f32 %v1893_v56, %v936_v25  ;;  %v1008_v62 = vadd.f32 %v992_v30, %v2027_v34  ;;  %v1009_v63 = vadd.f32 %v993_v22, %v2029_v7  ;;  %v849_v7 = vld [vmem:[#allocation2 + $0x87] sm:$0xff] }
 0x140   : > { %v1201_v50 = vadd.f32 %v1185_v1, %v1162_v37  ;;  %v921_v18 = vadd.f32 %v905_v52, %v868_v35  ;;  %v994_v32 = vmul.f32 %v1905_v23, %v846_v36  ;;  %v995_v16 = vmul.f32 %v1905_v23, %v847_v6 }
 0x141   : > { %v1202_v46 = vadd.f32 %v1186_v55, %v1163_v57  ;;  %v1033_v3 = vmul.f32 %v1924_v2, %v883_v44  ;;  %v1047_v38 = vadd.f32 %v1031_v31, %v1008_v62  ;;  %v1048_v59 = vadd.f32 %v1032_v28, %v1009_v63 }
 0x142   : > { %v1224_v27 = vadd.f32 %v1990_v5, %v1201_v50  ;;  %v2099_v29 = vadd.f32 %v957_v9, %v920_v4  ;;  %v2101_v58 = vadd.f32 %v958_v54, %v921_v18  ;;  %v1109_v34 = vmul.f32 %v1951_v45, %v846_v36 }
 0x143   : > { %v1225_v30 = vadd.f32 %v1990_v5, %v1202_v46  ;;  %v1086_v22 = vadd.f32 %v1070_v60, %v1047_v38  ;;  %v1087_v10 = vadd.f32 %v1071_v13, %v1048_v59  ;;  %v1110_v14 = vmul.f32 %v1951_v45, %v847_v6  ;;  %v939_v60 = vld [vmem:[#allocation2 + $0x89] sm:$0xff] }
 0x144   : > { %v1034_v31 = vmul.f32 %v1924_v2, %v884_v19  ;;  %v1148_v28 = vmul.f32 %v1966_v20, %v883_v44  ;;  %v1149_v41 = vmul.f32 %v1966_v20, %v884_v19  ;;  %v869_v11 = vmul.f32 %v1853_v8, %v848_v24 }
 0x145   : > { %v1237_v0 = vpack.c.bf16 %v1225_v30, %v1224_v27  ;;  %v1125_v26 = vadd.f32 %v1109_v34, %v1086_v22  ;;  %v1126_v36 = vadd.f32 %v1110_v14, %v1087_v10  ;;  %v870_v47 = vmul.f32 %v1853_v8, %v849_v7  ;;  %v978_v30 = vld [vmem:[#allocation2 + $0x97] sm:$0xff] }
 0x146   : > { %v1072_v40 = vmul.f32 %v1937_v43, %v936_v25  ;;  %v1073_v6 = vmul.f32 %v1937_v43, %v937_v48  ;;  %v906_v49 = vmul.f32 %v1868_v42, %v885_v17  ;;  %v907_v35 = vmul.f32 %v1868_v42, %v886_v39  ;;  %v1016_v22 = vld [vmem:[#allocation2 + $0x90] sm:$0xff] }
 0x147   : > { %1548 = vmatmul.mubr.msk.bf16.gmra.mrb[8].mxu1 %vm809_vm2, %v1237_v0  ;;  %v1164_v44 = vadd.f32 %v1148_v28, %v1125_v26  ;;  %v1165_v19 = vadd.f32 %v1149_v41, %v1126_v36  ;;  %v1187_v51 = vmul.f32 %v1973_v21, %v936_v25  ;;  %v1188_v52 = vmul.f32 %v1973_v21, %v937_v48  ;;  %v1055_v28 = vld [vmem:[#allocation2 + $0x91] sm:$0xff] }
 0x148   : > { %v959_v8 = vmul.f32 %v1893_v56, %v938_v12  ;;  %v960_v13 = vmul.f32 %v1893_v56, %v939_v60  ;;  %v1010_v61 = vadd.f32 %v994_v32, %v2068_v15  ;;  %v1011_v33 = vadd.f32 %v995_v16, %v2070_v53 }
 0x149   : > { %v1203_v1 = vadd.f32 %v1187_v51, %v1164_v44  ;;  %v1204_v37 = vadd.f32 %v1188_v52, %v1165_v19  ;;  %v922_v55 = vadd.f32 %v906_v49, %v869_v11  ;;  %v923_v42 = vadd.f32 %v907_v35, %v870_v47 }
 0x14a   : > { %v996_v4 = vmul.f32 %v1905_v23, %v848_v24  ;;  %v997_v54 = vmul.f32 %v1905_v23, %v849_v7  ;;  %v1049_v57 = vadd.f32 %v1033_v3, %v1010_v61  ;;  %v1050_v25 = vadd.f32 %v1034_v31, %v1011_v33  ;;  %v977_v3 = vld [vmem:[#allocation2 + $0x8f] sm:$0xff]  ;;  %v1017_v31 = vld [vmem:[#allocation2 + $0x98] sm:$0xff] }
 0x14b   : > { %v1226_v48 = vadd.f32 %v1990_v5, %v1203_v1  ;;  %v1227_v9 = vadd.f32 %v1990_v5, %v1204_v37  ;;  %v1035_v56 = vmul.f32 %v1924_v2, %v885_v17  ;;  %v1036_v15 = vmul.f32 %v1924_v2, %v886_v39  ;;  %v1094_v33 = vld [vmem:[#allocation2 + $0x9f] sm:$0xff] }
 0x14c   : > { %v1088_v62 = vadd.f32 %v1072_v40, %v1049_v57  ;;  %v1089_v53 = vadd.f32 %v1073_v6, %v1050_v25  ;;  %v1111_v63 = vmul.f32 %v1951_v45, %v848_v24  ;;  %v1112_v50 = vmul.f32 %v1951_v45, %v849_v7  ;;  %v1056_v6 = vld [vmem:[#allocation2 + $0x99] sm:$0xff] }
 0x14d   : > { %v1238_v18 = vpack.c.bf16 %v1227_v9, %v1226_v48  ;;  %v975_v32 = vadd.f32 %v959_v8, %v922_v55  ;;  %v976_v16 = vadd.f32 %v960_v13, %v923_v42  ;;  %v1074_v46 = vmul.f32 %v1937_v43, %v938_v12  ;;  %v1133_v9 = vld [vmem:[#allocation2 + $0xa0] sm:$0xff] }
 0x14e   : > { %v1127_v38 = vadd.f32 %v1111_v63, %v1088_v62  ;;  %v1128_v59 = vadd.f32 %v1112_v50, %v1089_v53  ;;  %v1150_v27 = vmul.f32 %v1966_v20, %v885_v17  ;;  %v1151_v34 = vmul.f32 %v1966_v20, %v886_v39  ;;  %v1134_v62 = vld [vmem:[#allocation2 + $0xa8] sm:$0xff] }
 0x14f   : > { %1551 = vmatprep.mubr.msk.bf16.mxu1 %vm809_vm2, %v1238_v18  ;;  %v1075_v24 = vmul.f32 %v1937_v43, %v939_v60  ;;  %v1189_v7 = vmul.f32 %v1973_v21, %v938_v12  ;;  %v1012_v10 = vadd.f32 %v996_v4, %v2099_v29  ;;  %v1013_v14 = vadd.f32 %v997_v54, %v2101_v58  ;;  %v1095_v4 = vld [vmem:[#allocation2 + $0xa7] sm:$0xff] }
 0x150   : > { %v1166_v41 = vadd.f32 %v1150_v27, %v1127_v38  ;;  %v1167_v11 = vadd.f32 %v1151_v34, %v1128_v59  ;;  %v1190_v17 = vmul.f32 %v1973_v21, %v939_v60  ;;  %v998_v39 = vmul.f32 %v1905_v23, %v977_v3  ;;  %v1172_v18 = vld [vmem:[#allocation2 + $0xa1] sm:$0xff] }
 0x151   : > { %v999_v0 = vmul.f32 %v1905_v23, %v978_v30  ;;  %v1037_v26 = vmul.f32 %v1924_v2, %v1016_v22  ;;  %v1051_v36 = vadd.f32 %v1035_v56, %v1012_v10  ;;  %v1052_v47 = vadd.f32 %v1036_v15, %v1013_v14 }
 0x152   : > { %v1205_v40 = vadd.f32 %v1189_v7, %v1166_v41  ;;  %v1206_v12 = vadd.f32 %v1190_v17, %v1167_v11  ;;  %v1038_v29 = vmul.f32 %v1924_v2, %v1017_v31  ;;  %v1076_v58 = vmul.f32 %v1937_v43, %v1055_v28 }
 0x153   : > { %v1090_v49 = vadd.f32 %v1074_v46, %v1051_v36  ;;  %v1091_v35 = vadd.f32 %v1075_v24, %v1052_v47  ;;  %v1113_v44 = vmul.f32 %v1951_v45, %v977_v3  ;;  %v1114_v60 = vmul.f32 %v1951_v45, %v978_v30  ;;  %v1173_v46 = vld [vmem:[#allocation2 + $0xa9] sm:$0xff] }
 0x154   : > { %v1228_v19 = vadd.f32 %v1990_v5, %v1205_v40  ;;  %v1229_v23 = vadd.f32 %v1990_v5, %v1206_v12  ;;  %v1152_v51 = vmul.f32 %v1966_v20, %v1016_v22  ;;  %v1014_v52 = vadd.f32 %v998_v39, %v975_v32 }
 0x155   : > { %v1129_v8 = vadd.f32 %v1113_v44, %v1090_v49  ;;  %v1130_v13 = vadd.f32 %v1114_v60, %v1091_v35  ;;  %v1153_v2 = vmul.f32 %v1966_v20, %v1017_v31  ;;  %v1015_v61 = vadd.f32 %v999_v0, %v976_v16 }
 0x156   : > { %v1239_v1 = vpack.c.bf16 %v1229_v23, %v1228_v19  ;;  %v1077_v37 = vmul.f32 %v1937_v43, %v1056_v6  ;;  %v1191_v55 = vmul.f32 %v1973_v21, %v1055_v28  ;;  %v1053_v42 = vadd.f32 %v1037_v26, %v1014_v52 }
 0x157   : > { %v1168_v54 = vadd.f32 %v1152_v51, %v1129_v8  ;;  %v1169_v57 = vadd.f32 %v1153_v2, %v1130_v13  ;;  %v1192_v25 = vmul.f32 %v1973_v21, %v1056_v6  ;;  %v1054_v48 = vadd.f32 %v1038_v29, %v1015_v61 }
 0x158   : > { %1552 = vmatmul.mubr.msk.bf16.gmra.mrb[12].mxu1 %vm809_vm2, %v1239_v1  ;;  %v1092_v56 = vadd.f32 %v1076_v58, %v1053_v42  ;;  %v1115_v15 = vmul.f32 %v1951_v45, %v1094_v33  ;;  %v1116_v43 = vmul.f32 %v1951_v45, %v1095_v4  ;;  %v1154_v16 = vmul.f32 %v1966_v20, %v1133_v9 }
 0x159   : > { %v1207_v53 = vadd.f32 %v1191_v55, %v1168_v54  ;;  %v1208_v63 = vadd.f32 %v1192_v25, %v1169_v57  ;;  %v1093_v50 = vadd.f32 %v1077_v37, %v1054_v48  ;;  %v1155_v27 = vmul.f32 %v1966_v20, %v1134_v62  ;;  %v1480_v20 = vld [vmem:[%s2217_s7] ss:$0 sm:$0xff] }
 0x15a   : > { %v1131_v32 = vadd.f32 %v1115_v15, %v1092_v56  ;;  %v1193_v30 = vmul.f32 %v1973_v21, %v1172_v18  ;;  %v1194_v45 = vmul.f32 %v1973_v21, %v1173_v46 }
 0x15b   : > { %v1230_v3 = vadd.f32 %v1990_v5, %v1207_v53  ;;  %v1231_v38 = vadd.f32 %v1990_v5, %v1208_v63  ;;  %v1132_v59 = vadd.f32 %v1116_v43, %v1093_v50 }
 0x15c   : > { %v1170_v34 = vadd.f32 %v1154_v16, %v1131_v32 }
 0x15d   : > { %v1240_v22 = vpack.c.bf16 %v1231_v38, %v1230_v3  ;;  %v1171_v24 = vadd.f32 %v1155_v27, %v1132_v59 }
 0x15e   : > { %v1209_v7 = vadd.f32 %v1193_v30, %v1170_v34 }
 0x15f   : > { %1555 = vmatprep.mubr.msk.bf16.mxu1 %vm809_vm2, %v1240_v22  ;;  %v1210_v10 = vadd.f32 %v1194_v45, %v1171_v24 }
 0x160   : > { %v1232_v14 = vadd.f32 %v1990_v5, %v1209_v7 }
 0x161   : > { %v1233_v31 = vadd.f32 %v1990_v5, %v1210_v10 }
 0x163   : > { %v1241_v28 = vpack.c.bf16 %v1233_v31, %v1232_v14 }
 0x165   : > { %1556 = vmatmul.mubr.msk.bf16.gmra.mrb[16].mxu1 %vm809_vm2, %v1241_v28 }
 0x203   : > { %v1545_v21 = vpop.f32.mrb[4].mxu1 }
 0x204   : > { %v1324_v41 = vadd.f32 %v1545_v21, %v1480_v20  ;;  %v1315_v5 = vpop.f32.mrb[5].mxu1 }
 0x205   : > { %v1316_v11 = vadd.f32 %v1480_v20, %v1315_v5  ;;  %v1546_v17 = vpop.f32.mrb[6].mxu1 }
 0x206   : > { %1380 = vst.msk [vmem:[%s2173_s11 + $0x10] sm:$0xff] %vm809_vm2, %v1324_v41  ;;  %v1327_v39 = vadd.f32 %v1546_v17, %v1480_v20  ;;  %v1318_v0 = vpop.f32.mrb[7].mxu1 }
 0x207   : > { %1378 = vst.msk [vmem:[%s2173_s11] sm:$0xff] %vm809_vm2, %v1316_v11  ;;  %v1319_v26 = vadd.f32 %v1480_v20, %v1318_v0 }
 0x208   : > { %1381 = vst.msk [vmem:[%s2173_s11 + $0x18] sm:$0xff] %vm809_vm2, %v1327_v39 }
 0x209   : > { %1379 = vst.msk [vmem:[%s2173_s11 + $0x8] sm:$0xff] %vm809_vm2, %v1319_v26 }
 0x21a   : > { %v1549_v36 = vpop.f32.mrb[8].mxu1 }
 0x21b   : > { %v1340_v47 = vadd.f32 %v1549_v36, %v1480_v20  ;;  %v1331_v40 = vpop.f32.mrb[9].mxu1 }
 0x21c   : > { %v1332_v12 = vadd.f32 %v1480_v20, %v1331_v40  ;;  %v1550_v29 = vpop.f32.mrb[10].mxu1 }
 0x21d   : > { %1384 = vst.msk [vmem:[%s2173_s11 + $0x30] sm:$0xff] %vm809_vm2, %v1340_v47  ;;  %v1343_v58 = vadd.f32 %v1550_v29, %v1480_v20  ;;  %v1334_v6 = vpop.f32.mrb[11].mxu1 }
 0x21e   : > { %1382 = vst.msk [vmem:[%s2173_s11 + $0x20] sm:$0xff] %vm809_vm2, %v1332_v12  ;;  %v1335_v49 = vadd.f32 %v1480_v20, %v1334_v6 }
 0x21f   : > { %1385 = vst.msk [vmem:[%s2173_s11 + $0x38] sm:$0xff] %vm809_vm2, %v1343_v58 }
 0x220   : > { %1383 = vst.msk [vmem:[%s2173_s11 + $0x28] sm:$0xff] %vm809_vm2, %v1335_v49 }
 0x22b   : > { %v1553_v35 = vpop.f32.mrb[12].mxu1 }
 0x22c   : > { %v1356_v44 = vadd.f32 %v1553_v35, %v1480_v20  ;;  %v1347_v60 = vpop.f32.mrb[13].mxu1 }
 0x22d   : > { %v1348_v19 = vadd.f32 %v1480_v20, %v1347_v60  ;;  %v1554_v23 = vpop.f32.mrb[14].mxu1 }
 0x22e   : > { %1388 = vst.msk [vmem:[%s2173_s11 + $0x50] sm:$0xff] %vm809_vm2, %v1356_v44  ;;  %v1359_v51 = vadd.f32 %v1554_v23, %v1480_v20  ;;  %v1350_v52 = vpop.f32.mrb[15].mxu1 }
 0x22f   : > { %1386 = vst.msk [vmem:[%s2173_s11 + $0x40] sm:$0xff] %vm809_vm2, %v1348_v19  ;;  %v1351_v8 = vadd.f32 %v1480_v20, %v1350_v52 }
 0x230   : > { %1389 = vst.msk [vmem:[%s2173_s11 + $0x58] sm:$0xff] %vm809_vm2, %v1359_v51 }
 0x231   : > { %1387 = vst.msk [vmem:[%s2173_s11 + $0x48] sm:$0xff] %vm809_vm2, %v1351_v8 }
 0x238   : > { %v1557_v13 = vpop.f32.mrb[16].mxu1 }
 0x239   : > { %v1372_v2 = vadd.f32 %v1557_v13, %v1480_v20  ;;  %v1363_v61 = vpop.f32.mrb[17].mxu1 }
 0x23a   : > { %v1364_v33 = vadd.f32 %v1480_v20, %v1363_v61  ;;  %v1558_v1 = vpop.f32.mrb[18].mxu1 }
 0x23b   : > { %1392 = vst.msk [vmem:[%s2173_s11 + $0x70] sm:$0xff] %vm809_vm2, %v1372_v2  ;;  %v1375_v37 = vadd.f32 %v1558_v1, %v1480_v20  ;;  %v1366_v55 = vpop.f32.mrb[19].mxu1 }
 0x23c   : > { %1390 = vst.msk [vmem:[%s2173_s11 + $0x60] sm:$0xff] %vm809_vm2, %v1364_v33  ;;  %v1367_v42 = vadd.f32 %v1480_v20, %v1366_v55 }
 0x23d   : > { %1393 = vst.msk [vmem:[%s2173_s11 + $0x78] sm:$0xff] %vm809_vm2, %v1375_v37 }
 0x23e   : > { %1391 = vst.msk [vmem:[%s2173_s11 + $0x68] sm:$0xff] %vm809_vm2, %v1367_v42 }
 0x23f PF: > { %s18_s27 = sadd.s32 1, %s1582_s27  }
 0x240   : > { %p15_p4 = scmp.ge.s32.totalorder %s18_s27, 4  }
 0x242   :  { %17 = sbr.rel (!%p15_p4) target bundleno = 1 (0x1), region = 82 }

// kernel: _lambda_.6
= control target key start
LH: loop header
LB: loop body
LE: loop exit
PB: predicated region body
PF: predicated region fallthrough
CT: control target
= control target key end

     0   :  { %s1647_s27 = smov 0   ;;  %s2230_s0 = inlined_call_operand.vmem [shape: f32[2,192,16], index: 0, kind: input, shape index: {}]   ;;  %s2231_s1 = inlined_call_operand.vmem [shape: f32[192,1], index: 1, kind: input, shape index: {}]   ;;  %s2232_s2 = inlined_call_operand.vmem [shape: bf16[16,32], index: 2, kind: input, shape index: {}]   ;;  %s2233_s3 = inlined_call_operand.vmem [shape: f32[1,32], index: 3, kind: input, shape index: {}]   ;;  %s2234_s4 = inlined_call_operand.vmem [shape: f32[9,32], index: 4, kind: input, shape index: {}]   ;;  %s2235_s5 = inlined_call_operand.vmem [shape: f32[1,32], index: 5, kind: input, shape index: {}]   ;;  %s2236_s6 = inlined_call_operand.vmem [shape: bf16[32,24], index: 6, kind: input, shape index: {}]   ;;  %s2237_s7 = inlined_call_operand.vmem [shape: f32[1,24], index: 7, kind: input, shape index: {}]   ;;  %s2238_s8 = inlined_call_operand.vmem [shape: f32[2,128,24], index: 8, kind: output, shape index: {}]  }
   0x1 LB: > { %s1461_s28 = sadd.s32 4294967295, %s1599_s27   ;;  %p1465_p0 = scmp.ge.s32.totalorder %s1599_s27, 1  ;;  %s1599_s27 = sphi %s1647_s27, %s18_s27  }
   0x2   : > { %p262_p1 = scmp.lt.s32.totalorder %s1599_s27, 3 }
   0x4   : > { %p263_p2 = pnand %p1465_p0, %p262_p1 }
   0x5   : > { %v1590_v0 = vld [vmem:[%s2232_s2] sm:$0xff] (!%p263_p2)   ;;  %p296_p3 = scmp.lt.s32.totalorder (!%p263_p2), %s1461_s28, 1  ;;  %v645_v1 = vld [vmem:[%s2231_s1 + $0x8] sm:$0xff] (!%p263_p2)  ;;  %v647_v2 = vld [vmem:[%s2231_s1 + $0x18] sm:$0xff] (!%p263_p2)  ;;  %v1601_v3 = vmov (!%p263_p2), 0   ;;  %vm358_vm0 = vcmask (!%p263_p2), 130048  }
   0x6   : > { %266 = sbr.rel (%p263_p2) target bundleno = 575 (0x23f), region = 52  ;;  %1530 = vmatprep.subr.bf16.mxu0 (!%p263_p2), %v1590_v0  ;;  %1576 = vmatprep.subr.bf16.mxu1 (!%p263_p2), %v1590_v0  ;;  %v646_v4 = vld [vmem:[%s2231_s1 + $0x10] sm:$0xff] (!%p263_p2)  ;;  %v648_v5 = vld [vmem:[%s2231_s1 + $0x20] sm:$0xff] (!%p263_p2)  ;;  %v649_v20 = vld [vmem:[%s2231_s1 + $0x28] sm:$0xff] (!%p263_p2)  ;;  %vm812_vm1 = vcmask (!%p263_p2), 261120   ;;  %vm1389_vm2 = vcmask (!%p263_p2), 195584  }
   0x7   : > { %1531 = vmatpush3.bf16.msra.mxu0 (!%p263_p2), %v1590_v0  ;;  %1577 = vmatpush3.bf16.msra.mxu1 (!%p263_p2), %v1590_v0  ;;  %v650_v22 = vld [vmem:[%s2231_s1 + $0x30] sm:$0xff] (!%p263_p2)  ;;  %v651_v27 = vld [vmem:[%s2231_s1 + $0x38] sm:$0xff] (!%p263_p2)  ;;  %v652_v29 = vld [vmem:[%s2231_s1 + $0x40] sm:$0xff] (!%p263_p2) }
   0x8   : > { %1588 = vset.pattern.permute.xlu0 (!%p263_p2), %v1601_v3  ;;  %1589 = vset.pattern.permute.xlu1 (!%p263_p2), %v1601_v3  ;;  %v653_v31 = vld [vmem:[%s2231_s1 + $0x48] sm:$0xff] (!%p263_p2)  ;;  %v654_v32 = vld [vmem:[%s2231_s1 + $0x50] sm:$0xff] (!%p263_p2)  ;;  %v655_v37 = vld [vmem:[%s2231_s1 + $0x58] sm:$0xff] (!%p263_p2) }
   0x9   : > { %675 = vperm.xlu0 (!%p263_p2), %1588, %v645_v1   ;;  %685 = vperm.xlu1 (!%p263_p2), %1589, %v647_v2   ;;  %v656_v39 = vld [vmem:[%s2231_s1 + $0x60] sm:$0xff] (!%p263_p2)  ;;  %v657_v41 = vld [vmem:[%s2231_s1 + $0x68] sm:$0xff] (!%p263_p2)  ;;  %v658_v42 = vld [vmem:[%s2231_s1 + $0x70] sm:$0xff] (!%p263_p2) }
   0xa   : > { %v659_v47 = vld [vmem:[%s2231_s1 + $0x78] sm:$0xff] (!%p263_p2)  ;;  %v660_v49 = vld [vmem:[%s2231_s1 + $0x80] sm:$0xff] (!%p263_p2)  ;;  %v661_v51 = vld [vmem:[%s2231_s1 + $0x88] sm:$0xff] (!%p263_p2) }
   0xb   : > { %v662_v52 = vld [vmem:[%s2231_s1 + $0x90] sm:$0xff] (!%p263_p2)  ;;  %v663_v55 = vld [vmem:[%s2231_s1 + $0x98] sm:$0xff] (!%p263_p2)  ;;  %v664_v57 = vld [vmem:[%s2231_s1 + $0xa0] sm:$0xff] (!%p263_p2) }
   0xc   : > { %v665_v58 = vld [vmem:[%s2231_s1 + $0xa8] sm:$0xff] (!%p263_p2)  ;;  %v666_v59 = vld [vmem:[%s2231_s1 + $0xb0] sm:$0xff] (!%p263_p2)  ;;  %v644_v60 = vld [vmem:[%s2231_s1] sm:$0xff] (!%p263_p2) }
   0xd   : > { %s2240_s28 = smov (!%p296_p3, %s1461_s28), 1  ;;  %680 = vperm.xlu0 %1588, %v646_v4   ;;  %690 = vperm.xlu1 %1589, %v648_v5   ;;  %v667_v61 = vld [vmem:[%s2231_s1 + $0xb8] sm:$0xff]  ;;  %v1591_v62 = vld [vmem:[%s2236_s6] sm:$0xff]   ;;  %v1592_v63 = vld [vmem:[%s2236_s6 + $0x8] sm:$0xff]  }
   0xe   : > { %s1578_s13 = smul.u32 192, %s2240_s28  ;;  %1556 = vmatprep.subr.bf16.mxu1 %v1591_v62  ;;  %s1506_s30 = sshll.u32 %s2240_s28, 7 }
  0x10   : > { %s1670_s16 = scalar_lea.vmem %s2230_s0, %s1578_s13  ;;  %s2193_s13 = scalar_lea.vmem %s2238_s8, %s1506_s30 }
  0x11   : > { %v307_v6 = vld [vmem:[%s1670_s16] sm:$0xff]  ;;  %v308_v7 = vld [vmem:[%s1670_s16 + $0x8] sm:$0xff]  ;;  %v309_v11 = vld [vmem:[%s1670_s16 + $0x10] sm:$0xff]  ;;  %695 = vperm.xlu0 %1588, %v649_v20   ;;  %700 = vperm.xlu1 %1589, %v650_v22  }
  0x12   : > { %v327_v8 = vld [vmem:[%s1670_s16 + $0xa0] sm:$0xff]  ;;  %v331_v9 = vpack.c.bf16 %v308_v7, %v307_v6  ;;  %v328_v10 = vld [vmem:[%s1670_s16 + $0xa8] sm:$0xff]  ;;  %v310_v12 = vld [vmem:[%s1670_s16 + $0x18] sm:$0xff] }
  0x13   : > { %v341_v13 = vpack.c.bf16 %v328_v10, %v327_v8  ;;  %v332_v14 = vpack.c.bf16 %v310_v12, %v309_v11  ;;  %v329_v15 = vld [vmem:[%s1670_s16 + $0xb0] sm:$0xff]  ;;  %v330_v16 = vld [vmem:[%s1670_s16 + $0xb8] sm:$0xff]  ;;  %v311_v17 = vld [vmem:[%s1670_s16 + $0x20] sm:$0xff] }
  0x14   : > { %1532 = vmatprep.mubr.msk.bf16.mxu0 %vm358_vm0, %v331_v9  ;;  %v342_v18 = vpack.c.bf16 %v330_v16, %v329_v15  ;;  %v312_v19 = vld [vmem:[%s1670_s16 + $0x28] sm:$0xff]  ;;  %v313_v23 = vld [vmem:[%s1670_s16 + $0x30] sm:$0xff]  ;;  %v314_v24 = vld [vmem:[%s1670_s16 + $0x38] sm:$0xff] }
  0x15   : > { %1552 = vmatprep.mubr.msk.bf16.mxu1 %vm358_vm0, %v341_v13  ;;  %1533 = vmatmul.mubr.msk.bf16.vlgmr.msra.gmra.mrb[0].mxu0 %vm358_vm0, %v332_v14  ;;  %v333_v21 = vpack.c.bf16 %v312_v19, %v311_v17  ;;  %v315_v25 = vld [vmem:[%s1670_s16 + $0x40] sm:$0xff]  ;;  %v316_v26 = vld [vmem:[%s1670_s16 + $0x48] sm:$0xff]  ;;  %v334_v28 = vpack.c.bf16 %v314_v24, %v313_v23  ;;  %v317_v33 = vld [vmem:[%s1670_s16 + $0x50] sm:$0xff] }
  0x16   : > { %1553 = vmatmul.mubr.msk.bf16.vlgmr.msra.gmra.mrb[0].mxu1 %vm358_vm0, %v342_v18  ;;  %v335_v30 = vpack.c.bf16 %v316_v26, %v315_v25  ;;  %705 = vperm.xlu0 %1588, %v651_v27   ;;  %v318_v34 = vld [vmem:[%s1670_s16 + $0x58] sm:$0xff]  ;;  %v319_v35 = vld [vmem:[%s1670_s16 + $0x60] sm:$0xff]  ;;  %v320_v36 = vld [vmem:[%s1670_s16 + $0x68] sm:$0xff] }
  0x17   : > { %1536 = vmatprep.mubr.msk.bf16.mxu0 %vm358_vm0, %v333_v21  ;;  %710 = vperm.xlu1 %1589, %v652_v29   ;;  %v336_v38 = vpack.c.bf16 %v318_v34, %v317_v33  ;;  %v337_v40 = vpack.c.bf16 %v320_v36, %v319_v35  ;;  %v321_v43 = vld [vmem:[%s1670_s16 + $0x70] sm:$0xff]  ;;  %v322_v44 = vld [vmem:[%s1670_s16 + $0x78] sm:$0xff]  ;;  %v323_v45 = vld [vmem:[%s1670_s16 + $0x80] sm:$0xff] }
  0x18   : > { %v324_v46 = vld [vmem:[%s1670_s16 + $0x88] sm:$0xff]  ;;  %v338_v48 = vpack.c.bf16 %v322_v44, %v321_v43  ;;  %v325_v53 = vld [vmem:[%s1670_s16 + $0x90] sm:$0xff]  ;;  %v326_v54 = vld [vmem:[%s1670_s16 + $0x98] sm:$0xff]  ;;  %1557 = vmatpush3.bf16.msra.mxu1 %v1591_v62 }
  0x19   : > { %v339_v50 = vpack.c.bf16 %v324_v46, %v323_v45  ;;  %v340_v56 = vpack.c.bf16 %v326_v54, %v325_v53  ;;  %1558 = vmatprep.subr.bf16.mxu1 %v1592_v63  ;;  %v1815_v16 = vld [vmem:[%s2233_s3] ss:$0 sm:$0xff] }
  0x1a   : > { %715 = vperm.xlu0 %1588, %v653_v31  }
  0x1b   : > { %720 = vperm.xlu1 %1589, %v654_v32  }
  0x1c   : > { %1559 = vmatpush3.bf16.msra.mxu1 %v1592_v63 }
  0x1d   : > { %1537 = vmatmul.mubr.msk.bf16.gmra.mrb[4].mxu0 %vm358_vm0, %v334_v28 }
  0x1e   : > { %1540 = vmatprep.mubr.msk.bf16.mxu0 %vm358_vm0, %v335_v30  ;;  %725 = vperm.xlu0 %1588, %v655_v37  }
  0x1f   : > { %730 = vperm.xlu1 %1589, %v656_v39  }
  0x22   : > { %735 = vperm.xlu0 %1588, %v657_v41  }
  0x23   : > { %740 = vperm.xlu1 %1589, %v658_v42  }
  0x25   : > { %1541 = vmatmul.mubr.msk.bf16.gmra.mrb[8].mxu0 %vm358_vm0, %v336_v38 }
  0x26   : > { %1544 = vmatprep.mubr.msk.bf16.mxu0 %vm358_vm0, %v337_v40  ;;  %745 = vperm.xlu0 %1588, %v659_v47  }
  0x27   : > { %750 = vperm.xlu1 %1589, %v660_v49  }
  0x2a   : > { %755 = vperm.xlu0 %1588, %v661_v51  }
  0x2b   : > { %760 = vperm.xlu1 %1589, %v662_v52  }
  0x2d   : > { %1545 = vmatmul.mubr.msk.bf16.gmra.mrb[12].mxu0 %vm358_vm0, %v338_v48 }
  0x2e   : > { %1548 = vmatprep.mubr.msk.bf16.mxu0 %vm358_vm0, %v339_v50  ;;  %765 = vperm.xlu0 %1588, %v663_v55  }
  0x2f   : > { %770 = vperm.xlu1 %1589, %v664_v57  }
  0x32   : > { %775 = vperm.xlu0 %1588, %v665_v58  }
  0x33   : > { %780 = vperm.xlu1 %1589, %v666_v59  }
  0x35   : > { %1549 = vmatmul.mubr.msk.bf16.gmra.mrb[16].mxu0 %vm358_vm0, %v340_v56 }
  0x36   : > { %670 = vperm.xlu0 %1588, %v644_v60  }
  0x37   : > { %785 = vperm.xlu1 %1589, %v667_v61  }
  0x88   : > { %v1780_v0 = vpop.permute.xlu0 %675  ;;  %v1782_v1 = vpop.permute.xlu1 %685 }
  0x8c   : > { %v1784_v2 = vpop.permute.xlu0 %680  ;;  %v1786_v3 = vpop.permute.xlu1 %690 }
  0x90   : > { %v1788_v4 = vpop.permute.xlu0 %695  ;;  %v1790_v5 = vpop.permute.xlu1 %700 }
  0x95   : > { %v1792_v6 = vpop.permute.xlu0 %705 }
  0x96   : > { %v1794_v7 = vpop.permute.xlu1 %710 }
  0x99   : > { %v1796_v8 = vpop.permute.xlu0 %715 }
  0x9a   : > { %v1798_v9 = vpop.permute.xlu1 %720 }
  0x9d   : > { %v1800_v10 = vpop.permute.xlu0 %725 }
  0x9e   : > { %v1802_v11 = vpop.permute.xlu1 %730 }
  0xa1   : > { %v1804_v12 = vpop.permute.xlu0 %735 }
  0xa2   : > { %v1806_v13 = vpop.permute.xlu1 %740 }
  0xa5   : > { %v1808_v14 = vpop.permute.xlu0 %745 }
  0xa6   : > { %v1810_v15 = vpop.permute.xlu1 %750 }
  0xa9   : > { %v1817_v17 = vpop.permute.xlu0 %755 }
  0xaa   : > { %v1819_v19 = vpop.permute.xlu1 %760 }
  0xad   : > { %v1826_v34 = vpop.permute.xlu0 %765 }
  0xae   : > { %v771_v41 = vpop.permute.xlu1 %770 }
  0xb1   : > { %v776_v56 = vpop.permute.xlu0 %775 }
  0xe8   : > { %v1534_v18 = vpop.f32.mrb[0].mxu0 }
  0xe9   : > { %v438_v20 = vadd.f32 %v1534_v18, %v1815_v16  ;;  %v1554_v21 = vpop.f32.mrb[0].mxu1  ;;  %v429_v22 = vpop.f32.mrb[1].mxu0 }
  0xea   : > { %v518_v23 = vadd.f32 %v1554_v21, %v1815_v16  ;;  %v509_v24 = vpop.f32.mrb[1].mxu1  ;;  %v1535_v25 = vpop.f32.mrb[2].mxu0 }
  0xeb   : > { %v526_v26 = vadd.f32 3.0, %v438_v20  ;;  %v510_v27 = vadd.f32 %v1815_v16, %v509_v24  ;;  %v441_v28 = vadd.f32 %v1535_v25, %v1815_v16  ;;  %v1555_v29 = vpop.f32.mrb[2].mxu1  ;;  %v432_v30 = vpop.f32.mrb[3].mxu0 }
  0xec   : > { %v546_v31 = vadd.f32 3.0, %v518_v23  ;;  %v433_v32 = vadd.f32 %v1815_v16, %v432_v30  ;;  %v512_v33 = vpop.f32.mrb[3].mxu1  ;;  %v781_v22 = vpop.permute.xlu1 %780 }
  0xed   : > { %v550_v35 = vmax.f32 %v526_v26, 0.0  ;;  %v544_v36 = vadd.f32 3.0, %v510_v27  ;;  %v527_v37 = vadd.f32 3.0, %v441_v28  ;;  %v513_v38 = vadd.f32 %v1815_v16, %v512_v33 }
  0xee   : > { %v570_v39 = vmax.f32 %v546_v31, 0.0  ;;  %v525_v40 = vadd.f32 3.0, %v433_v32 }
  0xef   : > { %v574_v42 = vmin.f32 %v550_v35, 6.0  ;;  %v568_v43 = vmax.f32 %v544_v36, 0.0  ;;  %v551_v44 = vmax.f32 %v527_v37, 0.0  ;;  %v545_v45 = vadd.f32 3.0, %v513_v38 }
  0xf0   : > { %v594_v46 = vmin.f32 %v570_v39, 6.0  ;;  %v549_v47 = vmax.f32 %v525_v40, 0.0  ;;  %v1538_v48 = vpop.f32.mrb[4].mxu0 }
  0xf1   : > { %v598_v49 = vmul.f32 %v574_v42, %v438_v20  ;;  %v592_v50 = vmin.f32 %v568_v43, 6.0  ;;  %v575_v51 = vmin.f32 %v551_v44, 6.0  ;;  %v569_v52 = vmax.f32 %v545_v45, 0.0  ;;  %v445_v53 = vpop.f32.mrb[5].mxu0 }
  0xf2   : > { %v618_v54 = vmul.f32 %v594_v46, %v518_v23  ;;  %v573_v55 = vmin.f32 %v549_v47, 6.0  ;;  %v1539_v57 = vpop.f32.mrb[6].mxu0  ;;  %v454_v18 = vadd.f32 %v1538_v48, %v1815_v16  ;;  %v446_v21 = vadd.f32 %v1815_v16, %v445_v53  ;;  %v786_v46 = vpop.permute.xlu1 %785 }
  0xf3   : > { %v622_v58 = vmul.f32 0.16666667, %v598_v49  ;;  %v616_v59 = vmul.f32 %v592_v50, %v510_v27  ;;  %v599_v60 = vmul.f32 %v575_v51, %v441_v28  ;;  %v593_v61 = vmin.f32 %v569_v52, 6.0  ;;  %v448_v62 = vpop.f32.mrb[7].mxu0 }
  0xf4   : > { %v597_v63 = vmul.f32 %v573_v55, %v433_v32  ;;  %v530_v29 = vadd.f32 3.0, %v454_v18  ;;  %v528_v30 = vadd.f32 3.0, %v446_v21  ;;  %v457_v31 = vadd.f32 %v1539_v57, %v1815_v16 }
  0xf5   : > { %v790_v20 = vmul.f32 %v1784_v2, %v622_v58  ;;  %v623_v24 = vmul.f32 0.16666667, %v599_v60  ;;  %v617_v25 = vmul.f32 %v593_v61, %v513_v38  ;;  %v640_v26 = vmul.f32 0.16666667, %v616_v59  ;;  %v671_v38 = vpop.permute.xlu0 %670 }
  0xf6   : > { %v621_v23 = vmul.f32 0.16666667, %v597_v63  ;;  %v449_v33 = vadd.f32 %v1815_v16, %v448_v62  ;;  %v554_v36 = vmax.f32 %v530_v29, 0.0  ;;  %v552_v2 = vmax.f32 %v528_v30, 0.0 }
  0xf7   : > { %815 = vst.msk [vmem:[#allocation2 + $0x10] sm:$0xff] %vm812_vm1, %v790_v20  ;;  %v791_v27 = vmul.f32 %v1782_v1, %v623_v24  ;;  %v808_v28 = vmul.f32 %v771_v41, %v640_v26  ;;  %v641_v32 = vmul.f32 0.16666667, %v617_v25  ;;  %v531_v37 = vadd.f32 3.0, %v457_v31 }
  0xf8   : > { %v789_v35 = vmul.f32 %v1780_v0, %v621_v23  ;;  %v1542_v39 = vpop.f32.mrb[8].mxu0  ;;  %v529_v42 = vadd.f32 3.0, %v449_v33  ;;  %v642_v43 = vmul.f32 0.16666667, %v618_v54  ;;  %v578_v1 = vmin.f32 %v554_v36, 6.0 }
  0xf9   : > { %816 = vst.msk [vmem:[#allocation2 + $0x18] sm:$0xff] %vm812_vm1, %v791_v27  ;;  %833 = vst.msk [vmem:[#allocation2 + $0xa0] sm:$0xff] %vm812_vm1, %v808_v28  ;;  %v809_v40 = vmul.f32 %v776_v56, %v641_v32  ;;  %v461_v44 = vpop.f32.mrb[9].mxu0  ;;  %v576_v41 = vmin.f32 %v552_v2, 6.0  ;;  %v555_v45 = vmax.f32 %v531_v37, 0.0  ;;  %v470_v0 = vadd.f32 %v1542_v39, %v1815_v16 }
  0xfa   : > { %814 = vst.msk [vmem:[#allocation2 + $0x8] sm:$0xff] %vm812_vm1, %v789_v35  ;;  %v1543_v47 = vpop.f32.mrb[10].mxu0  ;;  %v553_v48 = vmax.f32 %v529_v42, 0.0  ;;  %v810_v49 = vmul.f32 %v781_v22, %v642_v43  ;;  %v602_v51 = vmul.f32 %v578_v1, %v454_v18  ;;  %v462_v56 = vadd.f32 %v1815_v16, %v461_v44 }
  0xfb   : > { %834 = vst.msk [vmem:[#allocation2 + $0xa8] sm:$0xff] %vm812_vm1, %v809_v40  ;;  %v464_v50 = vpop.f32.mrb[11].mxu0  ;;  %v600_v52 = vmul.f32 %v576_v41, %v446_v21  ;;  %v579_v53 = vmin.f32 %v555_v45, 6.0  ;;  %v534_v55 = vadd.f32 3.0, %v470_v0  ;;  %v473_v57 = vadd.f32 %v1543_v47, %v1815_v16 }
  0xfc   : > { %v577_v54 = vmin.f32 %v553_v48, 6.0  ;;  %835 = vst.msk [vmem:[#allocation2 + $0xb0] sm:$0xff] %vm812_vm1, %v810_v49  ;;  %v626_v58 = vmul.f32 0.16666667, %v602_v51  ;;  %v532_v63 = vadd.f32 3.0, %v462_v56  ;;  %v465_v22 = vadd.f32 %v1815_v16, %v464_v50 }
  0xfd   : > { %v624_v59 = vmul.f32 0.16666667, %v600_v52  ;;  %v603_v60 = vmul.f32 %v579_v53, %v457_v31  ;;  %v558_v61 = vmax.f32 %v534_v55, 0.0  ;;  %v535_v20 = vadd.f32 3.0, %v473_v57 }
  0xfe   : > { %v601_v62 = vmul.f32 %v577_v54, %v449_v33  ;;  %v794_v18 = vmul.f32 %v1790_v5, %v626_v58  ;;  %v556_v29 = vmax.f32 %v532_v63, 0.0  ;;  %v533_v27 = vadd.f32 3.0, %v465_v22 }
  0xff   : > { %v792_v21 = vmul.f32 %v1786_v3, %v624_v59  ;;  %v627_v24 = vmul.f32 0.16666667, %v603_v60  ;;  %v582_v25 = vmin.f32 %v558_v61, 6.0  ;;  %v559_v30 = vmax.f32 %v535_v20, 0.0 }
 0x100   : > { %v1546_v26 = vpop.f32.mrb[12].mxu0  ;;  %v625_v23 = vmul.f32 0.16666667, %v601_v62  ;;  %819 = vst.msk [vmem:[#allocation2 + $0x30] sm:$0xff] %vm812_vm1, %v794_v18  ;;  %v580_v36 = vmin.f32 %v556_v29, 6.0  ;;  %v557_v37 = vmax.f32 %v533_v27, 0.0 }
 0x101   : > { %v477_v28 = vpop.f32.mrb[13].mxu0  ;;  %817 = vst.msk [vmem:[#allocation2 + $0x20] sm:$0xff] %vm812_vm1, %v792_v21  ;;  %v795_v31 = vmul.f32 %v1792_v6, %v627_v24  ;;  %v606_v32 = vmul.f32 %v582_v25, %v470_v0  ;;  %v486_v33 = vadd.f32 %v1546_v26, %v1815_v16  ;;  %v583_v2 = vmin.f32 %v559_v30, 6.0 }
 0x102   : > { %v478_v5 = vadd.f32 %v1815_v16, %v477_v28  ;;  %v1547_v3 = vpop.f32.mrb[14].mxu0  ;;  %v793_v35 = vmul.f32 %v1788_v4, %v625_v23  ;;  %v604_v6 = vmul.f32 %v580_v36, %v462_v56  ;;  %v581_v1 = vmin.f32 %v557_v37, 6.0  ;;  %v837_v28 = vld [vmem:[#allocation2 + $0xf] sm:$0xff] }
 0x103   : > { %v480_v38 = vpop.f32.mrb[15].mxu0  ;;  %820 = vst.msk [vmem:[#allocation2 + $0x38] sm:$0xff] %vm812_vm1, %v795_v31  ;;  %v630_v39 = vmul.f32 0.16666667, %v606_v32  ;;  %v538_v40 = vadd.f32 3.0, %v486_v33  ;;  %v489_v43 = vadd.f32 %v1547_v3, %v1815_v16  ;;  %v607_v44 = vmul.f32 %v583_v2, %v473_v57  ;;  %v838_v3 = vld [vmem:[#allocation2 + $0x17] sm:$0xff] }
 0x104   : > { %v536_v42 = vadd.f32 3.0, %v478_v5  ;;  %818 = vst.msk [vmem:[#allocation2 + $0x28] sm:$0xff] %vm812_vm1, %v793_v35  ;;  %v481_v41 = vadd.f32 %v1815_v16, %v480_v38  ;;  %v628_v47 = vmul.f32 0.16666667, %v604_v6  ;;  %v605_v49 = vmul.f32 %v581_v1, %v465_v22 }
 0x105   : > { %v798_v4 = vmul.f32 %v1798_v9, %v630_v39  ;;  %v562_v45 = vmax.f32 %v538_v40, 0.0  ;;  %v539_v46 = vadd.f32 3.0, %v489_v43  ;;  %v631_v48 = vmul.f32 0.16666667, %v607_v44  ;;  %v874_v40 = vld [vmem:[#allocation2 + $0x10] sm:$0xff] }
 0x106   : > { %v560_v0 = vmax.f32 %v536_v42, 0.0  ;;  %v537_v50 = vadd.f32 3.0, %v481_v41  ;;  %v796_v54 = vmul.f32 %v1794_v7, %v628_v47  ;;  %v629_v57 = vmul.f32 0.16666667, %v605_v49  ;;  %v1888_v42 = vld [vmem:[%s2234_s4 + $0x1] ss:$0 sm:$0xff] }
 0x107   : > { %823 = vst.msk [vmem:[#allocation2 + $0x50] sm:$0xff] %vm812_vm1, %v798_v4  ;;  %v586_v51 = vmin.f32 %v562_v45, 6.0  ;;  %v563_v53 = vmax.f32 %v539_v46, 0.0  ;;  %v799_v56 = vmul.f32 %v1800_v10, %v631_v48 }
 0x108   : > { %v584_v52 = vmin.f32 %v560_v0, 6.0  ;;  %v1550_v55 = vpop.f32.mrb[16].mxu0  ;;  %v561_v58 = vmax.f32 %v537_v50, 0.0  ;;  %821 = vst.msk [vmem:[#allocation2 + $0x40] sm:$0xff] %vm812_vm1, %v796_v54  ;;  %v797_v20 = vmul.f32 %v1796_v8, %v629_v57  ;;  %v1873_v8 = vld [vmem:[%s2234_s4] ss:$0 sm:$0xff] }
 0x109   : > { %v493_v9 = vpop.f32.mrb[17].mxu0  ;;  %v610_v59 = vmul.f32 %v586_v51, %v486_v33  ;;  %v587_v61 = vmin.f32 %v563_v53, 6.0  ;;  %v502_v62 = vadd.f32 %v1550_v55, %v1815_v16  ;;  %824 = vst.msk [vmem:[#allocation2 + $0x58] sm:$0xff] %vm812_vm1, %v799_v56  ;;  %v1877_v35 = vld [vmem:[#allocation2 + $0x1f] sm:$0xff]  ;;  %v859_v0 = vmul.f32 %v1873_v8, %v838_v3 }
 0x10a   : > { %v608_v60 = vmul.f32 %v584_v52, %v478_v5  ;;  %v1551_v63 = vpop.f32.mrb[18].mxu0  ;;  %v585_v22 = vmin.f32 %v561_v58, 6.0  ;;  %v494_v7 = vadd.f32 %v1815_v16, %v493_v9  ;;  %822 = vst.msk [vmem:[#allocation2 + $0x48] sm:$0xff] %vm812_vm1, %v797_v20  ;;  %v1891_v4 = vld [vmem:[#allocation2 + $0x20] sm:$0xff]  ;;  %v860_v46 = vmul.f32 %v1873_v8, %v1877_v35 }
 0x10b   : > { %v505_v10 = vadd.f32 %v1551_v63, %v1815_v16  ;;  %v496_v18 = vpop.f32.mrb[19].mxu0  ;;  %v634_v21 = vmul.f32 0.16666667, %v610_v59  ;;  %v611_v25 = vmul.f32 %v587_v61, %v489_v43  ;;  %v542_v26 = vadd.f32 3.0, %v502_v62  ;;  %v1893_v45 = vld [vmem:[#allocation2 + $0x28] sm:$0xff]  ;;  %v1915_v59 = vld [vmem:[#allocation2 + $0x37] sm:$0xff] }
 0x10c   : > { %v632_v24 = vmul.f32 0.16666667, %v608_v60  ;;  %v609_v23 = vmul.f32 %v585_v22, %v481_v41  ;;  %v540_v29 = vadd.f32 3.0, %v494_v7  ;;  %v497_v27 = vadd.f32 %v1815_v16, %v496_v18  ;;  %v1879_v16 = vld [vmem:[#allocation2 + $0x27] sm:$0xff]  ;;  %v875_v41 = vld [vmem:[#allocation2 + $0x18] sm:$0xff]  ;;  %v1902_v50 = vld [vmem:[#allocation2 + $0x2f] sm:$0xff] }
 0x10d   : > { %v543_v30 = vadd.f32 3.0, %v505_v10  ;;  %v802_v31 = vmul.f32 %v1806_v13, %v634_v21  ;;  %v635_v33 = vmul.f32 0.16666667, %v611_v25  ;;  %v566_v5 = vmax.f32 %v542_v26, 0.0  ;;  %v1913_v56 = vld [vmem:[%s2234_s4 + $0x2] ss:$0 sm:$0xff] }
 0x10e   : > { %v800_v32 = vmul.f32 %v1802_v11, %v632_v24  ;;  %v633_v36 = vmul.f32 0.16666667, %v609_v23  ;;  %v564_v2 = vmax.f32 %v540_v29, 0.0  ;;  %v541_v38 = vadd.f32 3.0, %v497_v27  ;;  %v927_v60 = vld [vmem:[#allocation2 + $0x11] sm:$0xff]  ;;  %v928_v20 = vld [vmem:[#allocation2 + $0x19] sm:$0xff] }
 0x10f   : > { %v567_v37 = vmax.f32 %v543_v30, 0.0  ;;  %827 = vst.msk [vmem:[#allocation2 + $0x70] sm:$0xff] %vm812_vm1, %v802_v31  ;;  %v803_v39 = vmul.f32 %v1808_v14, %v635_v33  ;;  %v590_v13 = vmin.f32 %v566_v5, 6.0  ;;  %v858_v11 = vmul.f32 %v1873_v8, %v837_v28  ;;  %v929_v22 = vld [vmem:[#allocation2 + $0x21] sm:$0xff]  ;;  %v878_v24 = vld [vmem:[#allocation2 + $0x30] sm:$0xff]  ;;  %v879_v25 = vld [vmem:[#allocation2 + $0x38] sm:$0xff] }
 0x110   : > { %825 = vst.msk [vmem:[#allocation2 + $0x60] sm:$0xff] %vm812_vm1, %v800_v32  ;;  %v801_v43 = vmul.f32 %v1804_v12, %v633_v36  ;;  %v588_v6 = vmin.f32 %v564_v2, 6.0  ;;  %v565_v1 = vmax.f32 %v541_v38, 0.0  ;;  %v861_v47 = vmul.f32 %v1873_v8, %v1879_v16  ;;  %v1925_v23 = vld [vmem:[%s2234_s4 + $0x3] ss:$0 sm:$0xff] }
 0x111   : > { %v591_v44 = vmin.f32 %v567_v37, 6.0  ;;  %828 = vst.msk [vmem:[#allocation2 + $0x78] sm:$0xff] %vm812_vm1, %v803_v39  ;;  %v614_v14 = vmul.f32 %v590_v13, %v502_v62  ;;  %v895_v51 = vmul.f32 %v1888_v42, %v874_v40  ;;  %v896_v53 = vmul.f32 %v1888_v42, %v875_v41  ;;  %v1944_v2 = vld [vmem:[%s2234_s4 + $0x4] ss:$0 sm:$0xff] }
 0x112   : > { %826 = vst.msk [vmem:[#allocation2 + $0x68] sm:$0xff] %vm812_vm1, %v801_v43  ;;  %v612_v12 = vmul.f32 %v588_v6, %v494_v7  ;;  %v589_v49 = vmin.f32 %v565_v1, 6.0  ;;  %v897_v55 = vmul.f32 %v1888_v42, %v1891_v4  ;;  %v898_v54 = vmul.f32 %v1888_v42, %v1893_v45  ;;  %v930_v7 = vld [vmem:[#allocation2 + $0x29] sm:$0xff]  ;;  %v1957_v43 = vld [vmem:[%s2234_s4 + $0x5] ss:$0 sm:$0xff]  ;;  %v931_v6 = vld [vmem:[#allocation2 + $0x31] sm:$0xff] }
 0x113   : > { %v615_v48 = vmul.f32 %v591_v44, %v505_v10  ;;  %v638_v52 = vmul.f32 0.16666667, %v614_v14  ;;  %v862_v62 = vmul.f32 %v1873_v8, %v1902_v50  ;;  %v911_v63 = vadd.f32 %v895_v51, %v858_v11 }
 0x114   : > { %v636_v57 = vmul.f32 0.16666667, %v612_v12  ;;  %v613_v9 = vmul.f32 %v589_v49, %v497_v27  ;;  %v913_v26 = vadd.f32 %v897_v55, %v860_v46  ;;  %v912_v29 = vadd.f32 %v896_v53, %v859_v0  ;;  %v932_v27 = vld [vmem:[#allocation2 + $0x39] sm:$0xff] }
 0x115   : > { %v639_v58 = vmul.f32 0.16666667, %v615_v48  ;;  %v806_v61 = vmul.f32 %v1819_v19, %v638_v52  ;;  %v863_v19 = vmul.f32 %v1873_v8, %v1915_v59  ;;  %v914_v30 = vadd.f32 %v898_v54, %v861_v47 }
 0x116   : > { %v804_v10 = vmul.f32 %v1810_v15, %v636_v57  ;;  %v637_v21 = vmul.f32 0.16666667, %v613_v9  ;;  %v948_v15 = vmul.f32 %v1913_v56, %v927_v60  ;;  %v949_v28 = vmul.f32 %v1913_v56, %v928_v20  ;;  %v1986_v20 = vld [vmem:[%s2234_s4 + $0x7] ss:$0 sm:$0xff] }
 0x117   : > { %v807_v18 = vmul.f32 %v1826_v34, %v639_v58  ;;  %831 = vst.msk [vmem:[#allocation2 + $0x90] sm:$0xff] %vm812_vm1, %v806_v61  ;;  %v950_v31 = vmul.f32 %v1913_v56, %v929_v22  ;;  %v951_v32 = vmul.f32 %v1913_v56, %v930_v7  ;;  %v899_v33 = vmul.f32 %v1888_v42, %v878_v24 }
 0x118   : > { %829 = vst.msk [vmem:[#allocation2 + $0x80] sm:$0xff] %vm812_vm1, %v804_v10  ;;  %v805_v34 = vmul.f32 %v1817_v17, %v637_v21  ;;  %v900_v5 = vmul.f32 %v1888_v42, %v879_v25  ;;  %v964_v3 = vadd.f32 %v948_v15, %v911_v63  ;;  %v987_v36 = vmul.f32 %v1925_v23, %v1877_v35  ;;  %v1993_v21 = vld [vmem:[%s2234_s4 + $0x8] ss:$0 sm:$0xff] }
 0x119   : > { %832 = vst.msk [vmem:[#allocation2 + $0x98] sm:$0xff] %vm812_vm1, %v807_v18  ;;  %v965_v17 = vadd.f32 %v949_v28, %v912_v29  ;;  %v966_v37 = vadd.f32 %v950_v31, %v913_v26  ;;  %v967_v38 = vadd.f32 %v951_v32, %v914_v30  ;;  %v988_v39 = vmul.f32 %v1925_v23, %v1879_v16  ;;  %v880_v26 = vld [vmem:[#allocation2 + $0x40] sm:$0xff] }
 0x11a   : > { %830 = vst.msk [vmem:[#allocation2 + $0x88] sm:$0xff] %vm812_vm1, %v805_v34  ;;  %v915_v13 = vadd.f32 %v899_v33, %v862_v62  ;;  %v953_v11 = vmul.f32 %v1913_v56, %v932_v27  ;;  %v989_v40 = vmul.f32 %v1925_v23, %v1902_v50  ;;  %v990_v35 = vmul.f32 %v1925_v23, %v1915_v59  ;;  %v2005_v33 = vld [vmem:[#allocation2 + $0x57] sm:$0xff] }
 0x11b   : > { %v1003_v44 = vadd.f32 %v987_v36, %v964_v3  ;;  %v1004_v1 = vadd.f32 %v988_v39, %v965_v17  ;;  %v1026_v16 = vmul.f32 %v1944_v2, %v1891_v4  ;;  %v1027_v41 = vmul.f32 %v1944_v2, %v1893_v45  ;;  %v1971_v45 = vld [vmem:[%s2234_s4 + $0x6] ss:$0 sm:$0xff] }
 0x11c   : > { %v1005_v14 = vadd.f32 %v989_v40, %v966_v37  ;;  %v1006_v0 = vadd.f32 %v990_v35, %v967_v38  ;;  %v1028_v46 = vmul.f32 %v1944_v2, %v878_v24  ;;  %v1029_v47 = vmul.f32 %v1944_v2, %v879_v25  ;;  %v882_v37 = vld [vmem:[#allocation2 + $0x50] sm:$0xff]  ;;  %v883_v38 = vld [vmem:[#allocation2 + $0x58] sm:$0xff] }
 0x11d   : > { %v1042_v12 = vadd.f32 %v1026_v16, %v1003_v44  ;;  %v1043_v48 = vadd.f32 %v1027_v41, %v1004_v1  ;;  %v1065_v49 = vmul.f32 %v1957_v43, %v929_v22  ;;  %v1066_v51 = vmul.f32 %v1957_v43, %v930_v7  ;;  %v843_v22 = vld [vmem:[#allocation2 + $0x3f] sm:$0xff]  ;;  %v844_v7 = vld [vmem:[#allocation2 + $0x47] sm:$0xff] }
 0x11e   : > { %v916_v52 = vadd.f32 %v900_v5, %v863_v19  ;;  %v952_v53 = vmul.f32 %v1913_v56, %v931_v6  ;;  %v1044_v55 = vadd.f32 %v1028_v46, %v1005_v14  ;;  %v1045_v4 = vadd.f32 %v1029_v47, %v1006_v0  ;;  %v881_v19 = vld [vmem:[#allocation2 + $0x48] sm:$0xff]  ;;  %v2010_v5 = vld [vmem:[%s2235_s5] ss:$0 sm:$0xff] }
 0x11f   : > { %v1081_v54 = vadd.f32 %v1065_v49, %v1042_v12  ;;  %v1082_v57 = vadd.f32 %v1066_v51, %v1043_v48  ;;  %v1104_v58 = vmul.f32 %v1971_v45, %v1902_v50  ;;  %v1105_v9 = vmul.f32 %v1971_v45, %v1915_v59  ;;  %v934_v40 = vld [vmem:[#allocation2 + $0x49] sm:$0xff]  ;;  %v2026_v14 = vld [vmem:[#allocation2 + $0x59] sm:$0xff] }
 0x120   : > { %v1977_v60 = vadd.f32 %v952_v53, %v915_v13  ;;  %v1979_v61 = vadd.f32 %v953_v11, %v916_v52  ;;  %v1067_v62 = vmul.f32 %v1957_v43, %v931_v6  ;;  %v1068_v63 = vmul.f32 %v1957_v43, %v932_v27  ;;  %v933_v11 = vld [vmem:[#allocation2 + $0x41] sm:$0xff]  ;;  %v935_v53 = vld [vmem:[#allocation2 + $0x51] sm:$0xff] }
 0x121   : > { %v1120_v10 = vadd.f32 %v1104_v58, %v1081_v54  ;;  %v1121_v50 = vadd.f32 %v1105_v9, %v1082_v57  ;;  %v1143_v18 = vmul.f32 %v1986_v20, %v878_v24  ;;  %v1144_v59 = vmul.f32 %v1986_v20, %v879_v25  ;;  %v2003_v25 = vld [vmem:[#allocation2 + $0x4f] sm:$0xff] }
 0x122   : > { %v1083_v29 = vadd.f32 %v1067_v62, %v1044_v55  ;;  %v1084_v30 = vadd.f32 %v1068_v63, %v1045_v4  ;;  %v1182_v15 = vmul.f32 %v1993_v21, %v931_v6  ;;  %v1183_v34 = vmul.f32 %v1993_v21, %v932_v27 }
 0x123   : > { %v1159_v28 = vadd.f32 %v1143_v18, %v1120_v10  ;;  %v1160_v31 = vadd.f32 %v1144_v59, %v1121_v50  ;;  %v1998_v32 = vmul.f32 %v1873_v8, %v843_v22  ;;  %v2001_v24 = vmul.f32 %v1873_v8, %v844_v7 }
 0x124   : > { %v2013_v3 = vmul.f32 %v1888_v42, %v880_v26  ;;  %v2016_v27 = vmul.f32 %v1888_v42, %v881_v19  ;;  %v1106_v36 = vmul.f32 %v1971_v45, %v843_v22  ;;  %v1107_v17 = vmul.f32 %v1971_v45, %v844_v7 }
 0x125   : > { %v1198_v39 = vadd.f32 %v1182_v15, %v1159_v28  ;;  %v1199_v13 = vadd.f32 %v1183_v34, %v1160_v31  ;;  %v1145_v35 = vmul.f32 %v1986_v20, %v880_v26  ;;  %v1146_v6 = vmul.f32 %v1986_v20, %v881_v19 }
 0x126   : > { %v1122_v44 = vadd.f32 %v1106_v36, %v1083_v29  ;;  %v1123_v1 = vadd.f32 %v1107_v17, %v1084_v30  ;;  %v866_v16 = vmul.f32 %v1873_v8, %v2003_v25  ;;  %v867_v41 = vmul.f32 %v1873_v8, %v2005_v33 }
 0x127   : > { %v1221_v0 = vadd.f32 %v2010_v5, %v1198_v39  ;;  %v1222_v46 = vadd.f32 %v2010_v5, %v1199_v13  ;;  %v903_v47 = vmul.f32 %v1888_v42, %v882_v37  ;;  %v904_v12 = vmul.f32 %v1888_v42, %v883_v38  ;;  %v847_v13 = vld [vmem:[#allocation2 + $0x5f] sm:$0xff] }
 0x128   : > { %v1161_v48 = vadd.f32 %v1145_v35, %v1122_v44  ;;  %v1162_v49 = vadd.f32 %v1146_v6, %v1123_v1  ;;  %v1184_v51 = vmul.f32 %v1993_v21, %v933_v11  ;;  %v1185_v52 = vmul.f32 %v1993_v21, %v934_v40  ;;  %v884_v1 = vld [vmem:[#allocation2 + $0x60] sm:$0xff] }
 0x129   : > { %v1237_v55 = vpack.c.bf16 %v1222_v46, %v1221_v0  ;;  %v919_v4 = vadd.f32 %v903_v47, %v866_v16  ;;  %v957_v54 = vmul.f32 %v1913_v56, %v2026_v14  ;;  %v991_v57 = vmul.f32 %v1925_v23, %v843_v22  ;;  %v2060_v16 = vld [vmem:[#allocation2 + $0x68] sm:$0xff] }
 0x12a   : > { %v954_v58 = vmul.f32 %v1913_v56, %v933_v11  ;;  %v1200_v9 = vadd.f32 %v1184_v51, %v1161_v48  ;;  %v1201_v62 = vadd.f32 %v1185_v52, %v1162_v49  ;;  %v992_v63 = vmul.f32 %v1925_v23, %v844_v7  ;;  %v937_v46 = vld [vmem:[#allocation2 + $0x61] sm:$0xff] }
 0x12b   : > { %1560 = vmatprep.mubr.msk.bf16.mxu1 %vm812_vm1, %v1237_v55  ;;  %v955_v10 = vmul.f32 %v1913_v56, %v934_v40  ;;  %v920_v50 = vadd.f32 %v904_v12, %v867_v41  ;;  %v956_v18 = vmul.f32 %v1913_v56, %v935_v53  ;;  %v1007_v59 = vadd.f32 %v991_v57, %v1977_v60 }
 0x12c   : > { %v1223_v29 = vadd.f32 %v2010_v5, %v1200_v9  ;;  %v1224_v30 = vadd.f32 %v2010_v5, %v1201_v62  ;;  %v1008_v22 = vadd.f32 %v992_v63, %v1979_v61  ;;  %v1030_v15 = vmul.f32 %v1944_v2, %v880_v26  ;;  %v848_v61 = vld [vmem:[#allocation2 + $0x67] sm:$0xff] }
 0x12d   : > { %v2047_v34 = vadd.f32 %v956_v18, %v919_v4  ;;  %v2049_v7 = vadd.f32 %v957_v54, %v920_v50  ;;  %v993_v28 = vmul.f32 %v1925_v23, %v2003_v25  ;;  %v1031_v31 = vmul.f32 %v1944_v2, %v881_v19 }
 0x12e   : > { %v1238_v36 = vpack.c.bf16 %v1224_v30, %v1223_v29  ;;  %v994_v60 = vmul.f32 %v1925_v23, %v2005_v33  ;;  %v1046_v17 = vadd.f32 %v1030_v15, %v1007_v59  ;;  %v1069_v39 = vmul.f32 %v1957_v43, %v933_v11 }
 0x12f   : > { %v1032_v26 = vmul.f32 %v1944_v2, %v882_v37  ;;  %v1033_v35 = vmul.f32 %v1944_v2, %v883_v38  ;;  %v1047_v6 = vadd.f32 %v1031_v31, %v1008_v22  ;;  %v1070_v44 = vmul.f32 %v1957_v43, %v934_v40 }
 0x130   : > { %1561 = vmatmul.mubr.msk.bf16.vlgmr.msra.gmra.mrb[4].mxu1 %vm812_vm1, %v1238_v36  ;;  %v1085_v19 = vadd.f32 %v1069_v39, %v1046_v17  ;;  %v1108_v41 = vmul.f32 %v1971_v45, %v2003_v25  ;;  %v1109_v11 = vmul.f32 %v1971_v45, %v2005_v33  ;;  %v1147_v0 = vmul.f32 %v1986_v20, %v882_v37  ;;  %v849_v36 = vld [vmem:[#allocation2 + $0x6f] sm:$0xff] }
 0x131   : > { %v1086_v47 = vadd.f32 %v1070_v44, %v1047_v6  ;;  %v1148_v12 = vmul.f32 %v1986_v20, %v883_v38  ;;  %v868_v40 = vmul.f32 %v1873_v8, %v847_v13  ;;  %v869_v48 = vmul.f32 %v1873_v8, %v848_v61  ;;  %v938_v38 = vld [vmem:[#allocation2 + $0x69] sm:$0xff]  ;;  %v850_v6 = vld [vmem:[#allocation2 + $0x77] sm:$0xff] }
 0x132   : > { %v1124_v49 = vadd.f32 %v1108_v41, %v1085_v19  ;;  %v905_v51 = vmul.f32 %v1888_v42, %v884_v1  ;;  %v906_v52 = vmul.f32 %v1888_v42, %v2060_v16  ;;  %v917_v25 = vadd.f32 %v2013_v3, %v1998_v32  ;;  %v886_v44 = vld [vmem:[#allocation2 + $0x70] sm:$0xff]  ;;  %v887_v19 = vld [vmem:[#allocation2 + $0x78] sm:$0xff] }
 0x133   : > { %v1125_v33 = vadd.f32 %v1109_v11, %v1086_v47  ;;  %v1186_v37 = vmul.f32 %v1993_v21, %v935_v53  ;;  %v918_v55 = vadd.f32 %v2016_v27, %v2001_v24  ;;  %v958_v4 = vmul.f32 %v1913_v56, %v937_v46 }
 0x134   : > { %v1163_v54 = vadd.f32 %v1147_v0, %v1124_v49  ;;  %v921_v57 = vadd.f32 %v905_v51, %v868_v40  ;;  %v922_v9 = vadd.f32 %v906_v52, %v869_v48  ;;  %v970_v62 = vadd.f32 %v954_v58, %v917_v25  ;;  %v940_v48 = vld [vmem:[#allocation2 + $0x79] sm:$0xff]  ;;  %v939_v25 = vld [vmem:[#allocation2 + $0x71] sm:$0xff] }
 0x135   : > { %v1071_v63 = vmul.f32 %v1957_v43, %v935_v53  ;;  %v1164_v50 = vadd.f32 %v1148_v12, %v1125_v33  ;;  %v1187_v18 = vmul.f32 %v1993_v21, %v2026_v14  ;;  %v971_v32 = vadd.f32 %v955_v10, %v918_v55 }
 0x136   : > { %v1072_v3 = vmul.f32 %v1957_v43, %v2026_v14  ;;  %v1202_v59 = vadd.f32 %v1186_v37, %v1163_v54  ;;  %v959_v24 = vmul.f32 %v1913_v56, %v938_v38  ;;  %v1009_v27 = vadd.f32 %v993_v28, %v970_v62 }
 0x137   : > { %v1203_v29 = vadd.f32 %v1187_v18, %v1164_v50  ;;  %v995_v30 = vmul.f32 %v1925_v23, %v847_v13  ;;  %v996_v22 = vmul.f32 %v1925_v23, %v848_v61  ;;  %v1010_v58 = vadd.f32 %v994_v60, %v971_v32 }
 0x138   : > { %v2088_v15 = vadd.f32 %v958_v4, %v921_v57  ;;  %v2090_v53 = vadd.f32 %v959_v24, %v922_v9  ;;  %v1034_v31 = vmul.f32 %v1944_v2, %v884_v1  ;;  %v1048_v10 = vadd.f32 %v1032_v26, %v1009_v27  ;;  %v851_v24 = vld [vmem:[#allocation2 + $0x7f] sm:$0xff] }
 0x139   : > { %v1225_v14 = vadd.f32 %v2010_v5, %v1202_v59  ;;  %v1226_v17 = vadd.f32 %v2010_v5, %v1203_v29  ;;  %v1035_v28 = vmul.f32 %v1944_v2, %v2060_v16  ;;  %v1049_v39 = vadd.f32 %v1033_v35, %v1010_v58 }
 0x13a   : > { %v1073_v60 = vmul.f32 %v1957_v43, %v937_v46  ;;  %v1087_v41 = vadd.f32 %v1071_v63, %v1048_v10  ;;  %v1110_v11 = vmul.f32 %v1971_v45, %v847_v13  ;;  %v1111_v0 = vmul.f32 %v1971_v45, %v848_v61 }
 0x13b   : > { %v1239_v26 = vpack.c.bf16 %v1226_v17, %v1225_v14  ;;  %v1088_v47 = vadd.f32 %v1072_v3, %v1049_v39  ;;  %v1149_v12 = vmul.f32 %v1986_v20, %v884_v1  ;;  %v870_v40 = vmul.f32 %v1873_v8, %v849_v36  ;;  %v888_v17 = vld [vmem:[#allocation2 + $0x80] sm:$0xff]  ;;  %v889_v39 = vld [vmem:[#allocation2 + $0x88] sm:$0xff] }
 0x13c   : > { %v1126_v49 = vadd.f32 %v1110_v11, %v1087_v41  ;;  %v871_v35 = vmul.f32 %v1873_v8, %v850_v6  ;;  %v907_v51 = vmul.f32 %v1888_v42, %v886_v44  ;;  %v908_v52 = vmul.f32 %v1888_v42, %v887_v19 }
 0x13d   : > { %1564 = vmatprep.mubr.msk.bf16.mxu1 %vm812_vm1, %v1239_v26  ;;  %v1074_v13 = vmul.f32 %v1957_v43, %v938_v38  ;;  %v1127_v61 = vadd.f32 %v1111_v0, %v1088_v47  ;;  %v1150_v33 = vmul.f32 %v1986_v20, %v2060_v16  ;;  %v1188_v1 = vmul.f32 %v1993_v21, %v937_v46 }
 0x13e   : > { %v1165_v37 = vadd.f32 %v1149_v12, %v1126_v49  ;;  %v1189_v55 = vmul.f32 %v1993_v21, %v938_v38  ;;  %v923_v4 = vadd.f32 %v907_v51, %v870_v40  ;;  %v961_v54 = vmul.f32 %v1913_v56, %v940_v48  ;;  %v941_v12 = vld [vmem:[#allocation2 + $0x81] sm:$0xff] }
 0x13f   : > { %v1166_v57 = vadd.f32 %v1150_v33, %v1127_v61  ;;  %v960_v9 = vmul.f32 %v1913_v56, %v939_v25  ;;  %v1011_v62 = vadd.f32 %v995_v30, %v2047_v34  ;;  %v1012_v63 = vadd.f32 %v996_v22, %v2049_v7  ;;  %v852_v7 = vld [vmem:[#allocation2 + $0x87] sm:$0xff] }
 0x140   : > { %v1204_v50 = vadd.f32 %v1188_v1, %v1165_v37  ;;  %v924_v18 = vadd.f32 %v908_v52, %v871_v35  ;;  %v997_v32 = vmul.f32 %v1925_v23, %v849_v36  ;;  %v998_v16 = vmul.f32 %v1925_v23, %v850_v6 }
 0x141   : > { %v1205_v46 = vadd.f32 %v1189_v55, %v1166_v57  ;;  %v1036_v3 = vmul.f32 %v1944_v2, %v886_v44  ;;  %v1050_v38 = vadd.f32 %v1034_v31, %v1011_v62  ;;  %v1051_v59 = vadd.f32 %v1035_v28, %v1012_v63 }
 0x142   : > { %v1227_v27 = vadd.f32 %v2010_v5, %v1204_v50  ;;  %v2119_v29 = vadd.f32 %v960_v9, %v923_v4  ;;  %v2121_v58 = vadd.f32 %v961_v54, %v924_v18  ;;  %v1112_v34 = vmul.f32 %v1971_v45, %v849_v36 }
 0x143   : > { %v1228_v30 = vadd.f32 %v2010_v5, %v1205_v46  ;;  %v1089_v22 = vadd.f32 %v1073_v60, %v1050_v38  ;;  %v1090_v10 = vadd.f32 %v1074_v13, %v1051_v59  ;;  %v1113_v14 = vmul.f32 %v1971_v45, %v850_v6  ;;  %v942_v60 = vld [vmem:[#allocation2 + $0x89] sm:$0xff] }
 0x144   : > { %v1037_v31 = vmul.f32 %v1944_v2, %v887_v19  ;;  %v1151_v28 = vmul.f32 %v1986_v20, %v886_v44  ;;  %v1152_v41 = vmul.f32 %v1986_v20, %v887_v19  ;;  %v872_v11 = vmul.f32 %v1873_v8, %v851_v24 }
 0x145   : > { %v1240_v0 = vpack.c.bf16 %v1228_v30, %v1227_v27  ;;  %v1128_v26 = vadd.f32 %v1112_v34, %v1089_v22  ;;  %v1129_v36 = vadd.f32 %v1113_v14, %v1090_v10  ;;  %v873_v47 = vmul.f32 %v1873_v8, %v852_v7  ;;  %v981_v30 = vld [vmem:[#allocation2 + $0x97] sm:$0xff] }
 0x146   : > { %v1075_v40 = vmul.f32 %v1957_v43, %v939_v25  ;;  %v1076_v6 = vmul.f32 %v1957_v43, %v940_v48  ;;  %v909_v49 = vmul.f32 %v1888_v42, %v888_v17  ;;  %v910_v35 = vmul.f32 %v1888_v42, %v889_v39  ;;  %v1019_v22 = vld [vmem:[#allocation2 + $0x90] sm:$0xff] }
 0x147   : > { %1565 = vmatmul.mubr.msk.bf16.gmra.mrb[8].mxu1 %vm812_vm1, %v1240_v0  ;;  %v1167_v44 = vadd.f32 %v1151_v28, %v1128_v26  ;;  %v1168_v19 = vadd.f32 %v1152_v41, %v1129_v36  ;;  %v1190_v51 = vmul.f32 %v1993_v21, %v939_v25  ;;  %v1191_v52 = vmul.f32 %v1993_v21, %v940_v48  ;;  %v1058_v28 = vld [vmem:[#allocation2 + $0x91] sm:$0xff] }
 0x148   : > { %v962_v8 = vmul.f32 %v1913_v56, %v941_v12  ;;  %v963_v13 = vmul.f32 %v1913_v56, %v942_v60  ;;  %v1013_v61 = vadd.f32 %v997_v32, %v2088_v15  ;;  %v1014_v33 = vadd.f32 %v998_v16, %v2090_v53 }
 0x149   : > { %v1206_v1 = vadd.f32 %v1190_v51, %v1167_v44  ;;  %v1207_v37 = vadd.f32 %v1191_v52, %v1168_v19  ;;  %v925_v55 = vadd.f32 %v909_v49, %v872_v11  ;;  %v926_v42 = vadd.f32 %v910_v35, %v873_v47 }
 0x14a   : > { %v999_v4 = vmul.f32 %v1925_v23, %v851_v24  ;;  %v1000_v54 = vmul.f32 %v1925_v23, %v852_v7  ;;  %v1052_v57 = vadd.f32 %v1036_v3, %v1013_v61  ;;  %v1053_v25 = vadd.f32 %v1037_v31, %v1014_v33  ;;  %v980_v3 = vld [vmem:[#allocation2 + $0x8f] sm:$0xff]  ;;  %v1020_v31 = vld [vmem:[#allocation2 + $0x98] sm:$0xff] }
 0x14b   : > { %v1229_v48 = vadd.f32 %v2010_v5, %v1206_v1  ;;  %v1230_v9 = vadd.f32 %v2010_v5, %v1207_v37  ;;  %v1038_v56 = vmul.f32 %v1944_v2, %v888_v17  ;;  %v1039_v15 = vmul.f32 %v1944_v2, %v889_v39  ;;  %v1097_v33 = vld [vmem:[#allocation2 + $0x9f] sm:$0xff] }
 0x14c   : > { %v1091_v62 = vadd.f32 %v1075_v40, %v1052_v57  ;;  %v1092_v53 = vadd.f32 %v1076_v6, %v1053_v25  ;;  %v1114_v63 = vmul.f32 %v1971_v45, %v851_v24  ;;  %v1115_v50 = vmul.f32 %v1971_v45, %v852_v7  ;;  %v1059_v6 = vld [vmem:[#allocation2 + $0x99] sm:$0xff] }
 0x14d   : > { %v1241_v18 = vpack.c.bf16 %v1230_v9, %v1229_v48  ;;  %v978_v32 = vadd.f32 %v962_v8, %v925_v55  ;;  %v979_v16 = vadd.f32 %v963_v13, %v926_v42  ;;  %v1077_v46 = vmul.f32 %v1957_v43, %v941_v12  ;;  %v1136_v9 = vld [vmem:[#allocation2 + $0xa0] sm:$0xff] }
 0x14e   : > { %v1130_v38 = vadd.f32 %v1114_v63, %v1091_v62  ;;  %v1131_v59 = vadd.f32 %v1115_v50, %v1092_v53  ;;  %v1153_v27 = vmul.f32 %v1986_v20, %v888_v17  ;;  %v1154_v34 = vmul.f32 %v1986_v20, %v889_v39  ;;  %v1137_v62 = vld [vmem:[#allocation2 + $0xa8] sm:$0xff] }
 0x14f   : > { %1568 = vmatprep.mubr.msk.bf16.mxu1 %vm812_vm1, %v1241_v18  ;;  %v1078_v24 = vmul.f32 %v1957_v43, %v942_v60  ;;  %v1192_v7 = vmul.f32 %v1993_v21, %v941_v12  ;;  %v1015_v10 = vadd.f32 %v999_v4, %v2119_v29  ;;  %v1016_v14 = vadd.f32 %v1000_v54, %v2121_v58  ;;  %v1098_v4 = vld [vmem:[#allocation2 + $0xa7] sm:$0xff] }
 0x150   : > { %v1169_v41 = vadd.f32 %v1153_v27, %v1130_v38  ;;  %v1170_v11 = vadd.f32 %v1154_v34, %v1131_v59  ;;  %v1193_v17 = vmul.f32 %v1993_v21, %v942_v60  ;;  %v1001_v39 = vmul.f32 %v1925_v23, %v980_v3  ;;  %v1175_v18 = vld [vmem:[#allocation2 + $0xa1] sm:$0xff] }
 0x151   : > { %v1002_v0 = vmul.f32 %v1925_v23, %v981_v30  ;;  %v1040_v26 = vmul.f32 %v1944_v2, %v1019_v22  ;;  %v1054_v36 = vadd.f32 %v1038_v56, %v1015_v10  ;;  %v1055_v47 = vadd.f32 %v1039_v15, %v1016_v14 }
 0x152   : > { %v1208_v40 = vadd.f32 %v1192_v7, %v1169_v41  ;;  %v1209_v12 = vadd.f32 %v1193_v17, %v1170_v11  ;;  %v1041_v29 = vmul.f32 %v1944_v2, %v1020_v31  ;;  %v1079_v58 = vmul.f32 %v1957_v43, %v1058_v28 }
 0x153   : > { %v1093_v49 = vadd.f32 %v1077_v46, %v1054_v36  ;;  %v1094_v35 = vadd.f32 %v1078_v24, %v1055_v47  ;;  %v1116_v44 = vmul.f32 %v1971_v45, %v980_v3  ;;  %v1117_v60 = vmul.f32 %v1971_v45, %v981_v30  ;;  %v1176_v46 = vld [vmem:[#allocation2 + $0xa9] sm:$0xff] }
 0x154   : > { %v1231_v19 = vadd.f32 %v2010_v5, %v1208_v40  ;;  %v1232_v23 = vadd.f32 %v2010_v5, %v1209_v12  ;;  %v1155_v51 = vmul.f32 %v1986_v20, %v1019_v22  ;;  %v1017_v52 = vadd.f32 %v1001_v39, %v978_v32 }
 0x155   : > { %v1132_v8 = vadd.f32 %v1116_v44, %v1093_v49  ;;  %v1133_v13 = vadd.f32 %v1117_v60, %v1094_v35  ;;  %v1156_v2 = vmul.f32 %v1986_v20, %v1020_v31  ;;  %v1018_v61 = vadd.f32 %v1002_v0, %v979_v16 }
 0x156   : > { %v1242_v1 = vpack.c.bf16 %v1232_v23, %v1231_v19  ;;  %v1080_v37 = vmul.f32 %v1957_v43, %v1059_v6  ;;  %v1194_v55 = vmul.f32 %v1993_v21, %v1058_v28  ;;  %v1056_v42 = vadd.f32 %v1040_v26, %v1017_v52 }
 0x157   : > { %v1171_v54 = vadd.f32 %v1155_v51, %v1132_v8  ;;  %v1172_v57 = vadd.f32 %v1156_v2, %v1133_v13  ;;  %v1195_v25 = vmul.f32 %v1993_v21, %v1059_v6  ;;  %v1057_v48 = vadd.f32 %v1041_v29, %v1018_v61 }
 0x158   : > { %1569 = vmatmul.mubr.msk.bf16.gmra.mrb[12].mxu1 %vm812_vm1, %v1242_v1  ;;  %v1095_v56 = vadd.f32 %v1079_v58, %v1056_v42  ;;  %v1118_v15 = vmul.f32 %v1971_v45, %v1097_v33  ;;  %v1119_v43 = vmul.f32 %v1971_v45, %v1098_v4  ;;  %v1157_v16 = vmul.f32 %v1986_v20, %v1136_v9 }
 0x159   : > { %v1210_v53 = vadd.f32 %v1194_v55, %v1171_v54  ;;  %v1211_v63 = vadd.f32 %v1195_v25, %v1172_v57  ;;  %v1096_v50 = vadd.f32 %v1080_v37, %v1057_v48  ;;  %v1158_v27 = vmul.f32 %v1986_v20, %v1137_v62  ;;  %v1493_v20 = vld [vmem:[%s2237_s7] ss:$0 sm:$0xff] }
 0x15a   : > { %v1134_v32 = vadd.f32 %v1118_v15, %v1095_v56  ;;  %v1196_v30 = vmul.f32 %v1993_v21, %v1175_v18  ;;  %v1197_v45 = vmul.f32 %v1993_v21, %v1176_v46 }
 0x15b   : > { %v1233_v3 = vadd.f32 %v2010_v5, %v1210_v53  ;;  %v1234_v38 = vadd.f32 %v2010_v5, %v1211_v63  ;;  %v1135_v59 = vadd.f32 %v1119_v43, %v1096_v50 }
 0x15c   : > { %v1173_v34 = vadd.f32 %v1157_v16, %v1134_v32 }
 0x15d   : > { %v1243_v22 = vpack.c.bf16 %v1234_v38, %v1233_v3  ;;  %v1174_v24 = vadd.f32 %v1158_v27, %v1135_v59 }
 0x15e   : > { %v1212_v7 = vadd.f32 %v1196_v30, %v1173_v34 }
 0x15f   : > { %1572 = vmatprep.mubr.msk.bf16.mxu1 %vm812_vm1, %v1243_v22  ;;  %v1213_v10 = vadd.f32 %v1197_v45, %v1174_v24 }
 0x160   : > { %v1235_v14 = vadd.f32 %v2010_v5, %v1212_v7 }
 0x161   : > { %v1236_v31 = vadd.f32 %v2010_v5, %v1213_v10 }
 0x163   : > { %v1244_v28 = vpack.c.bf16 %v1236_v31, %v1235_v14 }
 0x165   : > { %1573 = vmatmul.mubr.msk.bf16.gmra.mrb[16].mxu1 %vm812_vm1, %v1244_v28 }
 0x203   : > { %v1562_v21 = vpop.f32.mrb[4].mxu1 }
 0x204   : > { %v1335_v5 = vadd.f32 %v1562_v21, %v1493_v20  ;;  %v1326_v41 = vpop.f32.mrb[5].mxu1 }
 0x205   : > { %v1327_v11 = vadd.f32 %v1493_v20, %v1326_v41  ;;  %v1563_v17 = vpop.f32.mrb[6].mxu1 }
 0x206   : > { %1392 = vst.msk [vmem:[%s2193_s13 + $0x10] sm:$0xff] %vm1389_vm2, %v1335_v5  ;;  %v1338_v39 = vadd.f32 %v1563_v17, %v1493_v20  ;;  %v1329_v0 = vpop.f32.mrb[7].mxu1 }
 0x207   : > { %1390 = vst.msk [vmem:[%s2193_s13] sm:$0xff] %vm1389_vm2, %v1327_v11  ;;  %v1330_v26 = vadd.f32 %v1493_v20, %v1329_v0 }
 0x208   : > { %1393 = vst.msk [vmem:[%s2193_s13 + $0x18] sm:$0xff] %vm1389_vm2, %v1338_v39 }
 0x209   : > { %1391 = vst.msk [vmem:[%s2193_s13 + $0x8] sm:$0xff] %vm1389_vm2, %v1330_v26 }
 0x21a   : > { %v1566_v36 = vpop.f32.mrb[8].mxu1 }
 0x21b   : > { %v1351_v47 = vadd.f32 %v1566_v36, %v1493_v20  ;;  %v1342_v40 = vpop.f32.mrb[9].mxu1 }
 0x21c   : > { %v1343_v12 = vadd.f32 %v1493_v20, %v1342_v40  ;;  %v1567_v29 = vpop.f32.mrb[10].mxu1 }
 0x21d   : > { %1396 = vst.msk [vmem:[%s2193_s13 + $0x30] sm:$0xff] %vm1389_vm2, %v1351_v47  ;;  %v1354_v58 = vadd.f32 %v1567_v29, %v1493_v20  ;;  %v1345_v6 = vpop.f32.mrb[11].mxu1 }
 0x21e   : > { %1394 = vst.msk [vmem:[%s2193_s13 + $0x20] sm:$0xff] %vm1389_vm2, %v1343_v12  ;;  %v1346_v49 = vadd.f32 %v1493_v20, %v1345_v6 }
 0x21f   : > { %1397 = vst.msk [vmem:[%s2193_s13 + $0x38] sm:$0xff] %vm1389_vm2, %v1354_v58 }
 0x220   : > { %1395 = vst.msk [vmem:[%s2193_s13 + $0x28] sm:$0xff] %vm1389_vm2, %v1346_v49 }
 0x22b   : > { %v1570_v35 = vpop.f32.mrb[12].mxu1 }
 0x22c   : > { %v1367_v44 = vadd.f32 %v1570_v35, %v1493_v20  ;;  %v1358_v60 = vpop.f32.mrb[13].mxu1 }
 0x22d   : > { %v1359_v19 = vadd.f32 %v1493_v20, %v1358_v60  ;;  %v1571_v23 = vpop.f32.mrb[14].mxu1 }
 0x22e   : > { %1400 = vst.msk [vmem:[%s2193_s13 + $0x50] sm:$0xff] %vm1389_vm2, %v1367_v44  ;;  %v1370_v51 = vadd.f32 %v1571_v23, %v1493_v20  ;;  %v1361_v52 = vpop.f32.mrb[15].mxu1 }
 0x22f   : > { %1398 = vst.msk [vmem:[%s2193_s13 + $0x40] sm:$0xff] %vm1389_vm2, %v1359_v19  ;;  %v1362_v8 = vadd.f32 %v1493_v20, %v1361_v52 }
 0x230   : > { %1401 = vst.msk [vmem:[%s2193_s13 + $0x58] sm:$0xff] %vm1389_vm2, %v1370_v51 }
 0x231   : > { %1399 = vst.msk [vmem:[%s2193_s13 + $0x48] sm:$0xff] %vm1389_vm2, %v1362_v8 }
 0x238   : > { %v1574_v13 = vpop.f32.mrb[16].mxu1 }
 0x239   : > { %v1383_v2 = vadd.f32 %v1574_v13, %v1493_v20  ;;  %v1374_v61 = vpop.f32.mrb[17].mxu1 }
 0x23a   : > { %v1375_v33 = vadd.f32 %v1493_v20, %v1374_v61  ;;  %v1575_v1 = vpop.f32.mrb[18].mxu1 }
 0x23b   : > { %1404 = vst.msk [vmem:[%s2193_s13 + $0x70] sm:$0xff] %vm1389_vm2, %v1383_v2  ;;  %v1386_v37 = vadd.f32 %v1575_v1, %v1493_v20  ;;  %v1377_v55 = vpop.f32.mrb[19].mxu1 }
 0x23c   : > { %1402 = vst.msk [vmem:[%s2193_s13 + $0x60] sm:$0xff] %vm1389_vm2, %v1375_v33  ;;  %v1378_v42 = vadd.f32 %v1493_v20, %v1377_v55 }
 0x23d   : > { %1405 = vst.msk [vmem:[%s2193_s13 + $0x78] sm:$0xff] %vm1389_vm2, %v1386_v37 }
 0x23e   : > { %1403 = vst.msk [vmem:[%s2193_s13 + $0x68] sm:$0xff] %vm1389_vm2, %v1378_v42 }
 0x23f PF: > { %s18_s27 = sadd.s32 1, %s1599_s27  }
 0x240   : > { %p15_p4 = scmp.ge.s32.totalorder %s18_s27, 4  }
 0x242   :  { %17 = sbr.rel (!%p15_p4) target bundleno = 1 (0x1), region = 82 }

</bundles_post_ra>
